<compile_context>
chip_gen: v6e
topology: v6e:2x2x1
jax: 0.10.0
libtpu: 0.0.40
codegen_flags: <defaults>
</compile_context>

<pallas_src>
import functools

import jax
import jax.numpy as jnp
from jax.experimental import pallas as pl
from jax.experimental.pallas import tpu as pltpu


def _sigmoid(x):
    # exp goes to the EUP; exact divide keeps the 1e-3 reference check tight.
    return 1.0 / (1.0 + jnp.exp(-x))


# --------------------------- fused RFCBAMConv kernel ---------------------------
def rfcbam_fused_kernel(x_ref, w1t_ref, w2_ref, wg_ref, wsa_ref, wc_ref,
                        out_ref, act_ref, *, C, K, H, W):
    K2 = K * K
    K2C = K2 * C
    HW = H * W
    P = K // 2
    W1 = W + 1
    f32 = jnp.float32

    x2 = x_ref[0]                                                   # (C, HW)

    # ---- SE channel attention: GAP -> FC -> ReLU -> FC -> sigmoid ------------
    gap = jnp.mean(x2, axis=-1, keepdims=True)                      # (C, 1)
    hid = jnp.maximum(jnp.sum(w1t_ref[...] * gap, axis=0, keepdims=True), 0.0)
    ca = _sigmoid(jnp.sum(w2_ref[...] * hid, axis=1, keepdims=True))  # (C, 1)

    # ---- column-validity masks shared by the generate taps and the SA conv ---
    col = jax.lax.broadcasted_iota(jnp.int32, (1, HW), 1) % W
    mask_m1 = (col > 0).astype(f32)            # reading x-1 is valid
    mask_p1 = (col < W - 1).astype(f32)        # reading x+1 is valid

    # ---- generate: depthwise KxK conv with folded BN1 + ReLU ------------------
    # Taps are synthesized from the (C, HW) image via shifted slices of a
    # zero-padded row (no im2col in HBM).  Accumulation is tap-outermost into
    # one dense (K2*C, HW) buffer, row r = j*C + c; BN1 shift is the extra
    # weight column consumed after the loop.
    xpad = jnp.concatenate(
        [jnp.zeros((C, W1), f32), x2, jnp.zeros((C, W1), f32)], axis=1)
    acc = jnp.zeros((K2C, HW), f32)
    for t in range(K2):
        sy, sx = t // K - P, t % K - P
        d = sy * W + sx
        xt = xpad[:, W1 + d:W1 + d + HW]                            # (C, HW)
        if sx == -1:
            xt = xt * mask_m1
        elif sx == 1:
            xt = xt * mask_p1
        acc = acc + wg_ref[:, t:t + 1] * jnp.concatenate([xt] * K2, axis=0)
    gf = jnp.maximum(acc + wg_ref[:, K2:K2 + 1], 0.0)               # (K2C, HW)

    # ---- channel max / mean, interleaved into one dense zero-padded stack ----
    rows = []
    for j in range(K2):
        g = gf[j * C:(j + 1) * C, :]
        rows.append(jnp.max(g, axis=0, keepdims=True))
        rows.append(jnp.mean(g, axis=0, keepdims=True))
    feat = jnp.concatenate(rows, axis=0)                            # (2*K2, HW)
    fpad = jnp.concatenate(
        [jnp.zeros((2 * K2, W1), f32), feat, jnp.zeros((2 * K2, W1), f32)],
        axis=1)

    # ---- spatial attention: 3x3 conv on the rearranged (H*K, W*K) grid -------
    # Evaluated directly in the (tap, HW) layout: an expanded-grid offset is a
    # tap remap plus a base-grid shift (static lane slice + column mask); the
    # interleaved max/mean rows make every FMA a (2, HW) operand.
    def remap(n, o):
        a = n + o
        if a < 0:
            return K - 1, -1
        if a >= K:
            return 0, 1
        return a, 0

    rfa_rows = []                                                   # K2C x (1, HW)
    for n1 in range(K):
        for n2 in range(K):
            r2 = jnp.zeros((2, HW), f32)
            for oy in (-1, 0, 1):
                n1p, sy = remap(n1, oy)
                for ox in (-1, 0, 1):
                    n2p, sx = remap(n2, ox)
                    jp = n1p * K + n2p
                    d = sy * W + sx
                    src = fpad[2 * jp:2 * jp + 2, W1 + d:W1 + d + HW]
                    if sx == 1:
                        src = src * mask_p1
                    elif sx == -1:
                        src = src * mask_m1
                    k9 = (oy + 1) * 3 + (ox + 1)
                    r2 = r2 + wsa_ref[:, k9:k9 + 1] * src           # (2,1)*(2,HW)
            rfa_j = _sigmoid(r2[0:1, :] + r2[1:2, :])               # (1, HW)
            rfa_rows.extend([rfa_j] * C)
    rfa_exp = jnp.concatenate(rfa_rows, axis=0)                     # (K2C, HW)

    # ---- unfold * rfa into the matmul activation scratch (bias ones-row) -----
    ca_full = jnp.concatenate([ca] * K2, axis=0)                    # (K2C, 1)
    act_ref[...] = jnp.concatenate(
        [gf * ca_full * rfa_exp, jnp.ones((1, HW), f32)], axis=0)   # (K2C+1, HW)

    # ---- final stride-K conv: ONE fused MXU matmul (folded BN2 + bias + ReLU) -
    res = jnp.dot(wc_ref[...], act_ref[...], preferred_element_type=f32)
    out_ref[0] = jnp.maximum(res, 0.0)


# ------------------------------------ wrapper ------------------------------------
def rfcbam_conv_forward(x, params, *, kernel_size=3):
    B, C, H, W = x.shape
    K = kernel_size
    K2 = K * K
    K2C = K2 * C
    HW = H * W
    OUT = params["w_conv"].shape[0]
    ratio = params["w_fc1"].shape[0]
    eps = 1e-5
    f32 = jnp.float32

    # fold BN1 / BN2 (inference mode) into scales / shifts
    s1 = params["bn1_gamma"] / jnp.sqrt(params["bn1_var"] + eps)        # (C*K2,)
    t1 = params["bn1_beta"] - params["bn1_mean"] * s1                   # (C*K2,)
    s2 = params["bn2_gamma"] / jnp.sqrt(params["bn2_var"] + eps)        # (OUT,)
    bias2 = s2 * params["b_conv"] + params["bn2_beta"] - params["bn2_mean"] * s2

    # generate-conv weights with BN1 scale folded, row j*C+c, column t;
    # the BN1 shift rides along as an extra (last) column.
    wg_cjt = params["w_gen"].reshape(C, K2, K2) * s1.reshape(C, K2, 1)  # [c,j,t]
    wg_main = wg_cjt.transpose(1, 0, 2).reshape(K2C, K2)                # [j*C+c, t]
    t1_col = t1.reshape(C, K2).T.reshape(K2C, 1)                        # [j*C+c, 1]
    wg = jnp.concatenate([wg_main, t1_col], axis=1)                     # (K2C, K2+1)

    # final-conv weights with BN2 scale folded, column j*C+c; bias as last column
    wc_main = (params["w_conv"].reshape(OUT, C, K2) * s2[:, None, None]
               ).transpose(0, 2, 1).reshape(OUT, K2C)
    wc = jnp.concatenate([wc_main, bias2.reshape(OUT, 1)], axis=1)      # (OUT, K2C+1)

    # SE weights oriented so no transpose is needed inside the kernel
    w1t = params["w_fc1"].T                                             # (C, ratio)
    w2 = params["w_fc2"]                                                # (C, ratio)
    # 3x3 spatial-attention weights: [channel(max/mean), 3x3 offset]
    wsa = params["w_sa"].reshape(2, K2)

    # lane-dense input, no im2col / no HBM blow-up
    x_flat = x.reshape(B, C, HW)

    kernel = functools.partial(rfcbam_fused_kernel, C=C, K=K, H=H, W=W)
    out = pl.pallas_call(
        kernel,
        grid=(B,),
        in_specs=[
            pl.BlockSpec((1, C, HW), lambda b: (b, 0, 0)),
            pl.BlockSpec((C, ratio), lambda b: (0, 0)),
            pl.BlockSpec((C, ratio), lambda b: (0, 0)),
            pl.BlockSpec((K2C, K2 + 1), lambda b: (0, 0)),
            pl.BlockSpec((2, K2), lambda b: (0, 0)),
            pl.BlockSpec((OUT, K2C + 1), lambda b: (0, 0)),
        ],
        out_specs=pl.BlockSpec((1, OUT, HW), lambda b: (b, 0, 0)),
        out_shape=jax.ShapeDtypeStruct((B, OUT, HW), f32),
        scratch_shapes=[pltpu.VMEM((K2C + 1, HW), f32)],
        compiler_params=pltpu.CompilerParams(dimension_semantics=("parallel",)),
    )(x_flat, w1t, w2, wg, wsa, wc)

    # (B, OUT, HW) -> NCHW is a free reshape (no transpose / HBM copy).
    return out.reshape(B, OUT, H, W)


# ------------------------------ pure-JAX reference ------------------------------
def _conv2d(x, w, stride, padding, groups=1):
    return jax.lax.conv_general_dilated(
        x, w, window_strides=(stride, stride),
        padding=[(padding, padding), (padding, padding)],
        dimension_numbers=("NCHW", "OIHW", "NCHW"),
        feature_group_count=groups)


def reference_forward(x, params, *, kernel_size=3):
    B, C, H, W = x.shape
    K = kernel_size
    eps = 1e-5
    gap = x.mean(axis=(2, 3))
    h1 = jax.nn.relu(gap @ params["w_fc1"].T)
    ca = jax.nn.sigmoid(h1 @ params["w_fc2"].T)[:, :, None, None]
    gf = _conv2d(x, params["w_gen"], 1, K // 2, groups=C)
    s1 = params["bn1_gamma"] / jnp.sqrt(params["bn1_var"] + eps)
    t1 = params["bn1_beta"] - params["bn1_mean"] * s1
    gf = jax.nn.relu(gf * s1[None, :, None, None] + t1[None, :, None, None])
    h, w_ = gf.shape[2:]
    gf = (gf.reshape(B, C, K, K, h, w_)
          .transpose(0, 1, 4, 2, 5, 3).reshape(B, C, h * K, w_ * K))
    unfold = gf * ca
    maxf = gf.max(axis=1, keepdims=True)
    meanf = gf.mean(axis=1, keepdims=True)
    rfa = jax.nn.sigmoid(
        _conv2d(jnp.concatenate([maxf, meanf], axis=1), params["w_sa"], 1, 1))
    conv_data = unfold * rfa
    out = _conv2d(conv_data, params["w_conv"], K, 0) + params["b_conv"][None, :, None, None]
    s2 = params["bn2_gamma"] / jnp.sqrt(params["bn2_var"] + eps)
    t2 = params["bn2_beta"] - params["bn2_mean"] * s2
    return jax.nn.relu(out * s2[None, :, None, None] + t2[None, :, None, None])


if __name__ == "__main__":
    B, C, OUT, H, W, K, ratio = 2, 4, 8, 16, 16, 3, 16
    f32 = jnp.float32
    ks = jax.random.split(jax.random.PRNGKey(0), 14)
    params = {
        "w_gen": 0.2 * jax.random.normal(ks[0], (C * K * K, 1, K, K), f32),
        "bn1_gamma": 1.0 + 0.1 * jax.random.normal(ks[1], (C * K * K,), f32),
        "bn1_beta": 0.1 * jax.random.normal(ks[2], (C * K * K,), f32),
        "bn1_mean": 0.1 * jax.random.normal(ks[3], (C * K * K,), f32),
        "bn1_var": 1.0 + 0.5 * jax.random.uniform(ks[4], (C * K * K,), f32),
        "w_fc1": 0.3 * jax.random.normal(ks[5], (ratio, C), f32),
        "w_fc2": 0.3 * jax.random.normal(ks[6], (C, ratio), f32),
        "w_sa": 0.3 * jax.random.normal(ks[7], (1, 2, 3, 3), f32),
        "w_conv": 0.2 * jax.random.normal(ks[8], (OUT, C, K, K), f32),
        "b_conv": 0.1 * jax.random.normal(ks[9], (OUT,), f32),
        "bn2_gamma": 1.0 + 0.1 * jax.random.normal(ks[10], (OUT,), f32),
        "bn2_beta": 0.1 * jax.random.normal(ks[11], (OUT,), f32),
        "bn2_mean": 0.1 * jax.random.normal(ks[12], (OUT,), f32),
        "bn2_var": jnp.ones((OUT,), f32) * 1.2,
    }
    x = jax.random.normal(ks[13], (B, C, H, W), f32)

    out = jax.block_until_ready(rfcbam_conv_forward(x, params, kernel_size=K))
    ref = jax.block_until_ready(reference_forward(x, params, kernel_size=K))
    assert out.shape == (B, OUT, H, W), out.shape
    err = float(jnp.max(jnp.abs(out - ref)))
    assert err < 1e-3, f"max abs err {err}"
    print("KERNEL_OK")
</pallas_src>

<mosaic_0001>
module attributes {stable_mosaic.version = 11 : i64} {
  func.func @rfcbam_fused_kernel(%arg0: i32, %arg1: memref<1x4x256xf32, #tpu.memory_space<vmem>>, %arg2: memref<4x16xf32, #tpu.memory_space<vmem>>, %arg3: memref<4x16xf32, #tpu.memory_space<vmem>>, %arg4: memref<36x10xf32, #tpu.memory_space<vmem>>, %arg5: memref<2x9xf32, #tpu.memory_space<vmem>>, %arg6: memref<8x37xf32, #tpu.memory_space<vmem>>, %arg7: memref<1x8x256xf32, #tpu.memory_space<vmem>>, %arg8: memref<37x256xf32, #tpu.memory_space<vmem>>) attributes {dimension_semantics = [#tpu.dimension_semantics<parallel>], iteration_bounds = array<i64: 2>, scalar_prefetch = 0 : i64, scratch_operands = 1 : i64, tpu.core_type = #tpu.core_type<tc>, window_params = [{transform_indices = @transform_0, window_bounds = array<i64: 1, 4, 256>}, {pipeline_mode = #tpu.pipeline_mode<synchronous>, transform_indices = @transform_1, window_bounds = array<i64: 4, 16>}, {pipeline_mode = #tpu.pipeline_mode<synchronous>, transform_indices = @transform_2, window_bounds = array<i64: 4, 16>}, {pipeline_mode = #tpu.pipeline_mode<synchronous>, transform_indices = @transform_3, window_bounds = array<i64: 36, 10>}, {pipeline_mode = #tpu.pipeline_mode<synchronous>, transform_indices = @transform_4, window_bounds = array<i64: 2, 9>}, {pipeline_mode = #tpu.pipeline_mode<synchronous>, transform_indices = @transform_5, window_bounds = array<i64: 8, 37>}, {transform_indices = @transform_6, window_bounds = array<i64: 1, 8, 256>}]} {
    %c0 = arith.constant 0 : index
    %c0_0 = arith.constant 0 : index
    %c0_1 = arith.constant 0 : index
    %0 = vector.load %arg1[%c0, %c0_0, %c0_1] : memref<1x4x256xf32, #tpu.memory_space<vmem>>, vector<1x4x256xf32>
    %1 = vector.shape_cast %0 : vector<1x4x256xf32> to vector<4x256xf32>
    %cst = arith.constant dense<0.000000e+00> : vector<4xf32>
    %2 = vector.multi_reduction <add>, %1, %cst [1] : vector<4x256xf32> to vector<4xf32>
    %3 = vector.shape_cast %2 : vector<4xf32> to vector<4x1xf32>
    %cst_2 = arith.constant 2.560000e+02 : f32
    %4 = vector.broadcast %cst_2 : f32 to vector<4x1xf32>
    %5 = arith.divf %3, %4 : vector<4x1xf32>
    %c0_3 = arith.constant 0 : index
    %c0_4 = arith.constant 0 : index
    %6 = vector.load %arg2[%c0_3, %c0_4] : memref<4x16xf32, #tpu.memory_space<vmem>>, vector<4x16xf32>
    %7 = vector.broadcast %5 : vector<4x1xf32> to vector<4x16xf32>
    %8 = arith.mulf %6, %7 : vector<4x16xf32>
    %cst_5 = arith.constant dense<0.000000e+00> : vector<16xf32>
    %9 = vector.multi_reduction <add>, %8, %cst_5 [0] : vector<4x16xf32> to vector<16xf32>
    %10 = vector.shape_cast %9 : vector<16xf32> to vector<1x16xf32>
    %cst_6 = arith.constant 0.000000e+00 : f32
    %11 = vector.broadcast %cst_6 : f32 to vector<1x16xf32>
    %12 = arith.maximumf %10, %11 : vector<1x16xf32>
    %c0_7 = arith.constant 0 : index
    %c0_8 = arith.constant 0 : index
    %13 = vector.load %arg3[%c0_7, %c0_8] : memref<4x16xf32, #tpu.memory_space<vmem>>, vector<4x16xf32>
    %14 = vector.broadcast %12 : vector<1x16xf32> to vector<4x16xf32>
    %15 = arith.mulf %13, %14 : vector<4x16xf32>
    %cst_9 = arith.constant dense<0.000000e+00> : vector<4xf32>
    %16 = vector.multi_reduction <add>, %15, %cst_9 [1] : vector<4x16xf32> to vector<4xf32>
    %17 = vector.shape_cast %16 : vector<4xf32> to vector<4x1xf32>
    %cst_10 = arith.constant 0.000000e+00 : f32
    %18 = vector.broadcast %cst_10 : f32 to vector<4x1xf32>
    %19 = arith.subf %18, %17 : vector<4x1xf32>
    %20 = math.exp %19 : vector<4x1xf32>
    %cst_11 = arith.constant 1.000000e+00 : f32
    %21 = vector.broadcast %cst_11 : f32 to vector<4x1xf32>
    %22 = arith.addf %21, %20 : vector<4x1xf32>
    %cst_12 = arith.constant 1.000000e+00 : f32
    %23 = vector.broadcast %cst_12 : f32 to vector<4x1xf32>
    %24 = arith.divf %23, %22 : vector<4x1xf32>
    %25 = tpu.iota {dimensions = array<i32: 1>} : vector<1x256xi32>
    %c16_i32 = arith.constant 16 : i32
    %c0_i32 = arith.constant 0 : i32
    %26 = arith.cmpi eq, %c16_i32, %c0_i32 : i32
    %c1_i32 = arith.constant 1 : i32
    %27 = arith.select %26, %c1_i32, %c16_i32 : i32
    %28 = vector.broadcast %27 : i32 to vector<1x256xi32>
    %29 = arith.remsi %25, %28 : vector<1x256xi32>
    %c0_i32_13 = arith.constant 0 : i32
    %30 = vector.broadcast %c0_i32_13 : i32 to vector<1x256xi32>
    %31 = arith.cmpi ne, %29, %30 : vector<1x256xi32>
    %c0_i32_14 = arith.constant 0 : i32
    %32 = vector.broadcast %c0_i32_14 : i32 to vector<1x256xi32>
    %33 = arith.cmpi slt, %29, %32 : vector<1x256xi32>
    %c0_i32_15 = arith.constant 0 : i32
    %34 = arith.cmpi slt, %27, %c0_i32_15 : i32
    %35 = vector.broadcast %34 : i1 to vector<1x256xi1>
    %36 = vector.broadcast %35 : vector<1x256xi1> to vector<1x256xi1>
    %37 = arith.xori %33, %36 : vector<1x256xi1>
    %38 = arith.andi %37, %31 : vector<1x256xi1>
    %39 = vector.broadcast %27 : i32 to vector<1x256xi32>
    %40 = arith.addi %29, %39 : vector<1x256xi32>
    %41 = arith.select %38, %40, %29 : vector<1x256xi1>, vector<1x256xi32>
    %c0_i32_16 = arith.constant 0 : i32
    %42 = vector.broadcast %c0_i32_16 : i32 to vector<1x256xi32>
    %43 = arith.cmpi sgt, %41, %42 : vector<1x256xi32>
    %44 = arith.extui %43 : vector<1x256xi1> to vector<1x256xi32>
    %45 = arith.sitofp %44 : vector<1x256xi32> to vector<1x256xf32>
    %c15_i32 = arith.constant 15 : i32
    %46 = vector.broadcast %c15_i32 : i32 to vector<1x256xi32>
    %47 = arith.cmpi slt, %41, %46 : vector<1x256xi32>
    %48 = arith.extui %47 : vector<1x256xi1> to vector<1x256xi32>
    %49 = arith.sitofp %48 : vector<1x256xi32> to vector<1x256xf32>
    %cst_17 = arith.constant 0.000000e+00 : f32
    %50 = vector.broadcast %cst_17 : f32 to vector<4x17xf32>
    %cst_18 = arith.constant 0.000000e+00 : f32
    %51 = vector.broadcast %cst_18 : f32 to vector<4x17xf32>
    %52 = tpu.concatenate %50, %1, %51 in 1 : vector<4x17xf32>, vector<4x256xf32>, vector<4x17xf32> -> vector<4x290xf32>
    %cst_19 = arith.constant 0.000000e+00 : f32
    %53 = vector.broadcast %cst_19 : f32 to vector<36x256xf32>
    %54 = vector.extract_strided_slice %52 {offsets = [0, 0], sizes = [4, 256], strides = [1, 1]} : vector<4x290xf32> to vector<4x256xf32>
    %55 = vector.broadcast %45 : vector<1x256xf32> to vector<4x256xf32>
    %56 = arith.mulf %54, %55 : vector<4x256xf32>
    %c0_20 = arith.constant 0 : index
    %c0_21 = arith.constant 0 : index
    %57 = vector.load %arg4[%c0_20, %c0_21] : memref<36x10xf32, #tpu.memory_space<vmem>>, vector<36x1xf32>
    %58 = tpu.concatenate %56, %56, %56, %56, %56, %56, %56, %56, %56 in 0 : vector<4x256xf32>, vector<4x256xf32>, vector<4x256xf32>, vector<4x256xf32>, vector<4x256xf32>, vector<4x256xf32>, vector<4x256xf32>, vector<4x256xf32>, vector<4x256xf32> -> vector<36x256xf32>
    %59 = vector.broadcast %57 : vector<36x1xf32> to vector<36x256xf32>
    %60 = arith.mulf %59, %58 : vector<36x256xf32>
    %61 = arith.addf %53, %60 : vector<36x256xf32>
    %62 = vector.extract_strided_slice %52 {offsets = [0, 1], sizes = [4, 256], strides = [1, 1]} : vector<4x290xf32> to vector<4x256xf32>
    %c0_22 = arith.constant 0 : index
    %c1 = arith.constant 1 : index
    %63 = vector.load %arg4[%c0_22, %c1] : memref<36x10xf32, #tpu.memory_space<vmem>>, vector<36x1xf32>
    %64 = tpu.concatenate %62, %62, %62, %62, %62, %62, %62, %62, %62 in 0 : vector<4x256xf32>, vector<4x256xf32>, vector<4x256xf32>, vector<4x256xf32>, vector<4x256xf32>, vector<4x256xf32>, vector<4x256xf32>, vector<4x256xf32>, vector<4x256xf32> -> vector<36x256xf32>
    %65 = vector.broadcast %63 : vector<36x1xf32> to vector<36x256xf32>
    %66 = arith.mulf %65, %64 : vector<36x256xf32>
    %67 = arith.addf %61, %66 : vector<36x256xf32>
    %68 = vector.extract_strided_slice %52 {offsets = [0, 2], sizes = [4, 256], strides = [1, 1]} : vector<4x290xf32> to vector<4x256xf32>
    %69 = vector.broadcast %49 : vector<1x256xf32> to vector<4x256xf32>
    %70 = arith.mulf %68, %69 : vector<4x256xf32>
    %c0_23 = arith.constant 0 : index
    %c2 = arith.constant 2 : index
    %71 = vector.load %arg4[%c0_23, %c2] : memref<36x10xf32, #tpu.memory_space<vmem>>, vector<36x1xf32>
    %72 = tpu.concatenate %70, %70, %70, %70, %70, %70, %70, %70, %70 in 0 : vector<4x256xf32>, vector<4x256xf32>, vector<4x256xf32>, vector<4x256xf32>, vector<4x256xf32>, vector<4x256xf32>, vector<4x256xf32>, vector<4x256xf32>, vector<4x256xf32> -> vector<36x256xf32>
    %73 = vector.broadcast %71 : vector<36x1xf32> to vector<36x256xf32>
    %74 = arith.mulf %73, %72 : vector<36x256xf32>
    %75 = arith.addf %67, %74 : vector<36x256xf32>
    %76 = vector.extract_strided_slice %52 {offsets = [0, 16], sizes = [4, 256], strides = [1, 1]} : vector<4x290xf32> to vector<4x256xf32>
    %77 = vector.broadcast %45 : vector<1x256xf32> to vector<4x256xf32>
    %78 = arith.mulf %76, %77 : vector<4x256xf32>
    %c0_24 = arith.constant 0 : index
    %c3 = arith.constant 3 : index
    %79 = vector.load %arg4[%c0_24, %c3] : memref<36x10xf32, #tpu.memory_space<vmem>>, vector<36x1xf32>
    %80 = tpu.concatenate %78, %78, %78, %78, %78, %78, %78, %78, %78 in 0 : vector<4x256xf32>, vector<4x256xf32>, vector<4x256xf32>, vector<4x256xf32>, vector<4x256xf32>, vector<4x256xf32>, vector<4x256xf32>, vector<4x256xf32>, vector<4x256xf32> -> vector<36x256xf32>
    %81 = vector.broadcast %79 : vector<36x1xf32> to vector<36x256xf32>
    %82 = arith.mulf %81, %80 : vector<36x256xf32>
    %83 = arith.addf %75, %82 : vector<36x256xf32>
    %84 = vector.extract_strided_slice %52 {offsets = [0, 17], sizes = [4, 256], strides = [1, 1]} : vector<4x290xf32> to vector<4x256xf32>
    %c0_25 = arith.constant 0 : index
    %c4 = arith.constant 4 : index
    %85 = vector.load %arg4[%c0_25, %c4] : memref<36x10xf32, #tpu.memory_space<vmem>>, vector<36x1xf32>
    %86 = tpu.concatenate %84, %84, %84, %84, %84, %84, %84, %84, %84 in 0 : vector<4x256xf32>, vector<4x256xf32>, vector<4x256xf32>, vector<4x256xf32>, vector<4x256xf32>, vector<4x256xf32>, vector<4x256xf32>, vector<4x256xf32>, vector<4x256xf32> -> vector<36x256xf32>
    %87 = vector.broadcast %85 : vector<36x1xf32> to vector<36x256xf32>
    %88 = arith.mulf %87, %86 : vector<36x256xf32>
    %89 = arith.addf %83, %88 : vector<36x256xf32>
    %90 = vector.extract_strided_slice %52 {offsets = [0, 18], sizes = [4, 256], strides = [1, 1]} : vector<4x290xf32> to vector<4x256xf32>
    %91 = vector.broadcast %49 : vector<1x256xf32> to vector<4x256xf32>
    %92 = arith.mulf %90, %91 : vector<4x256xf32>
    %c0_26 = arith.constant 0 : index
    %c5 = arith.constant 5 : index
    %93 = vector.load %arg4[%c0_26, %c5] : memref<36x10xf32, #tpu.memory_space<vmem>>, vector<36x1xf32>
    %94 = tpu.concatenate %92, %92, %92, %92, %92, %92, %92, %92, %92 in 0 : vector<4x256xf32>, vector<4x256xf32>, vector<4x256xf32>, vector<4x256xf32>, vector<4x256xf32>, vector<4x256xf32>, vector<4x256xf32>, vector<4x256xf32>, vector<4x256xf32> -> vector<36x256xf32>
    %95 = vector.broadcast %93 : vector<36x1xf32> to vector<36x256xf32>
    %96 = arith.mulf %95, %94 : vector<36x256xf32>
    %97 = arith.addf %89, %96 : vector<36x256xf32>
    %98 = vector.extract_strided_slice %52 {offsets = [0, 32], sizes = [4, 256], strides = [1, 1]} : vector<4x290xf32> to vector<4x256xf32>
    %99 = vector.broadcast %45 : vector<1x256xf32> to vector<4x256xf32>
    %100 = arith.mulf %98, %99 : vector<4x256xf32>
    %c0_27 = arith.constant 0 : index
    %c6 = arith.constant 6 : index
    %101 = vector.load %arg4[%c0_27, %c6] : memref<36x10xf32, #tpu.memory_space<vmem>>, vector<36x1xf32>
    %102 = tpu.concatenate %100, %100, %100, %100, %100, %100, %100, %100, %100 in 0 : vector<4x256xf32>, vector<4x256xf32>, vector<4x256xf32>, vector<4x256xf32>, vector<4x256xf32>, vector<4x256xf32>, vector<4x256xf32>, vector<4x256xf32>, vector<4x256xf32> -> vector<36x256xf32>
    %103 = vector.broadcast %101 : vector<36x1xf32> to vector<36x256xf32>
    %104 = arith.mulf %103, %102 : vector<36x256xf32>
    %105 = arith.addf %97, %104 : vector<36x256xf32>
    %106 = vector.extract_strided_slice %52 {offsets = [0, 33], sizes = [4, 256], strides = [1, 1]} : vector<4x290xf32> to vector<4x256xf32>
    %c0_28 = arith.constant 0 : index
    %c7 = arith.constant 7 : index
    %107 = vector.load %arg4[%c0_28, %c7] : memref<36x10xf32, #tpu.memory_space<vmem>>, vector<36x1xf32>
    %108 = tpu.concatenate %106, %106, %106, %106, %106, %106, %106, %106, %106 in 0 : vector<4x256xf32>, vector<4x256xf32>, vector<4x256xf32>, vector<4x256xf32>, vector<4x256xf32>, vector<4x256xf32>, vector<4x256xf32>, vector<4x256xf32>, vector<4x256xf32> -> vector<36x256xf32>
    %109 = vector.broadcast %107 : vector<36x1xf32> to vector<36x256xf32>
    %110 = arith.mulf %109, %108 : vector<36x256xf32>
    %111 = arith.addf %105, %110 : vector<36x256xf32>
    %112 = vector.extract_strided_slice %52 {offsets = [0, 34], sizes = [4, 256], strides = [1, 1]} : vector<4x290xf32> to vector<4x256xf32>
    %113 = vector.broadcast %49 : vector<1x256xf32> to vector<4x256xf32>
    %114 = arith.mulf %112, %113 : vector<4x256xf32>
    %c0_29 = arith.constant 0 : index
    %c8 = arith.constant 8 : index
    %115 = vector.load %arg4[%c0_29, %c8] : memref<36x10xf32, #tpu.memory_space<vmem>>, vector<36x1xf32>
    %116 = tpu.concatenate %114, %114, %114, %114, %114, %114, %114, %114, %114 in 0 : vector<4x256xf32>, vector<4x256xf32>, vector<4x256xf32>, vector<4x256xf32>, vector<4x256xf32>, vector<4x256xf32>, vector<4x256xf32>, vector<4x256xf32>, vector<4x256xf32> -> vector<36x256xf32>
    %117 = vector.broadcast %115 : vector<36x1xf32> to vector<36x256xf32>
    %118 = arith.mulf %117, %116 : vector<36x256xf32>
    %119 = arith.addf %111, %118 : vector<36x256xf32>
    %c0_30 = arith.constant 0 : index
    %c9 = arith.constant 9 : index
    %120 = vector.load %arg4[%c0_30, %c9] : memref<36x10xf32, #tpu.memory_space<vmem>>, vector<36x1xf32>
    %121 = vector.broadcast %120 : vector<36x1xf32> to vector<36x256xf32>
    %122 = arith.addf %119, %121 : vector<36x256xf32>
    %cst_31 = arith.constant 0.000000e+00 : f32
    %123 = vector.broadcast %cst_31 : f32 to vector<36x256xf32>
    %124 = arith.maximumf %122, %123 : vector<36x256xf32>
    %125 = vector.extract_strided_slice %124 {offsets = [0, 0], sizes = [4, 256], strides = [1, 1]} : vector<36x256xf32> to vector<4x256xf32>
    %cst_32 = arith.constant dense<0xFF800000> : vector<256xf32>
    %126 = vector.multi_reduction <maximumf>, %125, %cst_32 [0] : vector<4x256xf32> to vector<256xf32>
    %127 = vector.shape_cast %126 : vector<256xf32> to vector<1x256xf32>
    %cst_33 = arith.constant dense<0.000000e+00> : vector<256xf32>
    %128 = vector.multi_reduction <add>, %125, %cst_33 [0] : vector<4x256xf32> to vector<256xf32>
    %129 = vector.shape_cast %128 : vector<256xf32> to vector<1x256xf32>
    %cst_34 = arith.constant 4.000000e+00 : f32
    %130 = vector.broadcast %cst_34 : f32 to vector<1x256xf32>
    %131 = arith.divf %129, %130 : vector<1x256xf32>
    %132 = vector.extract_strided_slice %124 {offsets = [4, 0], sizes = [4, 256], strides = [1, 1]} : vector<36x256xf32> to vector<4x256xf32>
    %cst_35 = arith.constant dense<0xFF800000> : vector<256xf32>
    %133 = vector.multi_reduction <maximumf>, %132, %cst_35 [0] : vector<4x256xf32> to vector<256xf32>
    %134 = vector.shape_cast %133 : vector<256xf32> to vector<1x256xf32>
    %cst_36 = arith.constant dense<0.000000e+00> : vector<256xf32>
    %135 = vector.multi_reduction <add>, %132, %cst_36 [0] : vector<4x256xf32> to vector<256xf32>
    %136 = vector.shape_cast %135 : vector<256xf32> to vector<1x256xf32>
    %cst_37 = arith.constant 4.000000e+00 : f32
    %137 = vector.broadcast %cst_37 : f32 to vector<1x256xf32>
    %138 = arith.divf %136, %137 : vector<1x256xf32>
    %139 = vector.extract_strided_slice %124 {offsets = [8, 0], sizes = [4, 256], strides = [1, 1]} : vector<36x256xf32> to vector<4x256xf32>
    %cst_38 = arith.constant dense<0xFF800000> : vector<256xf32>
    %140 = vector.multi_reduction <maximumf>, %139, %cst_38 [0] : vector<4x256xf32> to vector<256xf32>
    %141 = vector.shape_cast %140 : vector<256xf32> to vector<1x256xf32>
    %cst_39 = arith.constant dense<0.000000e+00> : vector<256xf32>
    %142 = vector.multi_reduction <add>, %139, %cst_39 [0] : vector<4x256xf32> to vector<256xf32>
    %143 = vector.shape_cast %142 : vector<256xf32> to vector<1x256xf32>
    %cst_40 = arith.constant 4.000000e+00 : f32
    %144 = vector.broadcast %cst_40 : f32 to vector<1x256xf32>
    %145 = arith.divf %143, %144 : vector<1x256xf32>
    %146 = vector.extract_strided_slice %124 {offsets = [12, 0], sizes = [4, 256], strides = [1, 1]} : vector<36x256xf32> to vector<4x256xf32>
    %cst_41 = arith.constant dense<0xFF800000> : vector<256xf32>
    %147 = vector.multi_reduction <maximumf>, %146, %cst_41 [0] : vector<4x256xf32> to vector<256xf32>
    %148 = vector.shape_cast %147 : vector<256xf32> to vector<1x256xf32>
    %cst_42 = arith.constant dense<0.000000e+00> : vector<256xf32>
    %149 = vector.multi_reduction <add>, %146, %cst_42 [0] : vector<4x256xf32> to vector<256xf32>
    %150 = vector.shape_cast %149 : vector<256xf32> to vector<1x256xf32>
    %cst_43 = arith.constant 4.000000e+00 : f32
    %151 = vector.broadcast %cst_43 : f32 to vector<1x256xf32>
    %152 = arith.divf %150, %151 : vector<1x256xf32>
    %153 = vector.extract_strided_slice %124 {offsets = [16, 0], sizes = [4, 256], strides = [1, 1]} : vector<36x256xf32> to vector<4x256xf32>
    %cst_44 = arith.constant dense<0xFF800000> : vector<256xf32>
    %154 = vector.multi_reduction <maximumf>, %153, %cst_44 [0] : vector<4x256xf32> to vector<256xf32>
    %155 = vector.shape_cast %154 : vector<256xf32> to vector<1x256xf32>
    %cst_45 = arith.constant dense<0.000000e+00> : vector<256xf32>
    %156 = vector.multi_reduction <add>, %153, %cst_45 [0] : vector<4x256xf32> to vector<256xf32>
    %157 = vector.shape_cast %156 : vector<256xf32> to vector<1x256xf32>
    %cst_46 = arith.constant 4.000000e+00 : f32
    %158 = vector.broadcast %cst_46 : f32 to vector<1x256xf32>
    %159 = arith.divf %157, %158 : vector<1x256xf32>
    %160 = vector.extract_strided_slice %124 {offsets = [20, 0], sizes = [4, 256], strides = [1, 1]} : vector<36x256xf32> to vector<4x256xf32>
    %cst_47 = arith.constant dense<0xFF800000> : vector<256xf32>
    %161 = vector.multi_reduction <maximumf>, %160, %cst_47 [0] : vector<4x256xf32> to vector<256xf32>
    %162 = vector.shape_cast %161 : vector<256xf32> to vector<1x256xf32>
    %cst_48 = arith.constant dense<0.000000e+00> : vector<256xf32>
    %163 = vector.multi_reduction <add>, %160, %cst_48 [0] : vector<4x256xf32> to vector<256xf32>
    %164 = vector.shape_cast %163 : vector<256xf32> to vector<1x256xf32>
    %cst_49 = arith.constant 4.000000e+00 : f32
    %165 = vector.broadcast %cst_49 : f32 to vector<1x256xf32>
    %166 = arith.divf %164, %165 : vector<1x256xf32>
    %167 = vector.extract_strided_slice %124 {offsets = [24, 0], sizes = [4, 256], strides = [1, 1]} : vector<36x256xf32> to vector<4x256xf32>
    %cst_50 = arith.constant dense<0xFF800000> : vector<256xf32>
    %168 = vector.multi_reduction <maximumf>, %167, %cst_50 [0] : vector<4x256xf32> to vector<256xf32>
    %169 = vector.shape_cast %168 : vector<256xf32> to vector<1x256xf32>
    %cst_51 = arith.constant dense<0.000000e+00> : vector<256xf32>
    %170 = vector.multi_reduction <add>, %167, %cst_51 [0] : vector<4x256xf32> to vector<256xf32>
    %171 = vector.shape_cast %170 : vector<256xf32> to vector<1x256xf32>
    %cst_52 = arith.constant 4.000000e+00 : f32
    %172 = vector.broadcast %cst_52 : f32 to vector<1x256xf32>
    %173 = arith.divf %171, %172 : vector<1x256xf32>
    %174 = vector.extract_strided_slice %124 {offsets = [28, 0], sizes = [4, 256], strides = [1, 1]} : vector<36x256xf32> to vector<4x256xf32>
    %cst_53 = arith.constant dense<0xFF800000> : vector<256xf32>
    %175 = vector.multi_reduction <maximumf>, %174, %cst_53 [0] : vector<4x256xf32> to vector<256xf32>
    %176 = vector.shape_cast %175 : vector<256xf32> to vector<1x256xf32>
    %cst_54 = arith.constant dense<0.000000e+00> : vector<256xf32>
    %177 = vector.multi_reduction <add>, %174, %cst_54 [0] : vector<4x256xf32> to vector<256xf32>
    %178 = vector.shape_cast %177 : vector<256xf32> to vector<1x256xf32>
    %cst_55 = arith.constant 4.000000e+00 : f32
    %179 = vector.broadcast %cst_55 : f32 to vector<1x256xf32>
    %180 = arith.divf %178, %179 : vector<1x256xf32>
    %181 = vector.extract_strided_slice %124 {offsets = [32, 0], sizes = [4, 256], strides = [1, 1]} : vector<36x256xf32> to vector<4x256xf32>
    %cst_56 = arith.constant dense<0xFF800000> : vector<256xf32>
    %182 = vector.multi_reduction <maximumf>, %181, %cst_56 [0] : vector<4x256xf32> to vector<256xf32>
    %183 = vector.shape_cast %182 : vector<256xf32> to vector<1x256xf32>
    %cst_57 = arith.constant dense<0.000000e+00> : vector<256xf32>
    %184 = vector.multi_reduction <add>, %181, %cst_57 [0] : vector<4x256xf32> to vector<256xf32>
    %185 = vector.shape_cast %184 : vector<256xf32> to vector<1x256xf32>
    %cst_58 = arith.constant 4.000000e+00 : f32
    %186 = vector.broadcast %cst_58 : f32 to vector<1x256xf32>
    %187 = arith.divf %185, %186 : vector<1x256xf32>
    %188 = tpu.concatenate %127, %131, %134, %138, %141, %145, %148, %152, %155, %159, %162, %166, %169, %173, %176, %180 in 0 : vector<1x256xf32>, vector<1x256xf32>, vector<1x256xf32>, vector<1x256xf32>, vector<1x256xf32>, vector<1x256xf32>, vector<1x256xf32>, vector<1x256xf32>, vector<1x256xf32>, vector<1x256xf32>, vector<1x256xf32>, vector<1x256xf32>, vector<1x256xf32>, vector<1x256xf32>, vector<1x256xf32>, vector<1x256xf32> -> vector<16x256xf32>
    %189 = tpu.concatenate %183, %187 in 0 : vector<1x256xf32>, vector<1x256xf32> -> vector<2x256xf32>
    %190 = tpu.concatenate %188, %189 in 0 : vector<16x256xf32>, vector<2x256xf32> -> vector<18x256xf32>
    %cst_59 = arith.constant 0.000000e+00 : f32
    %191 = vector.broadcast %cst_59 : f32 to vector<18x17xf32>
    %cst_60 = arith.constant 0.000000e+00 : f32
    %192 = vector.broadcast %cst_60 : f32 to vector<18x17xf32>
    %193 = tpu.concatenate %191, %190, %192 in 1 : vector<18x17xf32>, vector<18x256xf32>, vector<18x17xf32> -> vector<18x290xf32>
    %cst_61 = arith.constant 0.000000e+00 : f32
    %194 = vector.broadcast %cst_61 : f32 to vector<2x256xf32>
    %195 = vector.extract_strided_slice %193 {offsets = [16, 0], sizes = [2, 256], strides = [1, 1]} : vector<18x290xf32> to vector<2x256xf32>
    %196 = vector.broadcast %45 : vector<1x256xf32> to vector<2x256xf32>
    %197 = arith.mulf %195, %196 : vector<2x256xf32>
    %c0_62 = arith.constant 0 : index
    %c0_63 = arith.constant 0 : index
    %198 = vector.load %arg5[%c0_62, %c0_63] : memref<2x9xf32, #tpu.memory_space<vmem>>, vector<2x1xf32>
    %199 = vector.broadcast %198 : vector<2x1xf32> to vector<2x256xf32>
    %200 = arith.mulf %199, %197 : vector<2x256xf32>
    %201 = arith.addf %194, %200 : vector<2x256xf32>
    %202 = vector.extract_strided_slice %193 {offsets = [12, 1], sizes = [2, 256], strides = [1, 1]} : vector<18x290xf32> to vector<2x256xf32>
    %c0_64 = arith.constant 0 : index
    %c1_65 = arith.constant 1 : index
    %203 = vector.load %arg5[%c0_64, %c1_65] : memref<2x9xf32, #tpu.memory_space<vmem>>, vector<2x1xf32>
    %204 = vector.broadcast %203 : vector<2x1xf32> to vector<2x256xf32>
    %205 = arith.mulf %204, %202 : vector<2x256xf32>
    %206 = arith.addf %201, %205 : vector<2x256xf32>
    %207 = vector.extract_strided_slice %193 {offsets = [14, 1], sizes = [2, 256], strides = [1, 1]} : vector<18x290xf32> to vector<2x256xf32>
    %c0_66 = arith.constant 0 : index
    %c2_67 = arith.constant 2 : index
    %208 = vector.load %arg5[%c0_66, %c2_67] : memref<2x9xf32, #tpu.memory_space<vmem>>, vector<2x1xf32>
    %209 = vector.broadcast %208 : vector<2x1xf32> to vector<2x256xf32>
    %210 = arith.mulf %209, %207 : vector<2x256xf32>
    %211 = arith.addf %206, %210 : vector<2x256xf32>
    %212 = vector.extract_strided_slice %193 {offsets = [4, 16], sizes = [2, 256], strides = [1, 1]} : vector<18x290xf32> to vector<2x256xf32>
    %213 = vector.broadcast %45 : vector<1x256xf32> to vector<2x256xf32>
    %214 = arith.mulf %212, %213 : vector<2x256xf32>
    %c0_68 = arith.constant 0 : index
    %c3_69 = arith.constant 3 : index
    %215 = vector.load %arg5[%c0_68, %c3_69] : memref<2x9xf32, #tpu.memory_space<vmem>>, vector<2x1xf32>
    %216 = vector.broadcast %215 : vector<2x1xf32> to vector<2x256xf32>
    %217 = arith.mulf %216, %214 : vector<2x256xf32>
    %218 = arith.addf %211, %217 : vector<2x256xf32>
    %219 = vector.extract_strided_slice %193 {offsets = [0, 17], sizes = [2, 256], strides = [1, 1]} : vector<18x290xf32> to vector<2x256xf32>
    %c0_70 = arith.constant 0 : index
    %c4_71 = arith.constant 4 : index
    %220 = vector.load %arg5[%c0_70, %c4_71] : memref<2x9xf32, #tpu.memory_space<vmem>>, vector<2x1xf32>
    %221 = vector.broadcast %220 : vector<2x1xf32> to vector<2x256xf32>
    %222 = arith.mulf %221, %219 : vector<2x256xf32>
    %223 = arith.addf %218, %222 : vector<2x256xf32>
    %224 = vector.extract_strided_slice %193 {offsets = [2, 17], sizes = [2, 256], strides = [1, 1]} : vector<18x290xf32> to vector<2x256xf32>
    %c0_72 = arith.constant 0 : index
    %c5_73 = arith.constant 5 : index
    %225 = vector.load %arg5[%c0_72, %c5_73] : memref<2x9xf32, #tpu.memory_space<vmem>>, vector<2x1xf32>
    %226 = vector.broadcast %225 : vector<2x1xf32> to vector<2x256xf32>
    %227 = arith.mulf %226, %224 : vector<2x256xf32>
    %228 = arith.addf %223, %227 : vector<2x256xf32>
    %229 = vector.extract_strided_slice %193 {offsets = [10, 16], sizes = [2, 256], strides = [1, 1]} : vector<18x290xf32> to vector<2x256xf32>
    %230 = vector.broadcast %45 : vector<1x256xf32> to vector<2x256xf32>
    %231 = arith.mulf %229, %230 : vector<2x256xf32>
    %c0_74 = arith.constant 0 : index
    %c6_75 = arith.constant 6 : index
    %232 = vector.load %arg5[%c0_74, %c6_75] : memref<2x9xf32, #tpu.memory_space<vmem>>, vector<2x1xf32>
    %233 = vector.broadcast %232 : vector<2x1xf32> to vector<2x256xf32>
    %234 = arith.mulf %233, %231 : vector<2x256xf32>
    %235 = arith.addf %228, %234 : vector<2x256xf32>
    %236 = vector.extract_strided_slice %193 {offsets = [6, 17], sizes = [2, 256], strides = [1, 1]} : vector<18x290xf32> to vector<2x256xf32>
    %c0_76 = arith.constant 0 : index
    %c7_77 = arith.constant 7 : index
    %237 = vector.load %arg5[%c0_76, %c7_77] : memref<2x9xf32, #tpu.memory_space<vmem>>, vector<2x1xf32>
    %238 = vector.broadcast %237 : vector<2x1xf32> to vector<2x256xf32>
    %239 = arith.mulf %238, %236 : vector<2x256xf32>
    %240 = arith.addf %235, %239 : vector<2x256xf32>
    %241 = vector.extract_strided_slice %193 {offsets = [8, 17], sizes = [2, 256], strides = [1, 1]} : vector<18x290xf32> to vector<2x256xf32>
    %c0_78 = arith.constant 0 : index
    %c8_79 = arith.constant 8 : index
    %242 = vector.load %arg5[%c0_78, %c8_79] : memref<2x9xf32, #tpu.memory_space<vmem>>, vector<2x1xf32>
    %243 = vector.broadcast %242 : vector<2x1xf32> to vector<2x256xf32>
    %244 = arith.mulf %243, %241 : vector<2x256xf32>
    %245 = arith.addf %240, %244 : vector<2x256xf32>
    %246 = vector.extract_strided_slice %245 {offsets = [0, 0], sizes = [1, 256], strides = [1, 1]} : vector<2x256xf32> to vector<1x256xf32>
    %247 = vector.extract_strided_slice %245 {offsets = [1, 0], sizes = [1, 256], strides = [1, 1]} : vector<2x256xf32> to vector<1x256xf32>
    %248 = arith.addf %246, %247 : vector<1x256xf32>
    %cst_80 = arith.constant 0.000000e+00 : f32
    %249 = vector.broadcast %cst_80 : f32 to vector<1x256xf32>
    %250 = arith.subf %249, %248 : vector<1x256xf32>
    %251 = math.exp %250 : vector<1x256xf32>
    %cst_81 = arith.constant 1.000000e+00 : f32
    %252 = vector.broadcast %cst_81 : f32 to vector<1x256xf32>
    %253 = arith.addf %252, %251 : vector<1x256xf32>
    %cst_82 = arith.constant 1.000000e+00 : f32
    %254 = vector.broadcast %cst_82 : f32 to vector<1x256xf32>
    %255 = arith.divf %254, %253 : vector<1x256xf32>
    %cst_83 = arith.constant 0.000000e+00 : f32
    %256 = vector.broadcast %cst_83 : f32 to vector<2x256xf32>
    %257 = vector.extract_strided_slice %193 {offsets = [12, 1], sizes = [2, 256], strides = [1, 1]} : vector<18x290xf32> to vector<2x256xf32>
    %c0_84 = arith.constant 0 : index
    %c0_85 = arith.constant 0 : index
    %258 = vector.load %arg5[%c0_84, %c0_85] : memref<2x9xf32, #tpu.memory_space<vmem>>, vector<2x1xf32>
    %259 = vector.broadcast %258 : vector<2x1xf32> to vector<2x256xf32>
    %260 = arith.mulf %259, %257 : vector<2x256xf32>
    %261 = arith.addf %256, %260 : vector<2x256xf32>
    %262 = vector.extract_strided_slice %193 {offsets = [14, 1], sizes = [2, 256], strides = [1, 1]} : vector<18x290xf32> to vector<2x256xf32>
    %c0_86 = arith.constant 0 : index
    %c1_87 = arith.constant 1 : index
    %263 = vector.load %arg5[%c0_86, %c1_87] : memref<2x9xf32, #tpu.memory_space<vmem>>, vector<2x1xf32>
    %264 = vector.broadcast %263 : vector<2x1xf32> to vector<2x256xf32>
    %265 = arith.mulf %264, %262 : vector<2x256xf32>
    %266 = arith.addf %261, %265 : vector<2x256xf32>
    %267 = vector.extract_strided_slice %193 {offsets = [16, 1], sizes = [2, 256], strides = [1, 1]} : vector<18x290xf32> to vector<2x256xf32>
    %c0_88 = arith.constant 0 : index
    %c2_89 = arith.constant 2 : index
    %268 = vector.load %arg5[%c0_88, %c2_89] : memref<2x9xf32, #tpu.memory_space<vmem>>, vector<2x1xf32>
    %269 = vector.broadcast %268 : vector<2x1xf32> to vector<2x256xf32>
    %270 = arith.mulf %269, %267 : vector<2x256xf32>
    %271 = arith.addf %266, %270 : vector<2x256xf32>
    %272 = vector.extract_strided_slice %193 {offsets = [0, 17], sizes = [2, 256], strides = [1, 1]} : vector<18x290xf32> to vector<2x256xf32>
    %c0_90 = arith.constant 0 : index
    %c3_91 = arith.constant 3 : index
    %273 = vector.load %arg5[%c0_90, %c3_91] : memref<2x9xf32, #tpu.memory_space<vmem>>, vector<2x1xf32>
    %274 = vector.broadcast %273 : vector<2x1xf32> to vector<2x256xf32>
    %275 = arith.mulf %274, %272 : vector<2x256xf32>
    %276 = arith.addf %271, %275 : vector<2x256xf32>
    %277 = vector.extract_strided_slice %193 {offsets = [2, 17], sizes = [2, 256], strides = [1, 1]} : vector<18x290xf32> to vector<2x256xf32>
    %c0_92 = arith.constant 0 : index
    %c4_93 = arith.constant 4 : index
    %278 = vector.load %arg5[%c0_92, %c4_93] : memref<2x9xf32, #tpu.memory_space<vmem>>, vector<2x1xf32>
    %279 = vector.broadcast %278 : vector<2x1xf32> to vector<2x256xf32>
    %280 = arith.mulf %279, %277 : vector<2x256xf32>
    %281 = arith.addf %276, %280 : vector<2x256xf32>
    %282 = vector.extract_strided_slice %193 {offsets = [4, 17], sizes = [2, 256], strides = [1, 1]} : vector<18x290xf32> to vector<2x256xf32>
    %c0_94 = arith.constant 0 : index
    %c5_95 = arith.constant 5 : index
    %283 = vector.load %arg5[%c0_94, %c5_95] : memref<2x9xf32, #tpu.memory_space<vmem>>, vector<2x1xf32>
    %284 = vector.broadcast %283 : vector<2x1xf32> to vector<2x256xf32>
    %285 = arith.mulf %284, %282 : vector<2x256xf32>
    %286 = arith.addf %281, %285 : vector<2x256xf32>
    %287 = vector.extract_strided_slice %193 {offsets = [6, 17], sizes = [2, 256], strides = [1, 1]} : vector<18x290xf32> to vector<2x256xf32>
    %c0_96 = arith.constant 0 : index
    %c6_97 = arith.constant 6 : index
    %288 = vector.load %arg5[%c0_96, %c6_97] : memref<2x9xf32, #tpu.memory_space<vmem>>, vector<2x1xf32>
    %289 = vector.broadcast %288 : vector<2x1xf32> to vector<2x256xf32>
    %290 = arith.mulf %289, %287 : vector<2x256xf32>
    %291 = arith.addf %286, %290 : vector<2x256xf32>
    %292 = vector.extract_strided_slice %193 {offsets = [8, 17], sizes = [2, 256], strides = [1, 1]} : vector<18x290xf32> to vector<2x256xf32>
    %c0_98 = arith.constant 0 : index
    %c7_99 = arith.constant 7 : index
    %293 = vector.load %arg5[%c0_98, %c7_99] : memref<2x9xf32, #tpu.memory_space<vmem>>, vector<2x1xf32>
    %294 = vector.broadcast %293 : vector<2x1xf32> to vector<2x256xf32>
    %295 = arith.mulf %294, %292 : vector<2x256xf32>
    %296 = arith.addf %291, %295 : vector<2x256xf32>
    %297 = vector.extract_strided_slice %193 {offsets = [10, 17], sizes = [2, 256], strides = [1, 1]} : vector<18x290xf32> to vector<2x256xf32>
    %c0_100 = arith.constant 0 : index
    %c8_101 = arith.constant 8 : index
    %298 = vector.load %arg5[%c0_100, %c8_101] : memref<2x9xf32, #tpu.memory_space<vmem>>, vector<2x1xf32>
    %299 = vector.broadcast %298 : vector<2x1xf32> to vector<2x256xf32>
    %300 = arith.mulf %299, %297 : vector<2x256xf32>
    %301 = arith.addf %296, %300 : vector<2x256xf32>
    %302 = vector.extract_strided_slice %301 {offsets = [0, 0], sizes = [1, 256], strides = [1, 1]} : vector<2x256xf32> to vector<1x256xf32>
    %303 = vector.extract_strided_slice %301 {offsets = [1, 0], sizes = [1, 256], strides = [1, 1]} : vector<2x256xf32> to vector<1x256xf32>
    %304 = arith.addf %302, %303 : vector<1x256xf32>
    %cst_102 = arith.constant 0.000000e+00 : f32
    %305 = vector.broadcast %cst_102 : f32 to vector<1x256xf32>
    %306 = arith.subf %305, %304 : vector<1x256xf32>
    %307 = math.exp %306 : vector<1x256xf32>
    %cst_103 = arith.constant 1.000000e+00 : f32
    %308 = vector.broadcast %cst_103 : f32 to vector<1x256xf32>
    %309 = arith.addf %308, %307 : vector<1x256xf32>
    %cst_104 = arith.constant 1.000000e+00 : f32
    %310 = vector.broadcast %cst_104 : f32 to vector<1x256xf32>
    %311 = arith.divf %310, %309 : vector<1x256xf32>
    %cst_105 = arith.constant 0.000000e+00 : f32
    %312 = vector.broadcast %cst_105 : f32 to vector<2x256xf32>
    %313 = vector.extract_strided_slice %193 {offsets = [14, 1], sizes = [2, 256], strides = [1, 1]} : vector<18x290xf32> to vector<2x256xf32>
    %c0_106 = arith.constant 0 : index
    %c0_107 = arith.constant 0 : index
    %314 = vector.load %arg5[%c0_106, %c0_107] : memref<2x9xf32, #tpu.memory_space<vmem>>, vector<2x1xf32>
    %315 = vector.broadcast %314 : vector<2x1xf32> to vector<2x256xf32>
    %316 = arith.mulf %315, %313 : vector<2x256xf32>
    %317 = arith.addf %312, %316 : vector<2x256xf32>
    %318 = vector.extract_strided_slice %193 {offsets = [16, 1], sizes = [2, 256], strides = [1, 1]} : vector<18x290xf32> to vector<2x256xf32>
    %c0_108 = arith.constant 0 : index
    %c1_109 = arith.constant 1 : index
    %319 = vector.load %arg5[%c0_108, %c1_109] : memref<2x9xf32, #tpu.memory_space<vmem>>, vector<2x1xf32>
    %320 = vector.broadcast %319 : vector<2x1xf32> to vector<2x256xf32>
    %321 = arith.mulf %320, %318 : vector<2x256xf32>
    %322 = arith.addf %317, %321 : vector<2x256xf32>
    %323 = vector.extract_strided_slice %193 {offsets = [12, 2], sizes = [2, 256], strides = [1, 1]} : vector<18x290xf32> to vector<2x256xf32>
    %324 = vector.broadcast %49 : vector<1x256xf32> to vector<2x256xf32>
    %325 = arith.mulf %323, %324 : vector<2x256xf32>
    %c0_110 = arith.constant 0 : index
    %c2_111 = arith.constant 2 : index
    %326 = vector.load %arg5[%c0_110, %c2_111] : memref<2x9xf32, #tpu.memory_space<vmem>>, vector<2x1xf32>
    %327 = vector.broadcast %326 : vector<2x1xf32> to vector<2x256xf32>
    %328 = arith.mulf %327, %325 : vector<2x256xf32>
    %329 = arith.addf %322, %328 : vector<2x256xf32>
    %330 = vector.extract_strided_slice %193 {offsets = [2, 17], sizes = [2, 256], strides = [1, 1]} : vector<18x290xf32> to vector<2x256xf32>
    %c0_112 = arith.constant 0 : index
    %c3_113 = arith.constant 3 : index
    %331 = vector.load %arg5[%c0_112, %c3_113] : memref<2x9xf32, #tpu.memory_space<vmem>>, vector<2x1xf32>
    %332 = vector.broadcast %331 : vector<2x1xf32> to vector<2x256xf32>
    %333 = arith.mulf %332, %330 : vector<2x256xf32>
    %334 = arith.addf %329, %333 : vector<2x256xf32>
    %335 = vector.extract_strided_slice %193 {offsets = [4, 17], sizes = [2, 256], strides = [1, 1]} : vector<18x290xf32> to vector<2x256xf32>
    %c0_114 = arith.constant 0 : index
    %c4_115 = arith.constant 4 : index
    %336 = vector.load %arg5[%c0_114, %c4_115] : memref<2x9xf32, #tpu.memory_space<vmem>>, vector<2x1xf32>
    %337 = vector.broadcast %336 : vector<2x1xf32> to vector<2x256xf32>
    %338 = arith.mulf %337, %335 : vector<2x256xf32>
    %339 = arith.addf %334, %338 : vector<2x256xf32>
    %340 = vector.extract_strided_slice %193 {offsets = [0, 18], sizes = [2, 256], strides = [1, 1]} : vector<18x290xf32> to vector<2x256xf32>
    %341 = vector.broadcast %49 : vector<1x256xf32> to vector<2x256xf32>
    %342 = arith.mulf %340, %341 : vector<2x256xf32>
    %c0_116 = arith.constant 0 : index
    %c5_117 = arith.constant 5 : index
    %343 = vector.load %arg5[%c0_116, %c5_117] : memref<2x9xf32, #tpu.memory_space<vmem>>, vector<2x1xf32>
    %344 = vector.broadcast %343 : vector<2x1xf32> to vector<2x256xf32>
    %345 = arith.mulf %344, %342 : vector<2x256xf32>
    %346 = arith.addf %339, %345 : vector<2x256xf32>
    %347 = vector.extract_strided_slice %193 {offsets = [8, 17], sizes = [2, 256], strides = [1, 1]} : vector<18x290xf32> to vector<2x256xf32>
    %c0_118 = arith.constant 0 : index
    %c6_119 = arith.constant 6 : index
    %348 = vector.load %arg5[%c0_118, %c6_119] : memref<2x9xf32, #tpu.memory_space<vmem>>, vector<2x1xf32>
    %349 = vector.broadcast %348 : vector<2x1xf32> to vector<2x256xf32>
    %350 = arith.mulf %349, %347 : vector<2x256xf32>
    %351 = arith.addf %346, %350 : vector<2x256xf32>
    %352 = vector.extract_strided_slice %193 {offsets = [10, 17], sizes = [2, 256], strides = [1, 1]} : vector<18x290xf32> to vector<2x256xf32>
    %c0_120 = arith.constant 0 : index
    %c7_121 = arith.constant 7 : index
    %353 = vector.load %arg5[%c0_120, %c7_121] : memref<2x9xf32, #tpu.memory_space<vmem>>, vector<2x1xf32>
    %354 = vector.broadcast %353 : vector<2x1xf32> to vector<2x256xf32>
    %355 = arith.mulf %354, %352 : vector<2x256xf32>
    %356 = arith.addf %351, %355 : vector<2x256xf32>
    %357 = vector.extract_strided_slice %193 {offsets = [6, 18], sizes = [2, 256], strides = [1, 1]} : vector<18x290xf32> to vector<2x256xf32>
    %358 = vector.broadcast %49 : vector<1x256xf32> to vector<2x256xf32>
    %359 = arith.mulf %357, %358 : vector<2x256xf32>
    %c0_122 = arith.constant 0 : index
    %c8_123 = arith.constant 8 : index
    %360 = vector.load %arg5[%c0_122, %c8_123] : memref<2x9xf32, #tpu.memory_space<vmem>>, vector<2x1xf32>
    %361 = vector.broadcast %360 : vector<2x1xf32> to vector<2x256xf32>
    %362 = arith.mulf %361, %359 : vector<2x256xf32>
    %363 = arith.addf %356, %362 : vector<2x256xf32>
    %364 = vector.extract_strided_slice %363 {offsets = [0, 0], sizes = [1, 256], strides = [1, 1]} : vector<2x256xf32> to vector<1x256xf32>
    %365 = vector.extract_strided_slice %363 {offsets = [1, 0], sizes = [1, 256], strides = [1, 1]} : vector<2x256xf32> to vector<1x256xf32>
    %366 = arith.addf %364, %365 : vector<1x256xf32>
    %cst_124 = arith.constant 0.000000e+00 : f32
    %367 = vector.broadcast %cst_124 : f32 to vector<1x256xf32>
    %368 = arith.subf %367, %366 : vector<1x256xf32>
    %369 = math.exp %368 : vector<1x256xf32>
    %cst_125 = arith.constant 1.000000e+00 : f32
    %370 = vector.broadcast %cst_125 : f32 to vector<1x256xf32>
    %371 = arith.addf %370, %369 : vector<1x256xf32>
    %cst_126 = arith.constant 1.000000e+00 : f32
    %372 = vector.broadcast %cst_126 : f32 to vector<1x256xf32>
    %373 = arith.divf %372, %371 : vector<1x256xf32>
    %cst_127 = arith.constant 0.000000e+00 : f32
    %374 = vector.broadcast %cst_127 : f32 to vector<2x256xf32>
    %375 = vector.extract_strided_slice %193 {offsets = [4, 16], sizes = [2, 256], strides = [1, 1]} : vector<18x290xf32> to vector<2x256xf32>
    %376 = vector.broadcast %45 : vector<1x256xf32> to vector<2x256xf32>
    %377 = arith.mulf %375, %376 : vector<2x256xf32>
    %c0_128 = arith.constant 0 : index
    %c0_129 = arith.constant 0 : index
    %378 = vector.load %arg5[%c0_128, %c0_129] : memref<2x9xf32, #tpu.memory_space<vmem>>, vector<2x1xf32>
    %379 = vector.broadcast %378 : vector<2x1xf32> to vector<2x256xf32>
    %380 = arith.mulf %379, %377 : vector<2x256xf32>
    %381 = arith.addf %374, %380 : vector<2x256xf32>
    %382 = vector.extract_strided_slice %193 {offsets = [0, 17], sizes = [2, 256], strides = [1, 1]} : vector<18x290xf32> to vector<2x256xf32>
    %c0_130 = arith.constant 0 : index
    %c1_131 = arith.constant 1 : index
    %383 = vector.load %arg5[%c0_130, %c1_131] : memref<2x9xf32, #tpu.memory_space<vmem>>, vector<2x1xf32>
    %384 = vector.broadcast %383 : vector<2x1xf32> to vector<2x256xf32>
    %385 = arith.mulf %384, %382 : vector<2x256xf32>
    %386 = arith.addf %381, %385 : vector<2x256xf32>
    %387 = vector.extract_strided_slice %193 {offsets = [2, 17], sizes = [2, 256], strides = [1, 1]} : vector<18x290xf32> to vector<2x256xf32>
    %c0_132 = arith.constant 0 : index
    %c2_133 = arith.constant 2 : index
    %388 = vector.load %arg5[%c0_132, %c2_133] : memref<2x9xf32, #tpu.memory_space<vmem>>, vector<2x1xf32>
    %389 = vector.broadcast %388 : vector<2x1xf32> to vector<2x256xf32>
    %390 = arith.mulf %389, %387 : vector<2x256xf32>
    %391 = arith.addf %386, %390 : vector<2x256xf32>
    %392 = vector.extract_strided_slice %193 {offsets = [10, 16], sizes = [2, 256], strides = [1, 1]} : vector<18x290xf32> to vector<2x256xf32>
    %393 = vector.broadcast %45 : vector<1x256xf32> to vector<2x256xf32>
    %394 = arith.mulf %392, %393 : vector<2x256xf32>
    %c0_134 = arith.constant 0 : index
    %c3_135 = arith.constant 3 : index
    %395 = vector.load %arg5[%c0_134, %c3_135] : memref<2x9xf32, #tpu.memory_space<vmem>>, vector<2x1xf32>
    %396 = vector.broadcast %395 : vector<2x1xf32> to vector<2x256xf32>
    %397 = arith.mulf %396, %394 : vector<2x256xf32>
    %398 = arith.addf %391, %397 : vector<2x256xf32>
    %399 = vector.extract_strided_slice %193 {offsets = [6, 17], sizes = [2, 256], strides = [1, 1]} : vector<18x290xf32> to vector<2x256xf32>
    %c0_136 = arith.constant 0 : index
    %c4_137 = arith.constant 4 : index
    %400 = vector.load %arg5[%c0_136, %c4_137] : memref<2x9xf32, #tpu.memory_space<vmem>>, vector<2x1xf32>
    %401 = vector.broadcast %400 : vector<2x1xf32> to vector<2x256xf32>
    %402 = arith.mulf %401, %399 : vector<2x256xf32>
    %403 = arith.addf %398, %402 : vector<2x256xf32>
    %404 = vector.extract_strided_slice %193 {offsets = [8, 17], sizes = [2, 256], strides = [1, 1]} : vector<18x290xf32> to vector<2x256xf32>
    %c0_138 = arith.constant 0 : index
    %c5_139 = arith.constant 5 : index
    %405 = vector.load %arg5[%c0_138, %c5_139] : memref<2x9xf32, #tpu.memory_space<vmem>>, vector<2x1xf32>
    %406 = vector.broadcast %405 : vector<2x1xf32> to vector<2x256xf32>
    %407 = arith.mulf %406, %404 : vector<2x256xf32>
    %408 = arith.addf %403, %407 : vector<2x256xf32>
    %409 = vector.extract_strided_slice %193 {offsets = [16, 16], sizes = [2, 256], strides = [1, 1]} : vector<18x290xf32> to vector<2x256xf32>
    %410 = vector.broadcast %45 : vector<1x256xf32> to vector<2x256xf32>
    %411 = arith.mulf %409, %410 : vector<2x256xf32>
    %c0_140 = arith.constant 0 : index
    %c6_141 = arith.constant 6 : index
    %412 = vector.load %arg5[%c0_140, %c6_141] : memref<2x9xf32, #tpu.memory_space<vmem>>, vector<2x1xf32>
    %413 = vector.broadcast %412 : vector<2x1xf32> to vector<2x256xf32>
    %414 = arith.mulf %413, %411 : vector<2x256xf32>
    %415 = arith.addf %408, %414 : vector<2x256xf32>
    %416 = vector.extract_strided_slice %193 {offsets = [12, 17], sizes = [2, 256], strides = [1, 1]} : vector<18x290xf32> to vector<2x256xf32>
    %c0_142 = arith.constant 0 : index
    %c7_143 = arith.constant 7 : index
    %417 = vector.load %arg5[%c0_142, %c7_143] : memref<2x9xf32, #tpu.memory_space<vmem>>, vector<2x1xf32>
    %418 = vector.broadcast %417 : vector<2x1xf32> to vector<2x256xf32>
    %419 = arith.mulf %418, %416 : vector<2x256xf32>
    %420 = arith.addf %415, %419 : vector<2x256xf32>
    %421 = vector.extract_strided_slice %193 {offsets = [14, 17], sizes = [2, 256], strides = [1, 1]} : vector<18x290xf32> to vector<2x256xf32>
    %c0_144 = arith.constant 0 : index
    %c8_145 = arith.constant 8 : index
    %422 = vector.load %arg5[%c0_144, %c8_145] : memref<2x9xf32, #tpu.memory_space<vmem>>, vector<2x1xf32>
    %423 = vector.broadcast %422 : vector<2x1xf32> to vector<2x256xf32>
    %424 = arith.mulf %423, %421 : vector<2x256xf32>
    %425 = arith.addf %420, %424 : vector<2x256xf32>
    %426 = vector.extract_strided_slice %425 {offsets = [0, 0], sizes = [1, 256], strides = [1, 1]} : vector<2x256xf32> to vector<1x256xf32>
    %427 = vector.extract_strided_slice %425 {offsets = [1, 0], sizes = [1, 256], strides = [1, 1]} : vector<2x256xf32> to vector<1x256xf32>
    %428 = arith.addf %426, %427 : vector<1x256xf32>
    %cst_146 = arith.constant 0.000000e+00 : f32
    %429 = vector.broadcast %cst_146 : f32 to vector<1x256xf32>
    %430 = arith.subf %429, %428 : vector<1x256xf32>
    %431 = math.exp %430 : vector<1x256xf32>
    %cst_147 = arith.constant 1.000000e+00 : f32
    %432 = vector.broadcast %cst_147 : f32 to vector<1x256xf32>
    %433 = arith.addf %432, %431 : vector<1x256xf32>
    %cst_148 = arith.constant 1.000000e+00 : f32
    %434 = vector.broadcast %cst_148 : f32 to vector<1x256xf32>
    %435 = arith.divf %434, %433 : vector<1x256xf32>
    %cst_149 = arith.constant 0.000000e+00 : f32
    %436 = vector.broadcast %cst_149 : f32 to vector<2x256xf32>
    %437 = vector.extract_strided_slice %193 {offsets = [0, 17], sizes = [2, 256], strides = [1, 1]} : vector<18x290xf32> to vector<2x256xf32>
    %c0_150 = arith.constant 0 : index
    %c0_151 = arith.constant 0 : index
    %438 = vector.load %arg5[%c0_150, %c0_151] : memref<2x9xf32, #tpu.memory_space<vmem>>, vector<2x1xf32>
    %439 = vector.broadcast %438 : vector<2x1xf32> to vector<2x256xf32>
    %440 = arith.mulf %439, %437 : vector<2x256xf32>
    %441 = arith.addf %436, %440 : vector<2x256xf32>
    %442 = vector.extract_strided_slice %193 {offsets = [2, 17], sizes = [2, 256], strides = [1, 1]} : vector<18x290xf32> to vector<2x256xf32>
    %c0_152 = arith.constant 0 : index
    %c1_153 = arith.constant 1 : index
    %443 = vector.load %arg5[%c0_152, %c1_153] : memref<2x9xf32, #tpu.memory_space<vmem>>, vector<2x1xf32>
    %444 = vector.broadcast %443 : vector<2x1xf32> to vector<2x256xf32>
    %445 = arith.mulf %444, %442 : vector<2x256xf32>
    %446 = arith.addf %441, %445 : vector<2x256xf32>
    %447 = vector.extract_strided_slice %193 {offsets = [4, 17], sizes = [2, 256], strides = [1, 1]} : vector<18x290xf32> to vector<2x256xf32>
    %c0_154 = arith.constant 0 : index
    %c2_155 = arith.constant 2 : index
    %448 = vector.load %arg5[%c0_154, %c2_155] : memref<2x9xf32, #tpu.memory_space<vmem>>, vector<2x1xf32>
    %449 = vector.broadcast %448 : vector<2x1xf32> to vector<2x256xf32>
    %450 = arith.mulf %449, %447 : vector<2x256xf32>
    %451 = arith.addf %446, %450 : vector<2x256xf32>
    %452 = vector.extract_strided_slice %193 {offsets = [6, 17], sizes = [2, 256], strides = [1, 1]} : vector<18x290xf32> to vector<2x256xf32>
    %c0_156 = arith.constant 0 : index
    %c3_157 = arith.constant 3 : index
    %453 = vector.load %arg5[%c0_156, %c3_157] : memref<2x9xf32, #tpu.memory_space<vmem>>, vector<2x1xf32>
    %454 = vector.broadcast %453 : vector<2x1xf32> to vector<2x256xf32>
    %455 = arith.mulf %454, %452 : vector<2x256xf32>
    %456 = arith.addf %451, %455 : vector<2x256xf32>
    %457 = vector.extract_strided_slice %193 {offsets = [8, 17], sizes = [2, 256], strides = [1, 1]} : vector<18x290xf32> to vector<2x256xf32>
    %c0_158 = arith.constant 0 : index
    %c4_159 = arith.constant 4 : index
    %458 = vector.load %arg5[%c0_158, %c4_159] : memref<2x9xf32, #tpu.memory_space<vmem>>, vector<2x1xf32>
    %459 = vector.broadcast %458 : vector<2x1xf32> to vector<2x256xf32>
    %460 = arith.mulf %459, %457 : vector<2x256xf32>
    %461 = arith.addf %456, %460 : vector<2x256xf32>
    %462 = vector.extract_strided_slice %193 {offsets = [10, 17], sizes = [2, 256], strides = [1, 1]} : vector<18x290xf32> to vector<2x256xf32>
    %c0_160 = arith.constant 0 : index
    %c5_161 = arith.constant 5 : index
    %463 = vector.load %arg5[%c0_160, %c5_161] : memref<2x9xf32, #tpu.memory_space<vmem>>, vector<2x1xf32>
    %464 = vector.broadcast %463 : vector<2x1xf32> to vector<2x256xf32>
    %465 = arith.mulf %464, %462 : vector<2x256xf32>
    %466 = arith.addf %461, %465 : vector<2x256xf32>
    %467 = vector.extract_strided_slice %193 {offsets = [12, 17], sizes = [2, 256], strides = [1, 1]} : vector<18x290xf32> to vector<2x256xf32>
    %c0_162 = arith.constant 0 : index
    %c6_163 = arith.constant 6 : index
    %468 = vector.load %arg5[%c0_162, %c6_163] : memref<2x9xf32, #tpu.memory_space<vmem>>, vector<2x1xf32>
    %469 = vector.broadcast %468 : vector<2x1xf32> to vector<2x256xf32>
    %470 = arith.mulf %469, %467 : vector<2x256xf32>
    %471 = arith.addf %466, %470 : vector<2x256xf32>
    %472 = vector.extract_strided_slice %193 {offsets = [14, 17], sizes = [2, 256], strides = [1, 1]} : vector<18x290xf32> to vector<2x256xf32>
    %c0_164 = arith.constant 0 : index
    %c7_165 = arith.constant 7 : index
    %473 = vector.load %arg5[%c0_164, %c7_165] : memref<2x9xf32, #tpu.memory_space<vmem>>, vector<2x1xf32>
    %474 = vector.broadcast %473 : vector<2x1xf32> to vector<2x256xf32>
    %475 = arith.mulf %474, %472 : vector<2x256xf32>
    %476 = arith.addf %471, %475 : vector<2x256xf32>
    %477 = vector.extract_strided_slice %193 {offsets = [16, 17], sizes = [2, 256], strides = [1, 1]} : vector<18x290xf32> to vector<2x256xf32>
    %c0_166 = arith.constant 0 : index
    %c8_167 = arith.constant 8 : index
    %478 = vector.load %arg5[%c0_166, %c8_167] : memref<2x9xf32, #tpu.memory_space<vmem>>, vector<2x1xf32>
    %479 = vector.broadcast %478 : vector<2x1xf32> to vector<2x256xf32>
    %480 = arith.mulf %479, %477 : vector<2x256xf32>
    %481 = arith.addf %476, %480 : vector<2x256xf32>
    %482 = vector.extract_strided_slice %481 {offsets = [0, 0], sizes = [1, 256], strides = [1, 1]} : vector<2x256xf32> to vector<1x256xf32>
    %483 = vector.extract_strided_slice %481 {offsets = [1, 0], sizes = [1, 256], strides = [1, 1]} : vector<2x256xf32> to vector<1x256xf32>
    %484 = arith.addf %482, %483 : vector<1x256xf32>
    %cst_168 = arith.constant 0.000000e+00 : f32
    %485 = vector.broadcast %cst_168 : f32 to vector<1x256xf32>
    %486 = arith.subf %485, %484 : vector<1x256xf32>
    %487 = math.exp %486 : vector<1x256xf32>
    %cst_169 = arith.constant 1.000000e+00 : f32
    %488 = vector.broadcast %cst_169 : f32 to vector<1x256xf32>
    %489 = arith.addf %488, %487 : vector<1x256xf32>
    %cst_170 = arith.constant 1.000000e+00 : f32
    %490 = vector.broadcast %cst_170 : f32 to vector<1x256xf32>
    %491 = arith.divf %490, %489 : vector<1x256xf32>
    %cst_171 = arith.constant 0.000000e+00 : f32
    %492 = vector.broadcast %cst_171 : f32 to vector<2x256xf32>
    %493 = vector.extract_strided_slice %193 {offsets = [2, 17], sizes = [2, 256], strides = [1, 1]} : vector<18x290xf32> to vector<2x256xf32>
    %c0_172 = arith.constant 0 : index
    %c0_173 = arith.constant 0 : index
    %494 = vector.load %arg5[%c0_172, %c0_173] : memref<2x9xf32, #tpu.memory_space<vmem>>, vector<2x1xf32>
    %495 = vector.broadcast %494 : vector<2x1xf32> to vector<2x256xf32>
    %496 = arith.mulf %495, %493 : vector<2x256xf32>
    %497 = arith.addf %492, %496 : vector<2x256xf32>
    %498 = vector.extract_strided_slice %193 {offsets = [4, 17], sizes = [2, 256], strides = [1, 1]} : vector<18x290xf32> to vector<2x256xf32>
    %c0_174 = arith.constant 0 : index
    %c1_175 = arith.constant 1 : index
    %499 = vector.load %arg5[%c0_174, %c1_175] : memref<2x9xf32, #tpu.memory_space<vmem>>, vector<2x1xf32>
    %500 = vector.broadcast %499 : vector<2x1xf32> to vector<2x256xf32>
    %501 = arith.mulf %500, %498 : vector<2x256xf32>
    %502 = arith.addf %497, %501 : vector<2x256xf32>
    %503 = vector.extract_strided_slice %193 {offsets = [0, 18], sizes = [2, 256], strides = [1, 1]} : vector<18x290xf32> to vector<2x256xf32>
    %504 = vector.broadcast %49 : vector<1x256xf32> to vector<2x256xf32>
    %505 = arith.mulf %503, %504 : vector<2x256xf32>
    %c0_176 = arith.constant 0 : index
    %c2_177 = arith.constant 2 : index
    %506 = vector.load %arg5[%c0_176, %c2_177] : memref<2x9xf32, #tpu.memory_space<vmem>>, vector<2x1xf32>
    %507 = vector.broadcast %506 : vector<2x1xf32> to vector<2x256xf32>
    %508 = arith.mulf %507, %505 : vector<2x256xf32>
    %509 = arith.addf %502, %508 : vector<2x256xf32>
    %510 = vector.extract_strided_slice %193 {offsets = [8, 17], sizes = [2, 256], strides = [1, 1]} : vector<18x290xf32> to vector<2x256xf32>
    %c0_178 = arith.constant 0 : index
    %c3_179 = arith.constant 3 : index
    %511 = vector.load %arg5[%c0_178, %c3_179] : memref<2x9xf32, #tpu.memory_space<vmem>>, vector<2x1xf32>
    %512 = vector.broadcast %511 : vector<2x1xf32> to vector<2x256xf32>
    %513 = arith.mulf %512, %510 : vector<2x256xf32>
    %514 = arith.addf %509, %513 : vector<2x256xf32>
    %515 = vector.extract_strided_slice %193 {offsets = [10, 17], sizes = [2, 256], strides = [1, 1]} : vector<18x290xf32> to vector<2x256xf32>
    %c0_180 = arith.constant 0 : index
    %c4_181 = arith.constant 4 : index
    %516 = vector.load %arg5[%c0_180, %c4_181] : memref<2x9xf32, #tpu.memory_space<vmem>>, vector<2x1xf32>
    %517 = vector.broadcast %516 : vector<2x1xf32> to vector<2x256xf32>
    %518 = arith.mulf %517, %515 : vector<2x256xf32>
    %519 = arith.addf %514, %518 : vector<2x256xf32>
    %520 = vector.extract_strided_slice %193 {offsets = [6, 18], sizes = [2, 256], strides = [1, 1]} : vector<18x290xf32> to vector<2x256xf32>
    %521 = vector.broadcast %49 : vector<1x256xf32> to vector<2x256xf32>
    %522 = arith.mulf %520, %521 : vector<2x256xf32>
    %c0_182 = arith.constant 0 : index
    %c5_183 = arith.constant 5 : index
    %523 = vector.load %arg5[%c0_182, %c5_183] : memref<2x9xf32, #tpu.memory_space<vmem>>, vector<2x1xf32>
    %524 = vector.broadcast %523 : vector<2x1xf32> to vector<2x256xf32>
    %525 = arith.mulf %524, %522 : vector<2x256xf32>
    %526 = arith.addf %519, %525 : vector<2x256xf32>
    %527 = vector.extract_strided_slice %193 {offsets = [14, 17], sizes = [2, 256], strides = [1, 1]} : vector<18x290xf32> to vector<2x256xf32>
    %c0_184 = arith.constant 0 : index
    %c6_185 = arith.constant 6 : index
    %528 = vector.load %arg5[%c0_184, %c6_185] : memref<2x9xf32, #tpu.memory_space<vmem>>, vector<2x1xf32>
    %529 = vector.broadcast %528 : vector<2x1xf32> to vector<2x256xf32>
    %530 = arith.mulf %529, %527 : vector<2x256xf32>
    %531 = arith.addf %526, %530 : vector<2x256xf32>
    %532 = vector.extract_strided_slice %193 {offsets = [16, 17], sizes = [2, 256], strides = [1, 1]} : vector<18x290xf32> to vector<2x256xf32>
    %c0_186 = arith.constant 0 : index
    %c7_187 = arith.constant 7 : index
    %533 = vector.load %arg5[%c0_186, %c7_187] : memref<2x9xf32, #tpu.memory_space<vmem>>, vector<2x1xf32>
    %534 = vector.broadcast %533 : vector<2x1xf32> to vector<2x256xf32>
    %535 = arith.mulf %534, %532 : vector<2x256xf32>
    %536 = arith.addf %531, %535 : vector<2x256xf32>
    %537 = vector.extract_strided_slice %193 {offsets = [12, 18], sizes = [2, 256], strides = [1, 1]} : vector<18x290xf32> to vector<2x256xf32>
    %538 = vector.broadcast %49 : vector<1x256xf32> to vector<2x256xf32>
    %539 = arith.mulf %537, %538 : vector<2x256xf32>
    %c0_188 = arith.constant 0 : index
    %c8_189 = arith.constant 8 : index
    %540 = vector.load %arg5[%c0_188, %c8_189] : memref<2x9xf32, #tpu.memory_space<vmem>>, vector<2x1xf32>
    %541 = vector.broadcast %540 : vector<2x1xf32> to vector<2x256xf32>
    %542 = arith.mulf %541, %539 : vector<2x256xf32>
    %543 = arith.addf %536, %542 : vector<2x256xf32>
    %544 = vector.extract_strided_slice %543 {offsets = [0, 0], sizes = [1, 256], strides = [1, 1]} : vector<2x256xf32> to vector<1x256xf32>
    %545 = vector.extract_strided_slice %543 {offsets = [1, 0], sizes = [1, 256], strides = [1, 1]} : vector<2x256xf32> to vector<1x256xf32>
    %546 = arith.addf %544, %545 : vector<1x256xf32>
    %cst_190 = arith.constant 0.000000e+00 : f32
    %547 = vector.broadcast %cst_190 : f32 to vector<1x256xf32>
    %548 = arith.subf %547, %546 : vector<1x256xf32>
    %549 = math.exp %548 : vector<1x256xf32>
    %cst_191 = arith.constant 1.000000e+00 : f32
    %550 = vector.broadcast %cst_191 : f32 to vector<1x256xf32>
    %551 = arith.addf %550, %549 : vector<1x256xf32>
    %cst_192 = arith.constant 1.000000e+00 : f32
    %552 = vector.broadcast %cst_192 : f32 to vector<1x256xf32>
    %553 = arith.divf %552, %551 : vector<1x256xf32>
    %cst_193 = arith.constant 0.000000e+00 : f32
    %554 = vector.broadcast %cst_193 : f32 to vector<2x256xf32>
    %555 = vector.extract_strided_slice %193 {offsets = [10, 16], sizes = [2, 256], strides = [1, 1]} : vector<18x290xf32> to vector<2x256xf32>
    %556 = vector.broadcast %45 : vector<1x256xf32> to vector<2x256xf32>
    %557 = arith.mulf %555, %556 : vector<2x256xf32>
    %c0_194 = arith.constant 0 : index
    %c0_195 = arith.constant 0 : index
    %558 = vector.load %arg5[%c0_194, %c0_195] : memref<2x9xf32, #tpu.memory_space<vmem>>, vector<2x1xf32>
    %559 = vector.broadcast %558 : vector<2x1xf32> to vector<2x256xf32>
    %560 = arith.mulf %559, %557 : vector<2x256xf32>
    %561 = arith.addf %554, %560 : vector<2x256xf32>
    %562 = vector.extract_strided_slice %193 {offsets = [6, 17], sizes = [2, 256], strides = [1, 1]} : vector<18x290xf32> to vector<2x256xf32>
    %c0_196 = arith.constant 0 : index
    %c1_197 = arith.constant 1 : index
    %563 = vector.load %arg5[%c0_196, %c1_197] : memref<2x9xf32, #tpu.memory_space<vmem>>, vector<2x1xf32>
    %564 = vector.broadcast %563 : vector<2x1xf32> to vector<2x256xf32>
    %565 = arith.mulf %564, %562 : vector<2x256xf32>
    %566 = arith.addf %561, %565 : vector<2x256xf32>
    %567 = vector.extract_strided_slice %193 {offsets = [8, 17], sizes = [2, 256], strides = [1, 1]} : vector<18x290xf32> to vector<2x256xf32>
    %c0_198 = arith.constant 0 : index
    %c2_199 = arith.constant 2 : index
    %568 = vector.load %arg5[%c0_198, %c2_199] : memref<2x9xf32, #tpu.memory_space<vmem>>, vector<2x1xf32>
    %569 = vector.broadcast %568 : vector<2x1xf32> to vector<2x256xf32>
    %570 = arith.mulf %569, %567 : vector<2x256xf32>
    %571 = arith.addf %566, %570 : vector<2x256xf32>
    %572 = vector.extract_strided_slice %193 {offsets = [16, 16], sizes = [2, 256], strides = [1, 1]} : vector<18x290xf32> to vector<2x256xf32>
    %573 = vector.broadcast %45 : vector<1x256xf32> to vector<2x256xf32>
    %574 = arith.mulf %572, %573 : vector<2x256xf32>
    %c0_200 = arith.constant 0 : index
    %c3_201 = arith.constant 3 : index
    %575 = vector.load %arg5[%c0_200, %c3_201] : memref<2x9xf32, #tpu.memory_space<vmem>>, vector<2x1xf32>
    %576 = vector.broadcast %575 : vector<2x1xf32> to vector<2x256xf32>
    %577 = arith.mulf %576, %574 : vector<2x256xf32>
    %578 = arith.addf %571, %577 : vector<2x256xf32>
    %579 = vector.extract_strided_slice %193 {offsets = [12, 17], sizes = [2, 256], strides = [1, 1]} : vector<18x290xf32> to vector<2x256xf32>
    %c0_202 = arith.constant 0 : index
    %c4_203 = arith.constant 4 : index
    %580 = vector.load %arg5[%c0_202, %c4_203] : memref<2x9xf32, #tpu.memory_space<vmem>>, vector<2x1xf32>
    %581 = vector.broadcast %580 : vector<2x1xf32> to vector<2x256xf32>
    %582 = arith.mulf %581, %579 : vector<2x256xf32>
    %583 = arith.addf %578, %582 : vector<2x256xf32>
    %584 = vector.extract_strided_slice %193 {offsets = [14, 17], sizes = [2, 256], strides = [1, 1]} : vector<18x290xf32> to vector<2x256xf32>
    %c0_204 = arith.constant 0 : index
    %c5_205 = arith.constant 5 : index
    %585 = vector.load %arg5[%c0_204, %c5_205] : memref<2x9xf32, #tpu.memory_space<vmem>>, vector<2x1xf32>
    %586 = vector.broadcast %585 : vector<2x1xf32> to vector<2x256xf32>
    %587 = arith.mulf %586, %584 : vector<2x256xf32>
    %588 = arith.addf %583, %587 : vector<2x256xf32>
    %589 = vector.extract_strided_slice %193 {offsets = [4, 32], sizes = [2, 256], strides = [1, 1]} : vector<18x290xf32> to vector<2x256xf32>
    %590 = vector.broadcast %45 : vector<1x256xf32> to vector<2x256xf32>
    %591 = arith.mulf %589, %590 : vector<2x256xf32>
    %c0_206 = arith.constant 0 : index
    %c6_207 = arith.constant 6 : index
    %592 = vector.load %arg5[%c0_206, %c6_207] : memref<2x9xf32, #tpu.memory_space<vmem>>, vector<2x1xf32>
    %593 = vector.broadcast %592 : vector<2x1xf32> to vector<2x256xf32>
    %594 = arith.mulf %593, %591 : vector<2x256xf32>
    %595 = arith.addf %588, %594 : vector<2x256xf32>
    %596 = vector.extract_strided_slice %193 {offsets = [0, 33], sizes = [2, 256], strides = [1, 1]} : vector<18x290xf32> to vector<2x256xf32>
    %c0_208 = arith.constant 0 : index
    %c7_209 = arith.constant 7 : index
    %597 = vector.load %arg5[%c0_208, %c7_209] : memref<2x9xf32, #tpu.memory_space<vmem>>, vector<2x1xf32>
    %598 = vector.broadcast %597 : vector<2x1xf32> to vector<2x256xf32>
    %599 = arith.mulf %598, %596 : vector<2x256xf32>
    %600 = arith.addf %595, %599 : vector<2x256xf32>
    %601 = vector.extract_strided_slice %193 {offsets = [2, 33], sizes = [2, 256], strides = [1, 1]} : vector<18x290xf32> to vector<2x256xf32>
    %c0_210 = arith.constant 0 : index
    %c8_211 = arith.constant 8 : index
    %602 = vector.load %arg5[%c0_210, %c8_211] : memref<2x9xf32, #tpu.memory_space<vmem>>, vector<2x1xf32>
    %603 = vector.broadcast %602 : vector<2x1xf32> to vector<2x256xf32>
    %604 = arith.mulf %603, %601 : vector<2x256xf32>
    %605 = arith.addf %600, %604 : vector<2x256xf32>
    %606 = vector.extract_strided_slice %605 {offsets = [0, 0], sizes = [1, 256], strides = [1, 1]} : vector<2x256xf32> to vector<1x256xf32>
    %607 = vector.extract_strided_slice %605 {offsets = [1, 0], sizes = [1, 256], strides = [1, 1]} : vector<2x256xf32> to vector<1x256xf32>
    %608 = arith.addf %606, %607 : vector<1x256xf32>
    %cst_212 = arith.constant 0.000000e+00 : f32
    %609 = vector.broadcast %cst_212 : f32 to vector<1x256xf32>
    %610 = arith.subf %609, %608 : vector<1x256xf32>
    %611 = math.exp %610 : vector<1x256xf32>
    %cst_213 = arith.constant 1.000000e+00 : f32
    %612 = vector.broadcast %cst_213 : f32 to vector<1x256xf32>
    %613 = arith.addf %612, %611 : vector<1x256xf32>
    %cst_214 = arith.constant 1.000000e+00 : f32
    %614 = vector.broadcast %cst_214 : f32 to vector<1x256xf32>
    %615 = arith.divf %614, %613 : vector<1x256xf32>
    %cst_215 = arith.constant 0.000000e+00 : f32
    %616 = vector.broadcast %cst_215 : f32 to vector<2x256xf32>
    %617 = vector.extract_strided_slice %193 {offsets = [6, 17], sizes = [2, 256], strides = [1, 1]} : vector<18x290xf32> to vector<2x256xf32>
    %c0_216 = arith.constant 0 : index
    %c0_217 = arith.constant 0 : index
    %618 = vector.load %arg5[%c0_216, %c0_217] : memref<2x9xf32, #tpu.memory_space<vmem>>, vector<2x1xf32>
    %619 = vector.broadcast %618 : vector<2x1xf32> to vector<2x256xf32>
    %620 = arith.mulf %619, %617 : vector<2x256xf32>
    %621 = arith.addf %616, %620 : vector<2x256xf32>
    %622 = vector.extract_strided_slice %193 {offsets = [8, 17], sizes = [2, 256], strides = [1, 1]} : vector<18x290xf32> to vector<2x256xf32>
    %c0_218 = arith.constant 0 : index
    %c1_219 = arith.constant 1 : index
    %623 = vector.load %arg5[%c0_218, %c1_219] : memref<2x9xf32, #tpu.memory_space<vmem>>, vector<2x1xf32>
    %624 = vector.broadcast %623 : vector<2x1xf32> to vector<2x256xf32>
    %625 = arith.mulf %624, %622 : vector<2x256xf32>
    %626 = arith.addf %621, %625 : vector<2x256xf32>
    %627 = vector.extract_strided_slice %193 {offsets = [10, 17], sizes = [2, 256], strides = [1, 1]} : vector<18x290xf32> to vector<2x256xf32>
    %c0_220 = arith.constant 0 : index
    %c2_221 = arith.constant 2 : index
    %628 = vector.load %arg5[%c0_220, %c2_221] : memref<2x9xf32, #tpu.memory_space<vmem>>, vector<2x1xf32>
    %629 = vector.broadcast %628 : vector<2x1xf32> to vector<2x256xf32>
    %630 = arith.mulf %629, %627 : vector<2x256xf32>
    %631 = arith.addf %626, %630 : vector<2x256xf32>
    %632 = vector.extract_strided_slice %193 {offsets = [12, 17], sizes = [2, 256], strides = [1, 1]} : vector<18x290xf32> to vector<2x256xf32>
    %c0_222 = arith.constant 0 : index
    %c3_223 = arith.constant 3 : index
    %633 = vector.load %arg5[%c0_222, %c3_223] : memref<2x9xf32, #tpu.memory_space<vmem>>, vector<2x1xf32>
    %634 = vector.broadcast %633 : vector<2x1xf32> to vector<2x256xf32>
    %635 = arith.mulf %634, %632 : vector<2x256xf32>
    %636 = arith.addf %631, %635 : vector<2x256xf32>
    %637 = vector.extract_strided_slice %193 {offsets = [14, 17], sizes = [2, 256], strides = [1, 1]} : vector<18x290xf32> to vector<2x256xf32>
    %c0_224 = arith.constant 0 : index
    %c4_225 = arith.constant 4 : index
    %638 = vector.load %arg5[%c0_224, %c4_225] : memref<2x9xf32, #tpu.memory_space<vmem>>, vector<2x1xf32>
    %639 = vector.broadcast %638 : vector<2x1xf32> to vector<2x256xf32>
    %640 = arith.mulf %639, %637 : vector<2x256xf32>
    %641 = arith.addf %636, %640 : vector<2x256xf32>
    %642 = vector.extract_strided_slice %193 {offsets = [16, 17], sizes = [2, 256], strides = [1, 1]} : vector<18x290xf32> to vector<2x256xf32>
    %c0_226 = arith.constant 0 : index
    %c5_227 = arith.constant 5 : index
    %643 = vector.load %arg5[%c0_226, %c5_227] : memref<2x9xf32, #tpu.memory_space<vmem>>, vector<2x1xf32>
    %644 = vector.broadcast %643 : vector<2x1xf32> to vector<2x256xf32>
    %645 = arith.mulf %644, %642 : vector<2x256xf32>
    %646 = arith.addf %641, %645 : vector<2x256xf32>
    %647 = vector.extract_strided_slice %193 {offsets = [0, 33], sizes = [2, 256], strides = [1, 1]} : vector<18x290xf32> to vector<2x256xf32>
    %c0_228 = arith.constant 0 : index
    %c6_229 = arith.constant 6 : index
    %648 = vector.load %arg5[%c0_228, %c6_229] : memref<2x9xf32, #tpu.memory_space<vmem>>, vector<2x1xf32>
    %649 = vector.broadcast %648 : vector<2x1xf32> to vector<2x256xf32>
    %650 = arith.mulf %649, %647 : vector<2x256xf32>
    %651 = arith.addf %646, %650 : vector<2x256xf32>
    %652 = vector.extract_strided_slice %193 {offsets = [2, 33], sizes = [2, 256], strides = [1, 1]} : vector<18x290xf32> to vector<2x256xf32>
    %c0_230 = arith.constant 0 : index
    %c7_231 = arith.constant 7 : index
    %653 = vector.load %arg5[%c0_230, %c7_231] : memref<2x9xf32, #tpu.memory_space<vmem>>, vector<2x1xf32>
    %654 = vector.broadcast %653 : vector<2x1xf32> to vector<2x256xf32>
    %655 = arith.mulf %654, %652 : vector<2x256xf32>
    %656 = arith.addf %651, %655 : vector<2x256xf32>
    %657 = vector.extract_strided_slice %193 {offsets = [4, 33], sizes = [2, 256], strides = [1, 1]} : vector<18x290xf32> to vector<2x256xf32>
    %c0_232 = arith.constant 0 : index
    %c8_233 = arith.constant 8 : index
    %658 = vector.load %arg5[%c0_232, %c8_233] : memref<2x9xf32, #tpu.memory_space<vmem>>, vector<2x1xf32>
    %659 = vector.broadcast %658 : vector<2x1xf32> to vector<2x256xf32>
    %660 = arith.mulf %659, %657 : vector<2x256xf32>
    %661 = arith.addf %656, %660 : vector<2x256xf32>
    %662 = vector.extract_strided_slice %661 {offsets = [0, 0], sizes = [1, 256], strides = [1, 1]} : vector<2x256xf32> to vector<1x256xf32>
    %663 = vector.extract_strided_slice %661 {offsets = [1, 0], sizes = [1, 256], strides = [1, 1]} : vector<2x256xf32> to vector<1x256xf32>
    %664 = arith.addf %662, %663 : vector<1x256xf32>
    %cst_234 = arith.constant 0.000000e+00 : f32
    %665 = vector.broadcast %cst_234 : f32 to vector<1x256xf32>
    %666 = arith.subf %665, %664 : vector<1x256xf32>
    %667 = math.exp %666 : vector<1x256xf32>
    %cst_235 = arith.constant 1.000000e+00 : f32
    %668 = vector.broadcast %cst_235 : f32 to vector<1x256xf32>
    %669 = arith.addf %668, %667 : vector<1x256xf32>
    %cst_236 = arith.constant 1.000000e+00 : f32
    %670 = vector.broadcast %cst_236 : f32 to vector<1x256xf32>
    %671 = arith.divf %670, %669 : vector<1x256xf32>
    %cst_237 = arith.constant 0.000000e+00 : f32
    %672 = vector.broadcast %cst_237 : f32 to vector<2x256xf32>
    %673 = vector.extract_strided_slice %193 {offsets = [8, 17], sizes = [2, 256], strides = [1, 1]} : vector<18x290xf32> to vector<2x256xf32>
    %c0_238 = arith.constant 0 : index
    %c0_239 = arith.constant 0 : index
    %674 = vector.load %arg5[%c0_238, %c0_239] : memref<2x9xf32, #tpu.memory_space<vmem>>, vector<2x1xf32>
    %675 = vector.broadcast %674 : vector<2x1xf32> to vector<2x256xf32>
    %676 = arith.mulf %675, %673 : vector<2x256xf32>
    %677 = arith.addf %672, %676 : vector<2x256xf32>
    %678 = vector.extract_strided_slice %193 {offsets = [10, 17], sizes = [2, 256], strides = [1, 1]} : vector<18x290xf32> to vector<2x256xf32>
    %c0_240 = arith.constant 0 : index
    %c1_241 = arith.constant 1 : index
    %679 = vector.load %arg5[%c0_240, %c1_241] : memref<2x9xf32, #tpu.memory_space<vmem>>, vector<2x1xf32>
    %680 = vector.broadcast %679 : vector<2x1xf32> to vector<2x256xf32>
    %681 = arith.mulf %680, %678 : vector<2x256xf32>
    %682 = arith.addf %677, %681 : vector<2x256xf32>
    %683 = vector.extract_strided_slice %193 {offsets = [6, 18], sizes = [2, 256], strides = [1, 1]} : vector<18x290xf32> to vector<2x256xf32>
    %684 = vector.broadcast %49 : vector<1x256xf32> to vector<2x256xf32>
    %685 = arith.mulf %683, %684 : vector<2x256xf32>
    %c0_242 = arith.constant 0 : index
    %c2_243 = arith.constant 2 : index
    %686 = vector.load %arg5[%c0_242, %c2_243] : memref<2x9xf32, #tpu.memory_space<vmem>>, vector<2x1xf32>
    %687 = vector.broadcast %686 : vector<2x1xf32> to vector<2x256xf32>
    %688 = arith.mulf %687, %685 : vector<2x256xf32>
    %689 = arith.addf %682, %688 : vector<2x256xf32>
    %690 = vector.extract_strided_slice %193 {offsets = [14, 17], sizes = [2, 256], strides = [1, 1]} : vector<18x290xf32> to vector<2x256xf32>
    %c0_244 = arith.constant 0 : index
    %c3_245 = arith.constant 3 : index
    %691 = vector.load %arg5[%c0_244, %c3_245] : memref<2x9xf32, #tpu.memory_space<vmem>>, vector<2x1xf32>
    %692 = vector.broadcast %691 : vector<2x1xf32> to vector<2x256xf32>
    %693 = arith.mulf %692, %690 : vector<2x256xf32>
    %694 = arith.addf %689, %693 : vector<2x256xf32>
    %695 = vector.extract_strided_slice %193 {offsets = [16, 17], sizes = [2, 256], strides = [1, 1]} : vector<18x290xf32> to vector<2x256xf32>
    %c0_246 = arith.constant 0 : index
    %c4_247 = arith.constant 4 : index
    %696 = vector.load %arg5[%c0_246, %c4_247] : memref<2x9xf32, #tpu.memory_space<vmem>>, vector<2x1xf32>
    %697 = vector.broadcast %696 : vector<2x1xf32> to vector<2x256xf32>
    %698 = arith.mulf %697, %695 : vector<2x256xf32>
    %699 = arith.addf %694, %698 : vector<2x256xf32>
    %700 = vector.extract_strided_slice %193 {offsets = [12, 18], sizes = [2, 256], strides = [1, 1]} : vector<18x290xf32> to vector<2x256xf32>
    %701 = vector.broadcast %49 : vector<1x256xf32> to vector<2x256xf32>
    %702 = arith.mulf %700, %701 : vector<2x256xf32>
    %c0_248 = arith.constant 0 : index
    %c5_249 = arith.constant 5 : index
    %703 = vector.load %arg5[%c0_248, %c5_249] : memref<2x9xf32, #tpu.memory_space<vmem>>, vector<2x1xf32>
    %704 = vector.broadcast %703 : vector<2x1xf32> to vector<2x256xf32>
    %705 = arith.mulf %704, %702 : vector<2x256xf32>
    %706 = arith.addf %699, %705 : vector<2x256xf32>
    %707 = vector.extract_strided_slice %193 {offsets = [2, 33], sizes = [2, 256], strides = [1, 1]} : vector<18x290xf32> to vector<2x256xf32>
    %c0_250 = arith.constant 0 : index
    %c6_251 = arith.constant 6 : index
    %708 = vector.load %arg5[%c0_250, %c6_251] : memref<2x9xf32, #tpu.memory_space<vmem>>, vector<2x1xf32>
    %709 = vector.broadcast %708 : vector<2x1xf32> to vector<2x256xf32>
    %710 = arith.mulf %709, %707 : vector<2x256xf32>
    %711 = arith.addf %706, %710 : vector<2x256xf32>
    %712 = vector.extract_strided_slice %193 {offsets = [4, 33], sizes = [2, 256], strides = [1, 1]} : vector<18x290xf32> to vector<2x256xf32>
    %c0_252 = arith.constant 0 : index
    %c7_253 = arith.constant 7 : index
    %713 = vector.load %arg5[%c0_252, %c7_253] : memref<2x9xf32, #tpu.memory_space<vmem>>, vector<2x1xf32>
    %714 = vector.broadcast %713 : vector<2x1xf32> to vector<2x256xf32>
    %715 = arith.mulf %714, %712 : vector<2x256xf32>
    %716 = arith.addf %711, %715 : vector<2x256xf32>
    %717 = vector.extract_strided_slice %193 {offsets = [0, 34], sizes = [2, 256], strides = [1, 1]} : vector<18x290xf32> to vector<2x256xf32>
    %718 = vector.broadcast %49 : vector<1x256xf32> to vector<2x256xf32>
    %719 = arith.mulf %717, %718 : vector<2x256xf32>
    %c0_254 = arith.constant 0 : index
    %c8_255 = arith.constant 8 : index
    %720 = vector.load %arg5[%c0_254, %c8_255] : memref<2x9xf32, #tpu.memory_space<vmem>>, vector<2x1xf32>
    %721 = vector.broadcast %720 : vector<2x1xf32> to vector<2x256xf32>
    %722 = arith.mulf %721, %719 : vector<2x256xf32>
    %723 = arith.addf %716, %722 : vector<2x256xf32>
    %724 = vector.extract_strided_slice %723 {offsets = [0, 0], sizes = [1, 256], strides = [1, 1]} : vector<2x256xf32> to vector<1x256xf32>
    %725 = vector.extract_strided_slice %723 {offsets = [1, 0], sizes = [1, 256], strides = [1, 1]} : vector<2x256xf32> to vector<1x256xf32>
    %726 = arith.addf %724, %725 : vector<1x256xf32>
    %cst_256 = arith.constant 0.000000e+00 : f32
    %727 = vector.broadcast %cst_256 : f32 to vector<1x256xf32>
    %728 = arith.subf %727, %726 : vector<1x256xf32>
    %729 = math.exp %728 : vector<1x256xf32>
    %cst_257 = arith.constant 1.000000e+00 : f32
    %730 = vector.broadcast %cst_257 : f32 to vector<1x256xf32>
    %731 = arith.addf %730, %729 : vector<1x256xf32>
    %cst_258 = arith.constant 1.000000e+00 : f32
    %732 = vector.broadcast %cst_258 : f32 to vector<1x256xf32>
    %733 = arith.divf %732, %731 : vector<1x256xf32>
    %734 = tpu.concatenate %255, %255, %255, %255, %311, %311, %311, %311, %373, %373, %373, %373, %435, %435, %435, %435 in 0 : vector<1x256xf32>, vector<1x256xf32>, vector<1x256xf32>, vector<1x256xf32>, vector<1x256xf32>, vector<1x256xf32>, vector<1x256xf32>, vector<1x256xf32>, vector<1x256xf32>, vector<1x256xf32>, vector<1x256xf32>, vector<1x256xf32>, vector<1x256xf32>, vector<1x256xf32>, vector<1x256xf32>, vector<1x256xf32> -> vector<16x256xf32>
    %735 = tpu.concatenate %491, %491, %491, %491, %553, %553, %553, %553, %615, %615, %615, %615, %671, %671, %671, %671 in 0 : vector<1x256xf32>, vector<1x256xf32>, vector<1x256xf32>, vector<1x256xf32>, vector<1x256xf32>, vector<1x256xf32>, vector<1x256xf32>, vector<1x256xf32>, vector<1x256xf32>, vector<1x256xf32>, vector<1x256xf32>, vector<1x256xf32>, vector<1x256xf32>, vector<1x256xf32>, vector<1x256xf32>, vector<1x256xf32> -> vector<16x256xf32>
    %736 = tpu.concatenate %733, %733, %733, %733 in 0 : vector<1x256xf32>, vector<1x256xf32>, vector<1x256xf32>, vector<1x256xf32> -> vector<4x256xf32>
    %737 = tpu.concatenate %734, %735, %736 in 0 : vector<16x256xf32>, vector<16x256xf32>, vector<4x256xf32> -> vector<36x256xf32>
    %738 = tpu.concatenate %24, %24, %24, %24, %24, %24, %24, %24, %24 in 0 : vector<4x1xf32>, vector<4x1xf32>, vector<4x1xf32>, vector<4x1xf32>, vector<4x1xf32>, vector<4x1xf32>, vector<4x1xf32>, vector<4x1xf32>, vector<4x1xf32> -> vector<36x1xf32>
    %739 = vector.broadcast %738 : vector<36x1xf32> to vector<36x256xf32>
    %740 = arith.mulf %124, %739 : vector<36x256xf32>
    %741 = arith.mulf %740, %737 : vector<36x256xf32>
    %cst_259 = arith.constant 1.000000e+00 : f32
    %742 = vector.broadcast %cst_259 : f32 to vector<1x256xf32>
    %743 = tpu.concatenate %741, %742 in 0 : vector<36x256xf32>, vector<1x256xf32> -> vector<37x256xf32>
    %c0_260 = arith.constant 0 : index
    %c0_261 = arith.constant 0 : index
    %744 = vector.load %arg8[%c0_260, %c0_261] : memref<37x256xf32, #tpu.memory_space<vmem>>, vector<37x256xf32>
    tpu.vector_store %arg8[%c0_260, %c0_261], %743 {strides = array<i32>} : memref<37x256xf32, #tpu.memory_space<vmem>>, vector<37x256xf32>,
    %c0_262 = arith.constant 0 : index
    %c0_263 = arith.constant 0 : index
    %745 = vector.load %arg6[%c0_262, %c0_263] : memref<8x37xf32, #tpu.memory_space<vmem>>, vector<8x37xf32>
    %c0_264 = arith.constant 0 : index
    %c0_265 = arith.constant 0 : index
    %746 = vector.load %arg8[%c0_264, %c0_265] : memref<37x256xf32, #tpu.memory_space<vmem>>, vector<37x256xf32>
    %cst_266 = arith.constant dense<0.000000e+00> : vector<8x256xf32>
    %747 = tpu.matmul %745, %746, %cst_266 {dimension_numbers = #tpu.dot_dimension_numbers<[1], [0], [0], [1], [0, 0, 1, 1], [], []>} : vector<8x37xf32>, vector<37x256xf32>, vector<8x256xf32> -> vector<8x256xf32>
    %cst_267 = arith.constant 0.000000e+00 : f32
    %748 = vector.broadcast %cst_267 : f32 to vector<8x256xf32>
    %749 = arith.maximumf %747, %748 : vector<8x256xf32>
    %c0_268 = arith.constant 0 : index
    %c0_269 = arith.constant 0 : index
    %c0_270 = arith.constant 0 : index
    %750 = vector.load %arg7[%c0_268, %c0_269, %c0_270] : memref<1x8x256xf32, #tpu.memory_space<vmem>>, vector<1x8x256xf32>
    %751 = vector.shape_cast %750 : vector<1x8x256xf32> to vector<8x256xf32>
    %752 = vector.shape_cast %749 : vector<8x256xf32> to vector<1x8x256xf32>
    tpu.vector_store %arg7[%c0_268, %c0_269, %c0_270], %752 {strides = array<i32>} : memref<1x8x256xf32, #tpu.memory_space<vmem>>, vector<1x8x256xf32>,
    return
  }
  func.func @transform_0(%arg0: i32) -> (i32, i32, i32) {
    %c0_i32 = arith.constant 0 : i32
    %c0_i32_0 = arith.constant 0 : i32
    %c0_i32_1 = arith.constant 0 : i32
    return %arg0, %c0_i32, %c0_i32_0 : i32, i32, i32
  }
  func.func @transform_1(%arg0: i32) -> (i32, i32) {
    %c0_i32 = arith.constant 0 : i32
    %c0_i32_0 = arith.constant 0 : i32
    %c0_i32_1 = arith.constant 0 : i32
    return %c0_i32, %c0_i32_0 : i32, i32
  }
  func.func @transform_2(%arg0: i32) -> (i32, i32) {
    %c0_i32 = arith.constant 0 : i32
    %c0_i32_0 = arith.constant 0 : i32
    %c0_i32_1 = arith.constant 0 : i32
    return %c0_i32, %c0_i32_0 : i32, i32
  }
  func.func @transform_3(%arg0: i32) -> (i32, i32) {
    %c0_i32 = arith.constant 0 : i32
    %c0_i32_0 = arith.constant 0 : i32
    %c0_i32_1 = arith.constant 0 : i32
    return %c0_i32, %c0_i32_0 : i32, i32
  }
  func.func @transform_4(%arg0: i32) -> (i32, i32) {
    %c0_i32 = arith.constant 0 : i32
    %c0_i32_0 = arith.constant 0 : i32
    %c0_i32_1 = arith.constant 0 : i32
    return %c0_i32, %c0_i32_0 : i32, i32
  }
  func.func @transform_5(%arg0: i32) -> (i32, i32) {
    %c0_i32 = arith.constant 0 : i32
    %c0_i32_0 = arith.constant 0 : i32
    %c0_i32_1 = arith.constant 0 : i32
    return %c0_i32, %c0_i32_0 : i32, i32
  }
  func.func @transform_6(%arg0: i32) -> (i32, i32, i32) {
    %c0_i32 = arith.constant 0 : i32
    %c0_i32_0 = arith.constant 0 : i32
    %c0_i32_1 = arith.constant 0 : i32
    return %arg0, %c0_i32, %c0_i32_0 : i32, i32, i32
  }
}

</mosaic_0001>

<bundles_post_ra>
// kernel: tpu_custom_call.1
= control target key start
LH: loop header
LB: loop body
LE: loop exit
PB: predicated region body
PF: predicated region fallthrough
CT: control target
= control target key end

     0   :  { %11 = vsyncpa [#allocation4], 0  ;;  %s6504_s0 = inlined_call_operand.vmem [shape: f32[2,4,256], index: 0, kind: input, shape index: {}]   ;;  %s6505_s1 = inlined_call_operand.vmem [shape: f32[4,16], index: 1, kind: input, shape index: {}]   ;;  %s6506_s2 = inlined_call_operand.vmem [shape: f32[4,16], index: 2, kind: input, shape index: {}]   ;;  %s6507_s3 = inlined_call_operand.vmem [shape: f32[36,10], index: 3, kind: input, shape index: {}]   ;;  %s6508_s4 = inlined_call_operand.vmem [shape: f32[2,9], index: 4, kind: input, shape index: {}]   ;;  %s6509_s5 = inlined_call_operand.vmem [shape: f32[8,37], index: 5, kind: input, shape index: {}]   ;;  %s6510_s6 = inlined_call_operand.hbm [shape: f32[2,8,256], index: 6, kind: output, shape index: {}]  }
   0x1   :  { %13 = vsyncpa [#allocation4 + $0x1], 0  ;;  %s3990_s21 = smov 0   ;;  %s3992_s22 = smov 0  }
   0x2   :  { %s3994_s23 = smov 0   ;;  %s3996_s24 = smov 0  }
   0x3 LB: > { %s4011_s25 = sadd.s32 4294967295, %s3927_s24   ;;  %s3632_s26 = sadd.s32 4294967294, %s3927_s24   ;;  %s3927_s24 = sphi %s3996_s24, %s6762_s24   ;;  %s3923_s23 = sphi %s3994_s23, %s6761_s23   ;;  %s3919_s22 = sphi %s3992_s22, %s6760_s22   ;;  %s3915_s21 = sphi %s3990_s21, %s6759_s21  }
   0x4   : > { %s4015_s27 = sadd.s32 1, %s3927_s24   ;;  %s157_s28 = sadd.s32 1, %s3923_s23 }
   0x5   : > { %s154_s29 = ssub.s32 %s3927_s24, %s4015_s27  ;;  %p167_p0 = scmp.ne.s32.totalorder %s3923_s23, %s3919_s22 }
   0x6   : > { %p155_p1 = scmp.eq.s32.totalorder %s154_s29, 0  ;;  %p168_p2 = scmp.eq.s32.totalorder %s4011_s25, 1 }
   0x7   : > { %p173_p3 = scmp.ne.s32.totalorder %s3919_s22, %s3915_s21  ;;  %p174_p4 = scmp.eq.s32.totalorder %s3632_s26, 1 }
   0x8   : > { %s4026_s30 = scalar_select %p155_p1, %s3923_s23, %s157_s28  }
   0x9   : > { %p4028_p5 = por %p168_p2, %p167_p0  ;;  %p4032_p6 = por %p174_p4, %p173_p3 }
   0xa   : > { %p3635_p7 = scmp.ge.s32.totalorder %s3927_s24, 1  ;;  %p215_p8 = scmp.lt.s32.totalorder %s3927_s24, 3 }
   0xc   : > { %p216_p9 = pnand %p3635_p7, %p215_p8 }
   0xe   : > { %219 = sbr.rel (%p216_p9) target bundleno = 1699 (0x6a3), region = 44 }
  0x13   : > { %p245_p10 = scmp.lt.s32.totalorder %s4011_s25, 1  ;;  %v6513_v0 = vmov 0   ;;  %v3930_v1 = vmov 0.0   ;;  %vm254_vm0 = vcmask 1043456   ;;  %s3931_s14 = smov 17   ;;  %v4052_v7 = vld [vmem:[%s6507_s3 + $0x8] sm:$0xff]  ;;  %v284_v11 = vlaneseq }
  0x14   : > { %3718 = vset.pattern.permute.xlu1 %v6513_v0  ;;  %3717 = vset.pattern.permute.xlu0 %v6513_v0  ;;  %v4058_v8 = vld [vmem:[%s6507_s3 + $0x10] sm:$0xff]  ;;  %v4064_v9 = vld [vmem:[%s6507_s3 + $0x18] sm:$0xff]  ;;  %v4070_v10 = vld [vmem:[%s6507_s3 + $0x20] sm:$0xf]  ;;  %v6520_v14 = vmov 1   ;;  %v6519_v18 = vmov 2  }
  0x15   : > { %s246_s9 = scalar_select %p245_p10, %s4011_s25, 1  ;;  %3547 = vmatprep.mubr.f32.mxu0 %v3930_v1  ;;  %v4076_v12 = vld [vmem:[%s6507_s3] sm:$0xff]  ;;  %v285_v13 = vand.u32 127, %v284_v11  ;;  %v6518_v21 = vmov 3   ;;  %v6511_v26 = vmov 4   ;;  %v6517_v28 = vmov 5  }
  0x16   : > { %s3936_s11 = smov 16   ;;  %vm327_vm5 = vcmask 138240   ;;  %s3939_s12 = smov 127   ;;  %vm522_vm6 = vcmask 15360   ;;  %vm659_vm7 = vcmask 130048   ;;  %vm264_vm8 = vcmask 125952  }
  0x17   : > { %s3651_s10 = sshll.u32 %s246_s9, 3  ;;  %v286_v15 = vadd.s32 128, %v285_v13  ;;  %v291_v16 = vand.u32 15, %v285_v13  ;;  %s3941_s15 = smov 112   ;;  %vm905_vm9 = vcmask 146432   ;;  %vm1040_vm10 = vcmask 261120  }
  0x18   : > { %s249_s13 = scalar_lea.vmem %s6504_s0, %s3651_s10  ;;  %s3935_s10 = smov 2   ;;  %vm1286_vm11 = vcmask 277504   ;;  %vm485_vm12 = vcmask 1039360   ;;  %vm6554_vm13 = vcmask 1031168   ;;  %vm759_vm14 = vcmask 916480  }
  0x19   : > { %v250_v2 = vld [vmem:[%s249_s13] sm:$0xff]  ;;  %v298_v17 = vand.u32 15, %v286_v15  ;;  %vm317_vm1 = vcmp.lt.s32.totalorder %v291_v16, 15  ;;  %vm311_vm3 = vcmp.gt.s32.totalorder %v291_v16, 0  ;;  %s3940_s13 = smov 126   ;;  %s3942_s16 = smov 18  }
  0x1a   : > { %323 = vrot.lane.b32.xlu1 %v250_v2, %s3931_s14  ;;  %v252_v3 = vcombine.high %v250_v2, %v250_v2  ;;  %v255_v4 = vsel %vm254_vm0, %v250_v2, 0.0  ;;  %v3641_v19 = vsel %vm317_vm1, 1.0, %v3930_v1  ;;  %v4097_v23 = vsel %vm311_vm3, 1.0, %v3930_v1  ;;  %s3943_s19 = smov 32   ;;  %s3945_s20 = smov 34  }
  0x1b   : > { %vm318_vm2 = vcmp.lt.s32.totalorder %v298_v17, 15  ;;  %vm312_vm4 = vcmp.gt.s32.totalorder %v298_v17, 0  ;;  %6592 = vst [vmem:[#allocation6_spill] sm:$0xff] %v4097_v23  ;;  %s3949_s29 = smov 111   ;;  %s3950_s9 = smov 110   ;;  %vm870_vm15 = vcmask 908288  }
  0x1c   : > { %v256_v5 = vsel %vm254_vm0, %v252_v3, 0.0  ;;  %v3642_v20 = vsel %vm318_vm2, 1.0, %v3930_v1  ;;  %v4099_v24 = vsel %vm312_vm4, 1.0, %v3930_v1  ;;  %vm1005_vm1 = vcmask 900096  }
  0x1d   : > { %v257_v6 = vadd.f32 %v256_v5, %v255_v4  ;;  %v4089_v22 = vpack.i.bf16 %v3642_v20, %v3641_v19  ;;  %6593 = vst [vmem:[#allocation7_spill] sm:$0xff] %v4099_v24  ;;  %v4104_v25 = vpack.i.bf16 %v4099_v24, %v4097_v23  ;;  %vm1140_vm2 = vcmask 785408  }
  0x1e   : > { %325 = vrot.lane.b32.xlu1 %v252_v3, %s3931_s14  ;;  %vm1251_vm3 = vcmask 777216   ;;  %vm1386_vm4 = vcmask 769024  }
  0x1f   : > { %258 = vadd.xlane.f32.xlu0 %v257_v6 }
  0x22   : > { %356 = vperm.xlu1 %3718, %v4052_v7  }
  0x26   : > { %361 = vperm.xlu1 %3718, %v4058_v8  }
  0x2a   : > { %366 = vperm.xlu1 %3718, %v4064_v9  }
  0x2e   : > { %371 = vperm.xlu1 %3718, %v4070_v10  }
  0x32   : > { %3719 = vset.pattern.permute.xlu1 %v6520_v14 }
  0x33   : > { %406 = vperm.xlu1 %3719, %v4076_v12  }
  0x35   : > { %351 = vperm.xlu0 %3717, %v4076_v12  }
  0x37   : > { %410 = vperm.xlu1 %3719, %v4052_v7  }
  0x39   : > { %3725 = vset.pattern.permute.xlu0 %v6519_v18 }
  0x3a   : > { %543 = vperm.xlu0 %3725, %v4076_v12  }
  0x3b   : > { %414 = vperm.xlu1 %3719, %v4058_v8  }
  0x3e   : > { %555 = vperm.xlu0 %3725, %v4064_v9  }
  0x3f   : > { %418 = vperm.xlu1 %3719, %v4064_v9  }
  0x42   : > { %3732 = vset.pattern.permute.xlu0 %v6518_v21 }
  0x43   : > { %422 = vperm.xlu1 %3719, %v4070_v10   ;;  %680 = vperm.xlu0 %3732, %v4076_v12  }
  0x47   : > { %3721 = vrot.lane.b32.xlu1 %v4089_v22, %s3935_s10  ;;  %692 = vperm.xlu0 %3732, %v4064_v9   ;;  %s3951_s10 = smov 96  }
  0x48   : > { %3726 = vset.pattern.permute.xlu1 %v6519_v18 }
  0x4b   : > { %547 = vperm.xlu1 %3726, %v4052_v7   ;;  %3740 = vset.pattern.permute.xlu0 %v6517_v28 }
  0x4f   : > { %551 = vperm.xlu1 %3726, %v4058_v8  }
  0x53   : > { %559 = vperm.xlu1 %3726, %v4070_v10  }
  0x57   : > { %3728 = vrot.lane.b32.xlu1 %v4104_v25, %s3936_s11  ;;  %s3952_s11 = smov 95  }
  0x58   : > { %3733 = vset.pattern.permute.xlu1 %v6518_v21 }
  0x5b   : > { %684 = vperm.xlu1 %3733, %v4052_v7  }
  0x5f   : > { %688 = vperm.xlu1 %3733, %v4058_v8  }
  0x63   : > { %696 = vperm.xlu1 %3733, %v4070_v10  }
  0x67   : > { %3739 = vset.pattern.permute.xlu1 %v6511_v26 }
  0x8c   : > { %v324_v27 = vpop.permute.xlu1 %323 }
  0x8d   : > { %v4120_v33 = vsel %vm327_vm5, 0.0, %v324_v27 }
  0x8e   : > { %v396_v35 = vrot.slane %v4120_v33, 4 }
  0x90   : > { %v326_v29 = vpop.permute.xlu1 %325  ;;  %v4127_v36 = vsel %vm254_vm0, %v4120_v33, %v396_v35 }
  0x91   : > { %v4141_v44 = vsel %vm327_vm5, %v324_v27, %v326_v29  ;;  %v4148_v48 = vsel %vm327_vm5, %v326_v29, 0.0 }
  0x92   : > { %v397_v46 = vrot.slane %v4141_v44, 4  ;;  %v398_v51 = vrot.slane %v4148_v48, 4 }
  0x94   : > { %v4157_v52 = vsel %vm254_vm0, %v4141_v44, %v397_v46  ;;  %v4169_v58 = vsel %vm254_vm0, %v4148_v48, %v398_v51 }
  0x9d   : > { %v4113_v30 = vpop.permute.xlu1 %356 }
  0xa1   : > { %v4115_v31 = vpop.permute.xlu1 %361 }
  0xa5   : > { %v4117_v32 = vpop.permute.xlu1 %366 }
  0xa8   : > { %v4161_v56 = vpop.xlane.xlu0 %258 }
  0xa9   : > { %v4122_v34 = vpop.permute.xlu1 %371 }
  0xae   : > { %v407_v37 = vpop.permute.xlu1 %406 }
  0xaf   : > { %v425_v38 = vmul.f32 %v407_v37, %v4127_v36  ;;  %v426_v54 = vmul.f32 %v407_v37, %v4157_v52  ;;  %v427_v27 = vmul.f32 %v407_v37, %v4169_v58 }
  0xb0   : > { %v4177_v62 = vpop.permute.xlu0 %351 }
  0xb1   : > { %455 = vrot.lane.b32.xlu1 %v425_v38, %s3939_s12 }
  0xb2   : > { %v411_v39 = vpop.permute.xlu1 %410 }
  0xb3   : > { %v428_v40 = vmul.f32 %v411_v39, %v4127_v36  ;;  %v430_v60 = vmul.f32 %v411_v39, %v4169_v58 }
  0xb5   : > { %461 = vrot.lane.b32.xlu1 %v428_v40, %s3939_s12  ;;  %v4186_v4 = vpop.permute.xlu0 %543 }
  0xb6   : > { %v4133_v41 = vpop.permute.xlu1 %414 }
  0xb7   : > { %v431_v42 = vmul.f32 %v4133_v41, %v4127_v36  ;;  %v432_v1 = vmul.f32 %v4133_v41, %v4157_v52  ;;  %v433_v37 = vmul.f32 %v4133_v41, %v4169_v58 }
  0xb9   : > { %467 = vrot.lane.b32.xlu0 %v431_v42, %s3939_s12  ;;  %v4196_v19 = vpop.permute.xlu0 %555  ;;  %v429_v42 = vmul.f32 %v411_v39, %v4157_v52 }
  0xba   : > { %v4138_v43 = vpop.permute.xlu1 %418 }
  0xbb   : > { %v434_v45 = vmul.f32 %v4138_v43, %v4127_v36  ;;  %v436_v6 = vmul.f32 %v4138_v43, %v4169_v58 }
  0xbd   : > { %473 = vrot.lane.b32.xlu1 %v434_v45, %s3939_s12 }
  0xbe   : > { %v423_v47 = vpop.permute.xlu1 %422 }
  0xbf   : > { %v438_v49 = vmul.f32 %v423_v47, %v4141_v44  ;;  %v437_v50 = vmul.f32 %v423_v47, %v4120_v33  ;;  %v439_v55 = vmul.f32 %v423_v47, %v4148_v48 }
  0xc1   : > { %481 = vrot.lane.b32.xlu1 %v438_v49, %s3939_s12  ;;  %479 = vrot.lane.b32.xlu0 %v437_v50, %s3939_s12 }
  0xc2   : > { %v3722_v53 = vpop.permute.xlu1 %3721 }
  0xc3   : > { %v4163_v57 = vunpack.i.l.bf16 %v3722_v53  ;;  %v4183_v3 = vunpack.i.h.bf16 %v3722_v53  ;;  %v435_v53 = vmul.f32 %v4138_v43, %v4157_v52 }
  0xc5   : > { %6594 = vst [vmem:[#allocation8_spill] sm:$0xff] %v4163_v57  ;;  %457 = vrot.lane.b32.xlu1 %v426_v54, %s3939_s12  ;;  %483 = vrot.lane.b32.xlu0 %v439_v55, %s3939_s12  ;;  %v527_v61 = vmul.f32 %v4163_v57, %v4120_v33  ;;  %6595 = vst [vmem:[#allocation9_spill] sm:$0xff] %v4183_v3  ;;  %v529_v15 = vmul.f32 %v4183_v3, %v4148_v48 }
  0xc6   : > { %v4171_v59 = vpop.permute.xlu1 %547  ;;  %v4202_v20 = vsel %vm522_vm6, %v4163_v57, %v4183_v3  ;;  %vm1488_vm6 = vcmask 1047556  }
  0xc7   : > { %v533_v2 = vrot.slane %v527_v61, 4  ;;  %6596 = vst [vmem:[#allocation10_spill] sm:$0xff] %v4202_v20  ;;  %v535_v35 = vrot.slane %v529_v15, 4  ;;  %v528_v38 = vmul.f32 %v4202_v20, %v4141_v44 }
  0xc9   : > { %465 = vrot.lane.b32.xlu1 %v430_v60, %s3939_s12  ;;  %v539_v13 = vsel %vm254_vm0, %v527_v61, %v533_v2  ;;  %v541_v46 = vsel %vm254_vm0, %v529_v15, %v535_v35  ;;  %v534_v51 = vrot.slane %v528_v38, 4 }
  0xca   : > { %v4179_v63 = vpop.permute.xlu1 %551  ;;  %v565_v16 = vmul.f32 %v4171_v59, %v539_v13  ;;  %v571_v29 = vmul.f32 %v4196_v19, %v539_v13  ;;  %v567_v50 = vmul.f32 %v4171_v59, %v541_v46  ;;  %v573_v54 = vmul.f32 %v4196_v19, %v541_v46 }
  0xcb   : > { %v540_v60 = vsel %vm254_vm0, %v528_v38, %v534_v51 }
  0xcc   : > { %v563_v43 = vmul.f32 %v4186_v4, %v540_v60 }
  0xcd   : > { %469 = vrot.lane.b32.xlu1 %v432_v1, %s3939_s12 }
  0xce   : > { %v560_v5 = vpop.permute.xlu1 %559 }
  0xcf   : > { %v574_v11 = vmul.f32 %v560_v5, %v527_v61  ;;  %v576_v17 = vmul.f32 %v560_v5, %v529_v15  ;;  %v575_v45 = vmul.f32 %v560_v5, %v528_v38  ;;  %v562_v61 = vmul.f32 %v4186_v4, %v539_v13 }
  0xd0   : > { %v568_v5 = vmul.f32 %v4179_v63, %v539_v13 }
  0xd1   : > { %477 = vrot.lane.b32.xlu1 %v436_v6, %s3939_s12  ;;  %616 = vrot.lane.b32.xlu0 %v574_v11, %s3940_s13  ;;  %v569_v6 = vmul.f32 %v4179_v63, %v540_v60 }
  0xd2   : > { %v3729_v40 = vpop.permute.xlu1 %3728 }
  0xd3   : > { %v4212_v47 = vunpack.i.h.bf16 %v3729_v40  ;;  %v4214_v49 = vunpack.i.l.bf16 %v3729_v40  ;;  %v564_v40 = vmul.f32 %v4186_v4, %v541_v46  ;;  %v572_v4 = vmul.f32 %v4196_v19, %v540_v60 }
  0xd5   : > { %598 = vrot.lane.b32.xlu1 %v565_v16, %s3940_s13  ;;  %620 = vrot.lane.b32.xlu0 %v576_v17, %s3940_s13  ;;  %6597 = vst [vmem:[#allocation11_spill] sm:$0xff] %v4212_v47  ;;  %6598 = vst [vmem:[#allocation12_spill] sm:$0xff] %v4214_v49  ;;  %v4223_v39 = vsel %vm659_vm7, %v4214_v49, %v4212_v47  ;;  %v4232_v55 = vmul.f32 %v4214_v49, %v4120_v33  ;;  %v681_v17 = vpop.permute.xlu0 %680  ;;  %vm1753_vm7 = vcmask 1040384  }
  0xd6   : > { %6599 = vst [vmem:[#allocation13_spill] sm:$0xff] %v4223_v39  ;;  %v4236_v41 = vmul.f32 %v4223_v39, %v4141_v44  ;;  %v4251_v11 = vmul.f32 %v4212_v47, %v4148_v48  ;;  %v685_v35 = vpop.permute.xlu1 %684 }
  0xd7   : > { %v670_v2 = vrot.slane %v4232_v55, 4 }
  0xd8   : > { %v671_v1 = vrot.slane %v4236_v41, 4  ;;  %v672_v13 = vrot.slane %v4251_v11, 4 }
  0xd9   : > { %459 = vrot.lane.b32.xlu0 %v427_v27, %s3939_s12  ;;  %610 = vrot.lane.b32.xlu1 %v571_v29, %s3940_s13  ;;  %v676_v16 = vsel %vm254_vm0, %v4232_v55, %v670_v2 }
  0xda   : > { %v677_v15 = vsel %vm254_vm0, %v4236_v41, %v671_v1  ;;  %v699_v29 = vmul.f32 %v681_v17, %v676_v16  ;;  %v702_v38 = vmul.f32 %v685_v35, %v676_v16  ;;  %v262_v1 = vld [vmem:[%s6505_s1] sm:$0xf] }
  0xdb   : > { %v700_v27 = vmul.f32 %v681_v17, %v677_v15 }
  0xdd   : > { %463 = vrot.lane.b32.xlu0 %v429_v42, %s3939_s12  ;;  %618 = vrot.lane.b32.xlu1 %v575_v45, %s3940_s13  ;;  %v678_v42 = vsel %vm254_vm0, %v4251_v11, %v672_v13  ;;  %v6516_v13 = vmov 7  }
  0xde   : > { %v704_v45 = vmul.f32 %v685_v35, %v678_v42 }
  0xe1   : > { %471 = vrot.lane.b32.xlu0 %v433_v37, %s3939_s12  ;;  %602 = vrot.lane.b32.xlu1 %v567_v50, %s3940_s13  ;;  %v570_v37 = vmul.f32 %v4179_v63, %v541_v46  ;;  %v689_v50 = vpop.permute.xlu1 %688  ;;  %v701_v63 = vmul.f32 %v681_v17, %v678_v42 }
  0xe2   : > { %v706_v51 = vmul.f32 %v689_v50, %v677_v15  ;;  %v707_v19 = vmul.f32 %v689_v50, %v678_v42 }
  0xe5   : > { %475 = vrot.lane.b32.xlu0 %v435_v53, %s3939_s12  ;;  %614 = vrot.lane.b32.xlu1 %v573_v54, %s3940_s13  ;;  %v566_v53 = vmul.f32 %v4171_v59, %v540_v60  ;;  %v693_v54 = vpop.permute.xlu0 %692  ;;  %v705_v59 = vmul.f32 %v689_v50, %v676_v16  ;;  %v261_v60 = vmul.f32 0.00390625, %v4161_v56  ;;  %v6515_v56 = vmov 6  }
  0xe6   : > { %v710_v46 = vmul.f32 %v693_v54, %v678_v42  ;;  %v709_v2 = vmul.f32 %v693_v54, %v677_v15 }
  0xe9   : > { %592 = vrot.lane.b32.xlu0 %v562_v61, %s3940_s13  ;;  %594 = vrot.lane.b32.xlu1 %v563_v43, %s3940_s13  ;;  %v708_v61 = vmul.f32 %v693_v54, %v676_v16  ;;  %v703_v43 = vmul.f32 %v685_v35, %v677_v15 }
  0xed   : > { %604 = vrot.lane.b32.xlu0 %v568_v5, %s3940_s13  ;;  %606 = vrot.lane.b32.xlu1 %v569_v6, %s3940_s13  ;;  %v263_v5 = vmul.f32 %v262_v1, %v261_v60 }
  0xef   : > { %v265_v6 = vsel %vm264_vm8, %v263_v5, 0.0 }
  0xf0   : > { %v266_v16 = vrot.slane %v265_v6, 4 }
  0xf1   : > { %731 = vrot.lane.b32.xlu1 %v700_v27, %s3941_s15  ;;  %729 = vrot.lane.b32.xlu0 %v699_v29, %s3941_s15 }
  0xf5   : > { %735 = vrot.lane.b32.xlu1 %v702_v38, %s3941_s15  ;;  %596 = vrot.lane.b32.xlu0 %v564_v40, %s3940_s13  ;;  %v273_v38 = vld [vmem:[%s6506_s2] sm:$0xf]  ;;  %v6512_v40 = vmov 8  }
  0xf9   : > { %739 = vrot.lane.b32.xlu1 %v704_v45, %s3941_s15  ;;  %608 = vrot.lane.b32.xlu0 %v570_v37, %s3940_s13  ;;  %v4317_v45 = vpop.permute.xlu1 %696 }
  0xfd   : > { %743 = vrot.lane.b32.xlu1 %v706_v51, %s3941_s15  ;;  %600 = vrot.lane.b32.xlu0 %v566_v53, %s3940_s13 }
 0x101   : > { %612 = vrot.lane.b32.xlu0 %v572_v4, %s3940_s13  ;;  %747 = vrot.lane.b32.xlu1 %v708_v61, %s3941_s15 }
 0x105   : > { %733 = vrot.lane.b32.xlu0 %v701_v63, %s3941_s15  ;;  %751 = vrot.lane.b32.xlu1 %v710_v46, %s3941_s15 }
 0x109   : > { %737 = vrot.lane.b32.xlu0 %v703_v43, %s3941_s15  ;;  %3735 = vrot.lane.b32.xlu1 %v4089_v22, %s3942_s16  ;;  %s3953_s16 = smov 94  }
 0x10d   : > { %741 = vrot.lane.b32.xlu0 %v705_v59, %s3941_s15  ;;  %791 = vperm.xlu1 %3739, %v4076_v12  }
 0x111   : > { %745 = vrot.lane.b32.xlu0 %v707_v19, %s3941_s15  ;;  %3742 = vrot.lane.b32.xlu1 %v4104_v25, %s3943_s19  ;;  %v267_v25 = vadd.f32 %v266_v16, %v265_v6 }
 0x113   : > { %v268_v15 = vrot.slane %v267_v25, 2 }
 0x115   : > { %749 = vrot.lane.b32.xlu0 %v709_v2, %s3941_s15  ;;  %803 = vperm.xlu1 %3739, %v4064_v9   ;;  %v269_v17 = vadd.f32 %v268_v15, %v267_v25 }
 0x117   : > { %v270_v27 = vrot.slane %v269_v17, 1 }
 0x119   : > { %934 = vperm.xlu0 %3740, %v4058_v8   ;;  %3747 = vset.pattern.permute.xlu1 %v6515_v56  ;;  %v271_v29 = vadd.f32 %v270_v27, %v269_v17 }
 0x11a   : > { %1069 = vperm.xlu1 %3747, %v4058_v8  }
 0x11b   : > { %v272_v35 = vmax.f32 %v271_v29, 0.0  ;;  %v3948_v29 = vmov 9  }
 0x11d   : > { %926 = vperm.xlu0 %3740, %v4076_v12  }
 0x11e   : > { %3748 = vset.pattern.permute.xlu1 %v6517_v28 }
 0x11f   : > { %938 = vperm.xlu1 %3748, %v4064_v9  }
 0x121   : > { %3746 = vset.pattern.permute.xlu0 %v6511_v26 }
 0x123   : > { %3749 = vset.pattern.permute.xlu1 %v6515_v56  ;;  %v4323_v50 = vpop.permute.xlu1 %455 }
 0x124   : > { %1061 = vperm.xlu1 %3749, %v4076_v12  }
 0x127   : > { %v4329_v53 = vpop.permute.xlu1 %461 }
 0x128   : > { %3751 = vrot.lane.b32.xlu1 %v4089_v22, %s3945_s20  ;;  %v274_v22 = vmul.f32 %v273_v38, %v272_v35  ;;  %s3954_s20 = smov [#allocation3]  }
 0x129   : > { %3755 = vset.pattern.permute.xlu1 %v6517_v28 }
 0x12a   : > { %v275_v42 = vsel %vm264_vm8, %v274_v22, 0.0  ;;  %vm1756_vm8 = vcmask 1041408  }
 0x12b   : > { %v4319_v37 = vpop.permute.xlu0 %467 }
 0x12c   : > { %930 = vperm.xlu1 %3755, %v4052_v7  }
 0x12f   : > { %v4336_v4 = vpop.permute.xlu1 %473 }
 0x130   : > { %3757 = vset.pattern.permute.xlu1 %v6516_v13  ;;  %6600 = vst [vmem:[#allocation14_spill] sm:$0xff] %v4336_v4 }
 0x131   : > { %1172 = vperm.xlu1 %3757, %v4076_v12  }
 0x133   : > { %v4325_v51 = vpop.permute.xlu0 %479  ;;  %v4342_v63 = vpop.permute.xlu1 %481 }
 0x135   : > { %3758 = vset.pattern.permute.xlu1 %v6512_v40 }
 0x136   : > { %1315 = vperm.xlu1 %3758, %v4058_v8  }
 0x137   : > { %v4331_v54 = vpop.permute.xlu0 %483  ;;  %v4348_v43 = vpop.permute.xlu1 %457 }
 0x13a   : > { %3759 = vset.pattern.permute.xlu1 %v6516_v13 }
 0x13b   : > { %1184 = vperm.xlu1 %3759, %v4064_v9   ;;  %v4354_v19 = vpop.permute.xlu1 %465 }
 0x13c   : > { %276 = vadd.xlane.f32.xlu0 %v275_v42  ;;  %6601 = vst [vmem:[#allocation15_spill] sm:$0xff] %v4354_v19 }
 0x13f   : > { %3761 = vset.pattern.permute.xlu1 %v6511_v26  ;;  %v4360_v1 = vpop.permute.xlu1 %469 }
 0x140   : > { %807 = vperm.xlu1 %3761, %v4070_v10  }
 0x143   : > { %v4338_v61 = vpop.permute.xlu0 %616  ;;  %v4366_v5 = vpop.permute.xlu1 %477 }
 0x144   : > { %3762 = vset.pattern.permute.xlu1 %v6516_v13  ;;  %6602 = vst [vmem:[#allocation16_spill] sm:$0xff] %v4366_v5 }
 0x145   : > { %1176 = vperm.xlu1 %3762, %v4052_v7  }
 0x147   : > { %v4344_v46 = vpop.permute.xlu0 %620  ;;  %v4371_v16 = vpop.permute.xlu1 %598 }
 0x148   : > { %6604 = vst [vmem:[#allocation18_spill] sm:$0xff] %v4371_v16 }
 0x149   : > { %3763 = vset.pattern.permute.xlu1 %v6517_v28 }
 0x14a   : > { %942 = vperm.xlu1 %3763, %v4070_v10  }
 0x14b   : > { %v4350_v59 = vpop.permute.xlu0 %459  ;;  %v4375_v15 = vpop.permute.xlu1 %610 }
 0x14c   : > { %6606 = vst [vmem:[#allocation20_spill] sm:$0xff] %v4375_v15 }
 0x14e   : > { %3765 = vset.pattern.permute.xlu1 %v6515_v56 }
 0x14f   : > { %1077 = vperm.xlu1 %3765, %v4070_v10   ;;  %v4356_v60 = vpop.permute.xlu0 %463  ;;  %v4379_v17 = vpop.permute.xlu1 %618 }
 0x152   : > { %799 = vperm.xlu0 %3746, %v4058_v8  }
 0x153   : > { %3766 = vset.pattern.permute.xlu1 %v6512_v40  ;;  %v4362_v2 = vpop.permute.xlu0 %471  ;;  %v4383_v35 = vpop.permute.xlu1 %602 }
 0x154   : > { %1323 = vperm.xlu1 %3766, %v4070_v10   ;;  %6608 = vst [vmem:[#allocation22_spill] sm:$0xff] %v4383_v35 }
 0x156   : > { %795 = vperm.xlu0 %3746, %v4052_v7  }
 0x157   : > { %v4368_v6 = vpop.permute.xlu0 %475 }
 0x158   : > { %6603 = vst [vmem:[#allocation17_spill] sm:$0xff] %v4368_v6  ;;  %3767 = vset.pattern.permute.xlu1 %v3948_v29 }
 0x15a   : > { %3756 = vset.pattern.permute.xlu0 %v6515_v56 }
 0x15b   : > { %1073 = vperm.xlu0 %3756, %v4064_v9   ;;  %v4373_v25 = vpop.permute.xlu0 %592 }
 0x15c   : > { %6605 = vst [vmem:[#allocation19_spill] sm:$0xff] %v4373_v25 }
 0x15f   : > { %1065 = vperm.xlu0 %3756, %v4052_v7  }
 0x163   : > { %3760 = vset.pattern.permute.xlu0 %v6512_v40 }
 0x164   : > { %1307 = vperm.xlu0 %3760, %v4076_v12  }
 0x168   : > { %1319 = vperm.xlu0 %3760, %v4064_v9  }
 0x16c   : > { %1311 = vperm.xlu0 %3760, %v4052_v7   ;;  %v4377_v7 = vpop.permute.xlu0 %604 }
 0x170   : > { %3764 = vset.pattern.permute.xlu0 %v6516_v13  ;;  %v4381_v27 = vpop.permute.xlu0 %729 }
 0x171   : > { %1180 = vperm.xlu0 %3764, %v4058_v8   ;;  %6607 = vst [vmem:[#allocation21_spill] sm:$0xff] %v4381_v27 }
 0x174   : > { %v4385_v38 = vpop.permute.xlu0 %596 }
 0x175   : > { %1188 = vperm.xlu0 %3764, %v4070_v10   ;;  %6609 = vst [vmem:[#allocation23_spill] sm:$0xff] %v4385_v38  ;;  %v4387_v10 = vpop.permute.xlu1 %614 }
 0x176   : > { %6610 = vst [vmem:[#allocation24_spill] sm:$0xff] %v4387_v10 }
 0x178   : > { %v4389_v22 = vpop.permute.xlu0 %608 }
 0x179   : > { %3768 = vset.pattern.permute.xlu0 %v3948_v29  ;;  %6611 = vst [vmem:[#allocation25_spill] sm:$0xff] %v4389_v22  ;;  %v4391_v42 = vpop.permute.xlu1 %594 }
 0x17a   : > { %6612 = vst [vmem:[#allocation26_spill] sm:$0xff] %v4391_v42 }
 0x17c   : > { %v4393_v26 = vpop.permute.xlu0 %600 }
 0x17d   : > { %6613 = vst [vmem:[#allocation27_spill] sm:$0xff] %v4393_v26  ;;  %v4395_v40 = vpop.permute.xlu1 %606 }
 0x180   : > { %v4397_v0 = vpop.permute.xlu0 %612 }
 0x181   : > { %6614 = vst [vmem:[#allocation28_spill] sm:$0xff] %v4397_v0  ;;  %v4399_v56 = vpop.permute.xlu1 %731 }
 0x182   : > { %6615 = vst [vmem:[#allocation29_spill] sm:$0xff] %v4399_v56 }
 0x184   : > { %v4401_v13 = vpop.permute.xlu0 %733 }
 0x185   : > { %6616 = vst [vmem:[#allocation30_spill] sm:$0xff] %v4401_v13  ;;  %v4403_v29 = vpop.permute.xlu1 %735 }
 0x186   : > { %6617 = vst [vmem:[#allocation31_spill] sm:$0xff] %v4403_v29 }
 0x188   : > { %v4405_v28 = vpop.permute.xlu0 %737 }
 0x189   : > { %6618 = vst [vmem:[#allocation32_spill] sm:$0xff] %v4405_v28  ;;  %v4407_v21 = vpop.permute.xlu1 %739 }
 0x18a   : > { %6619 = vst [vmem:[#allocation33_spill] sm:$0xff] %v4407_v21 }
 0x18c   : > { %v4409_v18 = vpop.permute.xlu0 %741 }
 0x18d   : > { %6620 = vst [vmem:[#allocation34_spill] sm:$0xff] %v4409_v18  ;;  %v4411_v14 = vpop.permute.xlu1 %743 }
 0x190   : > { %v4413_v57 = vpop.permute.xlu0 %745 }
 0x191   : > { %6621 = vst [vmem:[#allocation35_spill] sm:$0xff] %v4413_v57  ;;  %v4415_v3 = vpop.permute.xlu1 %747 }
 0x192   : > { %6622 = vst [vmem:[#allocation36_spill] sm:$0xff] %v4415_v3 }
 0x194   : > { %v4417_v20 = vpop.permute.xlu0 %749 }
 0x195   : > { %6623 = vst [vmem:[#allocation37_spill] sm:$0xff] %v4417_v20  ;;  %v4419_v47 = vpop.permute.xlu1 %751 }
 0x196   : > { %6624 = vst [vmem:[#allocation38_spill] sm:$0xff] %v4419_v47 }
 0x198   : > { %v935_v39 = vpop.permute.xlu0 %934 }
 0x199   : > { %v3736_v29 = vpop.permute.xlu1 %3735 }
 0x19a   : > { %v4425_v28 = vunpack.i.h.bf16 %v3736_v29  ;;  %v4427_v21 = vunpack.i.l.bf16 %v3736_v29 }
 0x19c   : > { %v4421_v49 = vpop.permute.xlu0 %926  ;;  %6626 = vst [vmem:[#allocation40_spill] sm:$0xff] %v4425_v28  ;;  %6627 = vst [vmem:[#allocation41_spill] sm:$0xff] %v4427_v21  ;;  %v4431_v15 = vsel %vm905_vm9, %v4427_v21, %v4425_v28  ;;  %v4439_v29 = vmul.f32 %v4427_v21, %v4120_v33  ;;  %vm1759_vm9 = vcmask 1042432  }
 0x19d   : > { %6628 = vst [vmem:[#allocation42_spill] sm:$0xff] %v4431_v15  ;;  %v792_v47 = vpop.permute.xlu1 %791 }
 0x19e   : > { %v810_v35 = vmul.f32 %v792_v47, %v4127_v36  ;;  %v916_v21 = vrot.slane %v4439_v29, 4  ;;  %v812_v26 = vmul.f32 %v792_v47, %v4169_v58 }
 0x1c5   : > { %v4423_v13 = vpop.xlane.xlu0 %276 }
 0x1c6   : > { %6625 = vst [vmem:[#allocation39_spill] sm:$0xff] %v4423_v13  ;;  %v4443_v13 = vmul.f32 %v4431_v15, %v4141_v44  ;;  %v811_v15 = vmul.f32 %v792_v47, %v4157_v52 }
 0x1c8   : > { %v917_v16 = vrot.slane %v4443_v13, 4 }
 0x1cd   : > { %v800_v10 = vpop.permute.xlu0 %799 }
 0x1ce   : > { %v816_v3 = vmul.f32 %v800_v10, %v4127_v36  ;;  %v817_v20 = vmul.f32 %v800_v10, %v4157_v52  ;;  %v818_v0 = vmul.f32 %v800_v10, %v4169_v58  ;;  %v4466_v10 = vsel %vm254_vm0, %v4443_v13, %v917_v16 }
 0x1cf   : > { %v952_v38 = vmul.f32 %v935_v39, %v4466_v10 }
 0x1d0   : > { %854 = vrot.lane.b32.xlu0 %v817_v20, %s3949_s29  ;;  %852 = vrot.lane.b32.xlu1 %v816_v3, %s3949_s29  ;;  %v4451_v20 = vmul.f32 %v4425_v28, %v4148_v48  ;;  %v3743_v3 = vpop.permute.xlu1 %3742 }
 0x1d1   : > { %v796_v47 = vpop.permute.xlu0 %795  ;;  %v4470_v56 = vunpack.i.h.bf16 %v3743_v3 }
 0x1d2   : > { %v815_v22 = vmul.f32 %v796_v47, %v4169_v58 }
 0x1d3   : > { %6629 = vst [vmem:[#allocation43_spill] sm:$0xff] %v4470_v56 }
 0x1d4   : > { %840 = vrot.lane.b32.xlu0 %v810_v35, %s3949_s29  ;;  %856 = vrot.lane.b32.xlu1 %v818_v0, %s3949_s29  ;;  %v918_v35 = vrot.slane %v4451_v20, 4  ;;  %v4462_v0 = vsel %vm254_vm0, %v4439_v29, %v916_v21  ;;  %v804_v27 = vpop.permute.xlu1 %803 }
 0x1d5   : > { %v951_v28 = vmul.f32 %v935_v39, %v4462_v0 }
 0x1d6   : > { %v4478_v21 = vsel %vm254_vm0, %v4451_v20, %v918_v35 }
 0x1d7   : > { %v953_v16 = vmul.f32 %v935_v39, %v4478_v21  ;;  %v821_v39 = vmul.f32 %v804_v27, %v4169_v58 }
 0x1d8   : > { %844 = vrot.lane.b32.xlu0 %v812_v26, %s3949_s29  ;;  %842 = vrot.lane.b32.xlu1 %v811_v15, %s3949_s29  ;;  %v4472_v26 = vunpack.i.l.bf16 %v3743_v3  ;;  %v819_v15 = vmul.f32 %v804_v27, %v4127_v36  ;;  %v820_v3 = vmul.f32 %v804_v27, %v4157_v52  ;;  %v946_v27 = vmul.f32 %v4421_v49, %v4466_v10 }
 0x1da   : > { %6630 = vst [vmem:[#allocation44_spill] sm:$0xff] %v4472_v26  ;;  %v4484_v57 = vsel %vm1040_vm10, %v4472_v26, %v4470_v56  ;;  %vm1764_vm10 = vcmask 1044480  }
 0x1db   : > { %6631 = vst [vmem:[#allocation45_spill] sm:$0xff] %v4484_v57  ;;  %v4498_v35 = vmul.f32 %v4484_v57, %v4141_v44  ;;  %v1070_v57 = vpop.permute.xlu1 %1069 }
 0x1dc   : > { %989 = vrot.lane.b32.xlu0 %v952_v38, %s3950_s9  ;;  %987 = vrot.lane.b32.xlu1 %v951_v28, %s3950_s9  ;;  %v4490_v28 = vmul.f32 %v4472_v26, %v4120_v33  ;;  %v4492_v38 = vpop.permute.xlu0 %1073  ;;  %v945_v26 = vmul.f32 %v4421_v49, %v4462_v0 }
 0x1dd   : > { %v1052_v5 = vrot.slane %v4498_v35, 4 }
 0x1df   : > { %v4526_v25 = vsel %vm254_vm0, %v4498_v35, %v1052_v5  ;;  %v813_v5 = vmul.f32 %v796_v47, %v4127_v36  ;;  %v939_v42 = vpop.permute.xlu1 %938 }
 0x1e0   : > { %858 = vrot.lane.b32.xlu0 %v819_v15, %s3949_s29  ;;  %991 = vrot.lane.b32.xlu1 %v953_v16, %s3950_s9  ;;  %v4504_v16 = vmul.f32 %v4470_v56, %v4148_v48  ;;  %v1051_v15 = vrot.slane %v4490_v28, 4  ;;  %v4512_v4 = vpop.permute.xlu0 %1065  ;;  %v947_v56 = vmul.f32 %v4421_v49, %v4478_v21 }
 0x1e3   : > { %v1062_v19 = vpop.permute.xlu1 %1061 }
 0x1e4   : > { %862 = vrot.lane.b32.xlu0 %v821_v39, %s3949_s29  ;;  %860 = vrot.lane.b32.xlu1 %v820_v3, %s3949_s29  ;;  %v1053_v3 = vrot.slane %v4504_v16, 4  ;;  %v4519_v39 = vsel %vm254_vm0, %v4490_v28, %v1051_v15  ;;  %v4534_v15 = vpop.permute.xlu0 %1307 }
 0x1e5   : > { %v1086_v6 = vmul.f32 %v1070_v57, %v4519_v39 }
 0x1e8   : > { %977 = vrot.lane.b32.xlu0 %v946_v27, %s3950_s9  ;;  %975 = vrot.lane.b32.xlu1 %v945_v26, %s3950_s9  ;;  %v4532_v26 = vsel %vm254_vm0, %v4504_v16, %v1053_v3  ;;  %v1087_v27 = vmul.f32 %v1070_v57, %v4526_v25  ;;  %v954_v3 = vmul.f32 %v939_v42, %v4462_v0 }
 0x1e9   : > { %v1088_v49 = vmul.f32 %v1070_v57, %v4532_v26 }
 0x1ec   : > { %1122 = vrot.lane.b32.xlu0 %v1086_v6, %s3951_s10  ;;  %979 = vrot.lane.b32.xlu1 %v947_v56, %s3950_s9  ;;  %v814_v6 = vmul.f32 %v796_v47, %v4157_v52  ;;  %v4542_v56 = vpop.permute.xlu0 %1319 }
 0x1f0   : > { %1126 = vrot.lane.b32.xlu0 %v1088_v49, %s3951_s10  ;;  %1124 = vrot.lane.b32.xlu1 %v1087_v27, %s3951_s10  ;;  %v4550_v57 = vpop.permute.xlu0 %1311  ;;  %v955_v27 = vmul.f32 %v939_v42, %v4466_v10  ;;  %v956_v49 = vmul.f32 %v939_v42, %v4478_v21 }
 0x1f4   : > { %848 = vrot.lane.b32.xlu0 %v814_v6, %s3949_s29  ;;  %846 = vrot.lane.b32.xlu1 %v813_v5, %s3949_s29  ;;  %v1080_v5 = vmul.f32 %v1062_v19, %v4519_v39  ;;  %v1081_v6 = vmul.f32 %v1062_v19, %v4526_v25  ;;  %v1181_v47 = vpop.permute.xlu0 %1180 }
 0x1f5   : > { %v1197_v18 = vmul.f32 %v1181_v47, %v4127_v36  ;;  %v1198_v42 = vmul.f32 %v1181_v47, %v4157_v52 }
 0x1f8   : > { %993 = vrot.lane.b32.xlu0 %v954_v3, %s3950_s9  ;;  %850 = vrot.lane.b32.xlu1 %v815_v22, %s3949_s29  ;;  %v3752_v22 = vpop.permute.xlu1 %3751  ;;  %v1082_v3 = vmul.f32 %v1062_v19, %v4532_v26 }
 0x1f9   : > { %v4571_v19 = vunpack.i.h.bf16 %v3752_v22 }
 0x1fb   : > { %6632 = vst [vmem:[#allocation46_spill] sm:$0xff] %v4571_v19 }
 0x1fc   : > { %997 = vrot.lane.b32.xlu0 %v956_v49, %s3950_s9  ;;  %995 = vrot.lane.b32.xlu1 %v955_v27, %s3950_s9  ;;  %v1199_v27 = vmul.f32 %v1181_v47, %v4169_v58  ;;  %v931_v49 = vpop.permute.xlu1 %930  ;;  %v1090_v47 = vmul.f32 %v4492_v38, %v4526_v25 }
 0x200   : > { %1112 = vrot.lane.b32.xlu0 %v1081_v6, %s3951_s10  ;;  %1110 = vrot.lane.b32.xlu1 %v1080_v5, %s3951_s10  ;;  %v948_v5 = vmul.f32 %v931_v49, %v4462_v0  ;;  %v4573_v6 = vunpack.i.l.bf16 %v3752_v22  ;;  %v1173_v22 = vpop.permute.xlu1 %1172 }
 0x202   : > { %6633 = vst [vmem:[#allocation47_spill] sm:$0xff] %v4573_v6  ;;  %v4581_v0 = vsel %vm1286_vm11, %v4573_v6, %v4571_v19  ;;  %vm1767_vm11 = vcmask 1045504  }
 0x203   : > { %6634 = vst [vmem:[#allocation48_spill] sm:$0xff] %v4581_v0 }
 0x204   : > { %1114 = vrot.lane.b32.xlu1 %v1082_v3, %s3951_s10  ;;  %1233 = vrot.lane.b32.xlu0 %v1197_v18, %s3952_s11  ;;  %v949_v18 = vmul.f32 %v931_v49, %v4466_v10  ;;  %v950_v3 = vmul.f32 %v931_v49, %v4478_v21  ;;  %v4591_v10 = vmul.f32 %v4573_v6, %v4120_v33 }
 0x205   : > { %v4595_v21 = vmul.f32 %v4581_v0, %v4141_v44  ;;  %v4604_v49 = vmul.f32 %v4571_v19, %v4148_v48 }
 0x208   : > { %1235 = vrot.lane.b32.xlu1 %v1198_v42, %s3952_s11  ;;  %1237 = vrot.lane.b32.xlu0 %v1199_v27, %s3952_s11  ;;  %v1191_v42 = vmul.f32 %v1173_v22, %v4127_v36  ;;  %v1091_v27 = vmul.f32 %v4492_v38, %v4532_v26 }
 0x20c   : > { %1426 = vperm.xlu1 %3767, %v4058_v8   ;;  %981 = vrot.lane.b32.xlu0 %v948_v5, %s3950_s9  ;;  %v1089_v8 = vmul.f32 %v4492_v38, %v4519_v39  ;;  %v1297_v5 = vrot.slane %v4591_v10, 4  ;;  %v1299_v38 = vrot.slane %v4604_v49, 4 }
 0x210   : > { %983 = vrot.lane.b32.xlu1 %v949_v18, %s3950_s9  ;;  %985 = vrot.lane.b32.xlu0 %v950_v3, %s3950_s9  ;;  %v1298_v18 = vrot.slane %v4595_v21, 4  ;;  %v1192_v3 = vmul.f32 %v1173_v22, %v4157_v52 }
 0x214   : > { %1128 = vrot.lane.b32.xlu1 %v1089_v8, %s3951_s10  ;;  %1130 = vrot.lane.b32.xlu0 %v1090_v47, %s3951_s10  ;;  %v1193_v8 = vmul.f32 %v1173_v22, %v4169_v58  ;;  %v1316_v47 = vpop.permute.xlu1 %1315 }
 0x218   : > { %1132 = vrot.lane.b32.xlu1 %v1091_v27, %s3951_s10  ;;  %1221 = vrot.lane.b32.xlu0 %v1191_v42, %s3952_s11  ;;  %v4615_v42 = vsel %vm254_vm0, %v4591_v10, %v1297_v5  ;;  %v4619_v27 = vsel %vm254_vm0, %v4595_v21, %v1298_v18  ;;  %v1185_v22 = vpop.permute.xlu1 %1184  ;;  %v711_v18 = vmul.f32 %v4317_v45, %v4232_v55 }
 0x219   : > { %v1332_v6 = vmul.f32 %v1316_v47, %v4615_v42  ;;  %v1333_v19 = vmul.f32 %v1316_v47, %v4619_v27  ;;  %v1083_v55 = vmul.f32 %v4512_v4, %v4519_v39 }
 0x21c   : > { %1223 = vrot.lane.b32.xlu1 %v1192_v3, %s3952_s11  ;;  %1225 = vrot.lane.b32.xlu0 %v1193_v8, %s3952_s11  ;;  %v4627_v3 = vsel %vm254_vm0, %v4604_v49, %v1299_v38  ;;  %v713_v8 = vmul.f32 %v4317_v45, %v4251_v11  ;;  %v808_v0 = vpop.permute.xlu1 %807  ;;  %v1202_v11 = vmul.f32 %v1185_v22, %v4169_v58 }
 0x21d   : > { %v1334_v5 = vmul.f32 %v1316_v47, %v4627_v3  ;;  %v1327_v38 = vmul.f32 %v4534_v15, %v4619_v27 }
 0x220   : > { %1368 = vrot.lane.b32.xlu1 %v1332_v6, %s3953_s16  ;;  %1370 = vrot.lane.b32.xlu0 %v1333_v19, %s3953_s16  ;;  %v712_v19 = vmul.f32 %v4317_v45, %v4236_v41  ;;  %v1084_v6 = vmul.f32 %v4512_v4, %v4526_v25  ;;  %v1177_v47 = vpop.permute.xlu1 %1176  ;;  %v1085_v45 = vmul.f32 %v4512_v4, %v4532_v26 }
 0x221   : > { %v1201_v25 = vmul.f32 %v1185_v22, %v4157_v52  ;;  %v823_v4 = vmul.f32 %v808_v0, %v4141_v44 }
 0x224   : > { %1372 = vrot.lane.b32.xlu1 %v1334_v5, %s3953_s16  ;;  %1418 = vperm.xlu0 %3768, %v4076_v12   ;;  %v1200_v12 = vmul.f32 %v1185_v22, %v4127_v36  ;;  %v943_v41 = vpop.permute.xlu1 %942  ;;  %v1326_v5 = vmul.f32 %v4534_v15, %v4615_v42  ;;  %v1328_v22 = vmul.f32 %v4534_v15, %v4627_v3 }
 0x225   : > { %v824_v15 = vmul.f32 %v808_v0, %v4148_v48 }
 0x228   : > { %753 = vrot.lane.b32.xlu1 %v711_v18, %s3941_s15  ;;  %757 = vrot.lane.b32.xlu0 %v713_v8, %s3941_s15  ;;  %v4657_v39 = vpop.permute.xlu1 %1077  ;;  %v4670_v18 = vpop.permute.xlu0 %1188  ;;  %v822_v8 = vmul.f32 %v808_v0, %v4120_v33 }
 0x22c   : > { %755 = vrot.lane.b32.xlu1 %v712_v19, %s3941_s15  ;;  %1118 = vrot.lane.b32.xlu0 %v1084_v6, %s3951_s10  ;;  %v4666_v26 = vpop.permute.xlu1 %1323  ;;  %v1194_v19 = vmul.f32 %v1177_v47, %v4127_v36  ;;  %v1195_v36 = vmul.f32 %v1177_v47, %v4157_v52  ;;  %v3865_v52 = vld [vmem:[%s6507_s3 + $0x8] sm:$0xff] }
 0x230   : > { %1116 = vrot.lane.b32.xlu1 %v1083_v55, %s3951_s10  ;;  %1239 = vrot.lane.b32.xlu0 %v1200_v12, %s3952_s11  ;;  %v1196_v12 = vmul.f32 %v1177_v47, %v4169_v58  ;;  %v1335_v58 = vmul.f32 %v4542_v56, %v4615_v42  ;;  %v958_v47 = vmul.f32 %v943_v41, %v4443_v13 }
 0x234   : > { %1120 = vrot.lane.b32.xlu1 %v1085_v45, %s3951_s10  ;;  %1243 = vrot.lane.b32.xlu0 %v1202_v11, %s3952_s11  ;;  %v1336_v45 = vmul.f32 %v4542_v56, %v4619_v27 }
 0x238   : > { %1241 = vrot.lane.b32.xlu1 %v1201_v25, %s3952_s11  ;;  %1358 = vrot.lane.b32.xlu0 %v1327_v38, %s3953_s16 }
 0x23c   : > { %1356 = vrot.lane.b32.xlu1 %v1326_v5, %s3953_s16  ;;  %1430 = vperm.xlu0 %3768, %v4064_v9  }
 0x240   : > { %1360 = vrot.lane.b32.xlu1 %v1328_v22, %s3953_s16  ;;  %866 = vrot.lane.b32.xlu0 %v823_v4, %s3949_s29  ;;  %v1337_v4 = vmul.f32 %v4542_v56, %v4627_v3  ;;  %v959_v56 = vmul.f32 %v943_v41, %v4451_v20 }
 0x242   : > { %v4676_v6 = vpop.permute.xlu1 %852  ;;  %v4678_v9 = vpop.permute.xlu0 %854 }
 0x244   : > { %864 = vrot.lane.b32.xlu1 %v822_v8, %s3949_s29  ;;  %1227 = vrot.lane.b32.xlu0 %v1194_v19, %s3952_s11  ;;  %v6635_v19 = vmov 1  }
 0x246   : > { %v4684_v55 = vpop.permute.xlu1 %856  ;;  %v4686_v11 = vpop.permute.xlu0 %840 }
 0x248   : > { %868 = vrot.lane.b32.xlu1 %v824_v15, %s3949_s29  ;;  %1231 = vrot.lane.b32.xlu0 %v1196_v12, %s3952_s11  ;;  %v957_v15 = vmul.f32 %v943_v41, %v4439_v29  ;;  %v1329_v12 = vmul.f32 %v4550_v57, %v4615_v42  ;;  %v1093_v29 = vmul.f32 %v4657_v39, %v4498_v35 }
 0x249   : > { %v1330_v42 = vmul.f32 %v4550_v57, %v4619_v27  ;;  %v1203_v41 = vmul.f32 %v4670_v18, %v4120_v33  ;;  %v1205_v27 = vmul.f32 %v4670_v18, %v4148_v48  ;;  %v1340_v48 = vmul.f32 %v4666_v26, %v4604_v49 }
 0x24a   : > { %v4693_v25 = vpop.permute.xlu1 %842  ;;  %v4695_v38 = vpop.permute.xlu0 %844 }
 0x24c   : > { %1229 = vrot.lane.b32.xlu1 %v1195_v36, %s3952_s11  ;;  %1376 = vrot.lane.b32.xlu0 %v1336_v45, %s3953_s16  ;;  %v1331_v45 = vmul.f32 %v4550_v57, %v4627_v3  ;;  %v1092_v3 = vmul.f32 %v4657_v39, %v4490_v28  ;;  %v1094_v57 = vmul.f32 %v4657_v39, %v4504_v16 }
 0x24e   : > { %v4701_v0 = vpop.permute.xlu1 %987  ;;  %v4703_v5 = vpop.permute.xlu0 %989 }
 0x250   : > { %1374 = vrot.lane.b32.xlu1 %v1335_v58, %s3953_s16  ;;  %1422 = vperm.xlu0 %3768, %v3865_v52  }
 0x252   : > { %v4712_v22 = vpop.permute.xlu1 %991  ;;  %v4714_v8 = vpop.permute.xlu0 %858 }
 0x254   : > { %1378 = vrot.lane.b32.xlu1 %v1337_v4, %s3953_s16  ;;  %1001 = vrot.lane.b32.xlu0 %v958_v47, %s3950_s9 }
 0x255   : > { %3770 = vset.pattern.permute.xlu0 %v6635_v19 }
 0x256   : > { %v4722_v36 = vpop.permute.xlu1 %860  ;;  %v4724_v13 = vpop.permute.xlu0 %862 }
 0x258   : > { %999 = vrot.lane.b32.xlu1 %v957_v15, %s3950_s9  ;;  %1362 = vrot.lane.b32.xlu0 %v1329_v12, %s3953_s16  ;;  %v1338_v15 = vmul.f32 %v4666_v26, %v4591_v10  ;;  %v1204_v12 = vmul.f32 %v4670_v18, %v4141_v44  ;;  %v3866_v10 = vld [vmem:[%s6507_s3 + $0x20] sm:$0xf] }
 0x25a   : > { %v4731_v58 = vpop.permute.xlu1 %975  ;;  %v4733_v52 = vpop.permute.xlu0 %977 }
 0x25c   : > { %1003 = vrot.lane.b32.xlu1 %v959_v56, %s3950_s9  ;;  %1366 = vrot.lane.b32.xlu0 %v1331_v45, %s3953_s16  ;;  %v1339_v45 = vmul.f32 %v4666_v26, %v4595_v21  ;;  %v335_v21 = vmul.f32 %v4099_v24, %v4141_v44 }
 0x25e   : > { %v4741_v47 = vpop.permute.xlu1 %979  ;;  %v4743_v20 = vpop.permute.xlu0 %1122 }
 0x260   : > { %1364 = vrot.lane.b32.xlu1 %v1330_v42, %s3953_s16  ;;  %1136 = vrot.lane.b32.xlu0 %v1093_v29, %s3951_s10  ;;  %v6638_v42 = vmov 2  }
 0x262   : > { %v4751_v4 = vpop.permute.xlu1 %1124  ;;  %v4753_v35 = vpop.permute.xlu0 %1126 }
 0x264   : > { %1134 = vrot.lane.b32.xlu1 %v1092_v3, %s3951_s10  ;;  %1245 = vrot.lane.b32.xlu0 %v1203_v41, %s3952_s11 }
 0x266   : > { %v4761_v19 = vpop.permute.xlu1 %846  ;;  %v4763_v28 = vpop.permute.xlu0 %848 }
 0x268   : > { %1138 = vrot.lane.b32.xlu1 %v1094_v57, %s3951_s10  ;;  %1249 = vrot.lane.b32.xlu0 %v1205_v27, %s3952_s11 }
 0x26a   : > { %v4771_v56 = vpop.permute.xlu0 %993  ;;  %v4773_v16 = vpop.permute.xlu1 %850 }
 0x26c   : > { %1247 = vrot.lane.b32.xlu1 %v1204_v12, %s3952_s11  ;;  %1380 = vrot.lane.b32.xlu0 %v1338_v15, %s3953_s16  ;;  %v334_v15 = vmul.f32 %v4097_v23, %v4120_v33 }
 0x26e   : > { %v4779_v39 = vpop.permute.xlu0 %997  ;;  %v4785_v18 = vpop.permute.xlu1 %995 }
 0x26f   : > { %6636 = vst [vmem:[#allocation49_spill] sm:$0xff] %v4779_v39 }
 0x270   : > { %1434 = vperm.xlu1 %3767, %v3866_v10   ;;  %1384 = vrot.lane.b32.xlu0 %v1340_v48, %s3953_s16  ;;  %v343_v48 = vrot.slane %v334_v15, 4  ;;  %v344_v10 = vrot.slane %v335_v21, 4 }
 0x272   : > { %v4789_v29 = vpop.permute.xlu0 %1112  ;;  %v4795_v3 = vpop.permute.xlu1 %1110 }
 0x273   : > { %6637 = vst [vmem:[#allocation50_spill] sm:$0xff] %v4789_v29  ;;  %6639 = vst [vmem:[#allocation51_spill] sm:$0xff] %v4795_v3  ;;  %v383_v29 = vmul.f32 %v4122_v34, %v335_v21 }
 0x274   : > { %1382 = vrot.lane.b32.xlu1 %v1339_v45, %s3953_s16 }
 0x275   : > { %3769 = vset.pattern.permute.xlu1 %v6638_v42  ;;  %v347_v42 = vsel %vm254_vm0, %v334_v15, %v343_v48  ;;  %v494_v48 = vsel %vm485_vm12, %v4325_v51, %v4342_v63  ;;  %v495_v51 = vsel %vm485_vm12, %v4342_v63, %v4331_v54  ;;  %v632_v54 = vsel %vm6554_vm13, %v4379_v17, %v4344_v46 }
 0x276   : > { %v4793_v49 = vpop.permute.xlu0 %1233  ;;  %v4799_v57 = vpop.permute.xlu1 %1114  ;;  %v378_v44 = vmul.f32 %v4115_v31, %v347_v42  ;;  %v380_v24 = vmul.f32 %v4117_v32, %v347_v42  ;;  %v488_v63 = vsel %vm485_vm12, %v4329_v53, %v4356_v60 }
 0x277   : > { %6640 = vst [vmem:[#allocation52_spill] sm:$0xff] %v4799_v57  ;;  %v348_v57 = vsel %vm254_vm0, %v335_v21, %v344_v10  ;;  %v486_v10 = vsel %vm485_vm12, %v4323_v50, %v4348_v43  ;;  %v487_v50 = vsel %vm485_vm12, %v4348_v43, %v4350_v59  ;;  %v6645_v21 = vld [vmem:[#allocation34_spill] sm:$0xff] }
 0x278   : > { %v377_v33 = vmul.f32 %v4113_v30, %v348_v57  ;;  %v379_v23 = vmul.f32 %v4115_v31, %v348_v57  ;;  %v374_v31 = vmul.f32 %v4177_v62, %v347_v42  ;;  %v375_v39 = vmul.f32 %v4177_v62, %v348_v57 }
 0x27a   : > { %v4797_v41 = vpop.permute.xlu0 %1237  ;;  %v4807_v26 = vpop.permute.xlu1 %1235 }
 0x27e   : > { %v4801_v27 = vpop.permute.xlu0 %981 }
 0x27f   : > { %6641 = vst [vmem:[#allocation53_spill] sm:$0xff] %v4801_v27  ;;  %v376_v27 = vmul.f32 %v4113_v30, %v347_v42  ;;  %v382_v30 = vmul.f32 %v4122_v34, %v334_v15  ;;  %v631_v34 = vsel %vm6554_vm13, %v4338_v61, %v4379_v17  ;;  %v507_v61 = vadd.f32 %v487_v50, %v375_v39  ;;  %v6646_v17 = vld [vmem:[#allocation15_spill] sm:$0xff]  ;;  %v6647_v39 = vld [vmem:[#allocation25_spill] sm:$0xff] }
 0x280   : > { %v764_v42 = vsel %vm759_vm14, %v6645_v21, %v4411_v14  ;;  %v489_v53 = vsel %vm485_vm12, %v4356_v60, %v6646_v17  ;;  %v6650_v50 = vld [vmem:[#allocation17_spill] sm:$0xff] }
 0x281   : > { %v514_v15 = vadd.f32 %v494_v48, %v382_v30  ;;  %v6648_v30 = vld [vmem:[#allocation26_spill] sm:$0xff] }
 0x282   : > { %v4809_v12 = vpop.permute.xlu0 %985 }
 0x283   : > { %6642 = vst [vmem:[#allocation54_spill] sm:$0xff] %v4809_v12  ;;  %v381_v12 = vmul.f32 %v4117_v32, %v348_v57  ;;  %v490_v32 = vsel %vm485_vm12, %v4319_v37, %v4360_v1  ;;  %v627_v37 = vsel %vm6554_vm13, %v4377_v7, %v4395_v40  ;;  %v515_v57 = vadd.f32 %v495_v51, %v383_v29 }
 0x284   : > { %v510_v62 = vadd.f32 %v490_v32, %v378_v44  ;;  %v491_v7 = vsel %vm485_vm12, %v4360_v1, %v4362_v2  ;;  %v4866_v46 = vadd.f32 %v631_v34, %v514_v15  ;;  %v508_v29 = vadd.f32 %v488_v63, %v376_v27  ;;  %v6651_v15 = vld [vmem:[#allocation14_spill] sm:$0xff]  ;;  %v6652_v34 = vld [vmem:[#allocation16_spill] sm:$0xff] }
 0x285   : > { %v4871_v48 = vadd.f32 %v632_v54, %v515_v57  ;;  %v875_v1 = vsel %vm870_vm15, %v4676_v6, %v4678_v9  ;;  %v511_v2 = vadd.f32 %v491_v7, %v379_v23  ;;  %v492_v27 = vsel %vm485_vm12, %v6651_v15, %v6650_v50  ;;  %v6655_v54 = vld [vmem:[#allocation21_spill] sm:$0xff]  ;;  %v6660_v15 = vld [vmem:[#allocation28_spill] sm:$0xff] }
 0x286   : > { %v4816_v3 = vpop.permute.xlu0 %1130  ;;  %v647_v44 = vadd.f32 %v627_v37, %v510_v62  ;;  %v6653_v37 = vld [vmem:[#allocation35_spill] sm:$0xff]  ;;  %v1010_v6 = vsel %vm1005_vm1, %v4701_v0, %v4703_v5  ;;  %v6654_v62 = vld [vmem:[#allocation29_spill] sm:$0xff]  ;;  %v512_v0 = vadd.f32 %v492_v27, %v380_v24  ;;  %v6658_v24 = vld [vmem:[#allocation18_spill] sm:$0xff] }
 0x287   : > { %v4811_v45 = vpop.permute.xlu1 %1426  ;;  %6643 = vst [vmem:[#allocation55_spill] sm:$0xff] %v4816_v3  ;;  %v765_v23 = vsel %vm759_vm14, %v4411_v14, %v6653_v37  ;;  %v760_v63 = vsel %vm759_vm14, %v6655_v54, %v6654_v62  ;;  %v1145_v14 = vsel %vm1140_vm2, %v4743_v20, %v4751_v4  ;;  %v6661_v27 = vld [vmem:[#allocation20_spill] sm:$0xff] }
 0x288   : > { %v784_v51 = vadd.f32 %v764_v42, %v647_v44  ;;  %v509_v42 = vadd.f32 %v489_v53, %v377_v33  ;;  %v876_v44 = vsel %vm870_vm15, %v4678_v9, %v4684_v55  ;;  %v1256_v9 = vsel %vm1251_vm3, %v4793_v49, %v4807_v26  ;;  %v6657_v55 = vld [vmem:[#allocation27_spill] sm:$0xff]  ;;  %v6662_v49 = vld [vmem:[#allocation24_spill] sm:$0xff] }
 0x289   : > { %v625_v20 = vsel %vm6554_vm13, %v6658_v24, %v6657_v55  ;;  %v6669_v24 = vld [vmem:[#allocation33_spill] sm:$0xff] }
 0x28a   : > { %v4856_v43 = vpop.permute.xlu0 %1221  ;;  %v895_v7 = vadd.f32 %v875_v1, %v784_v51 }
 0x28b   : > { %v4829_v3 = vpop.permute.xlu1 %983 }
 0x28c   : > { %6644 = vst [vmem:[#allocation56_spill] sm:$0xff] %v4829_v3  ;;  %v506_v3 = vadd.f32 %v486_v10, %v374_v31  ;;  %v628_v10 = vsel %vm6554_vm13, %v4395_v40, %v6647_v39  ;;  %v6649_v31 = vld [vmem:[#allocation19_spill] sm:$0xff]  ;;  %v493_v40 = vsel %vm485_vm12, %v6650_v50, %v6652_v34  ;;  %v1030_v1 = vadd.f32 %v1010_v6, %v895_v7  ;;  %v6659_v50 = vld [vmem:[#allocation22_spill] sm:$0xff] }
 0x28d   : > { %v623_v32 = vsel %vm6554_vm13, %v6649_v31, %v6648_v30  ;;  %v648_v57 = vadd.f32 %v628_v10, %v511_v2  ;;  %v6656_v39 = vld [vmem:[#allocation23_spill] sm:$0xff]  ;;  %v513_v51 = vadd.f32 %v493_v40, %v381_v12  ;;  %v626_v12 = vsel %vm6554_vm13, %v6657_v55, %v6659_v50  ;;  %v6663_v40 = vld [vmem:[#allocation30_spill] sm:$0xff] }
 0x28e   : > { %v4899_v21 = vpop.permute.xlu0 %1225  ;;  %v643_v17 = vadd.f32 %v623_v32, %v506_v3  ;;  %v624_v31 = vsel %vm6554_vm13, %v6648_v30, %v6656_v39  ;;  %v1011_v3 = vsel %vm1005_vm1, %v4703_v5, %v4712_v22  ;;  %v1165_v30 = vadd.f32 %v1145_v14, %v1030_v1  ;;  %v6665_v7 = vld [vmem:[#allocation31_spill] sm:$0xff]  ;;  %v6667_v14 = vld [vmem:[#allocation36_spill] sm:$0xff] }
 0x28f   : > { %v4858_v59 = vpop.permute.xlu1 %1128  ;;  %v785_v10 = vadd.f32 %v765_v23, %v648_v57  ;;  %v644_v32 = vadd.f32 %v624_v31, %v507_v61  ;;  %v629_v5 = vsel %vm6554_vm13, %v6661_v27, %v6660_v15  ;;  %v1146_v22 = vsel %vm1140_vm2, %v4751_v4, %v4753_v35  ;;  %v6664_v57 = vld [vmem:[#allocation32_spill] sm:$0xff] }
 0x290   : > { %v780_v33 = vadd.f32 %v760_v63, %v643_v17  ;;  %v630_v34 = vsel %vm6554_vm13, %v6660_v15, %v6662_v49  ;;  %v761_v61 = vsel %vm759_vm14, %v6654_v62, %v6663_v40  ;;  %v1276_v23 = vadd.f32 %v1256_v9, %v1165_v30  ;;  %v6668_v62 = vld [vmem:[#allocation38_spill] sm:$0xff] }
 0x291   : > { %v896_v53 = vadd.f32 %v876_v44, %v785_v10  ;;  %v645_v63 = vadd.f32 %v625_v20, %v508_v29  ;;  %v762_v17 = vsel %vm759_vm14, %v6665_v7, %v6664_v57  ;;  %v1257_v4 = vsel %vm1251_vm3, %v4807_v26, %v4797_v41  ;;  %v6666_v44 = vld [vmem:[#allocation37_spill] sm:$0xff] }
 0x292   : > { %v1371_v6 = vpop.permute.xlu0 %1370  ;;  %v766_v39 = vsel %vm759_vm14, %v6667_v14, %v6666_v44  ;;  %v767_v31 = vsel %vm759_vm14, %v6666_v44, %v6668_v62  ;;  %v646_v1 = vadd.f32 %v626_v12, %v509_v42  ;;  %v650_v9 = vadd.f32 %v630_v34, %v513_v51 }
 0x293   : > { %v4882_v60 = vpop.permute.xlu1 %1132  ;;  %v1031_v37 = vadd.f32 %v1011_v3, %v896_v53  ;;  %v649_v3 = vadd.f32 %v629_v5, %v512_v0  ;;  %v781_v55 = vadd.f32 %v761_v61, %v644_v32  ;;  %v763_v41 = vsel %vm759_vm14, %v6664_v57, %v6669_v24 }
 0x294   : > { %v782_v26 = vadd.f32 %v762_v17, %v645_v63  ;;  %v787_v27 = vadd.f32 %v767_v31, %v650_v9  ;;  %v871_v42 = vsel %vm870_vm15, %v4686_v11, %v4693_v25  ;;  %v872_v0 = vsel %vm870_vm15, %v4693_v25, %v4695_v38  ;;  %v6672_v9 = vld [vmem:[#allocation49_spill] sm:$0xff] }
 0x295   : > { %v1166_v10 = vadd.f32 %v1146_v22, %v1031_v37  ;;  %v786_v15 = vadd.f32 %v766_v39, %v649_v3  ;;  %v877_v12 = vsel %vm870_vm15, %v4714_v8, %v4722_v36  ;;  %v878_v5 = vsel %vm870_vm15, %v4722_v36, %v4724_v13 }
 0x296   : > { %v1006_v49 = vsel %vm1005_vm1, %v4731_v58, %v4733_v52  ;;  %v1007_v11 = vsel %vm1005_vm1, %v4733_v52, %v4741_v47  ;;  %v873_v58 = vsel %vm870_vm15, %v4761_v19, %v4763_v28  ;;  %v783_v61 = vadd.f32 %v763_v41, %v646_v1 }
 0x297   : > { %v4910_v2 = vpop.permute.xlu1 %1223  ;;  %v1277_v20 = vadd.f32 %v1257_v4, %v1166_v10  ;;  %v891_v37 = vadd.f32 %v871_v42, %v780_v33  ;;  %v898_v63 = vadd.f32 %v878_v5, %v787_v27  ;;  %v1012_v3 = vsel %vm1005_vm1, %v4771_v56, %v4785_v18  ;;  %v6673_v27 = vld [vmem:[#allocation50_spill] sm:$0xff] }
 0x298   : > { %vm1770_vm13 = vcmask 1046528  }
 0x299   : > { %v1026_v17 = vadd.f32 %v1006_v49, %v891_v37 }
 0x29b   : > { %v1369_v54 = vpop.permute.xlu1 %1368 }
 0x29c   : > { %v1391_v35 = vsel %vm1386_vm4, %v1369_v54, %v1371_v6  ;;  %v897_v54 = vadd.f32 %v877_v12, %v786_v15 }
 0x29d   : > { %v1411_v29 = vadd.f32 %v1391_v35, %v1276_v23  ;;  %v892_v23 = vadd.f32 %v872_v0, %v781_v55  ;;  %v893_v35 = vadd.f32 %v873_v58, %v782_v26 }
 0x29e   : > { %v1032_v49 = vadd.f32 %v1012_v3, %v897_v54 }
 0x29f   : > { %v1441_v53 = vadd.f32 %v4811_v45, %v1411_v29  ;;  %v1373_v30 = vpop.permute.xlu1 %1372  ;;  %v4953_v50 = vpop.permute.xlu0 %1418  ;;  %v1027_v4 = vadd.f32 %v1007_v11, %v892_v23  ;;  %v6676_v23 = vld [vmem:[#allocation56_spill] sm:$0xff] }
 0x2a0   : > { %v1392_v22 = vsel %vm1386_vm4, %v1371_v6, %v1373_v30 }
 0x2a1   : > { %v4962_v51 = vmax.f32 %v1441_v53, 0.0  ;;  %v1412_v32 = vadd.f32 %v1392_v22, %v1277_v20  ;;  %v6674_v22 = vld [vmem:[#allocation51_spill] sm:$0xff] }
 0x2a2   : > { %v1141_v56 = vsel %vm1140_vm2, %v6674_v22, %v6673_v27 }
 0x2a3   : > { %6670 = vst [vmem:[#allocation34_spill] sm:$0xff] %v4962_v51  ;;  %v1591_v25 = vsel %vm254_vm0, %v4962_v51, -inf  ;;  %v1605_v38 = vsel %vm254_vm0, %v4962_v51, 0.0  ;;  %v1621_v8 = vsel %vm1488_vm6, %v4962_v51, -inf  ;;  %v1637_v34 = vrot.slane %v4962_v51, 4  ;;  %v4983_v36 = vpop.permute.xlu1 %753  ;;  %v4985_v13 = vpop.permute.xlu0 %757 }
 0x2a4   : > { %v1592_v52 = vrot.slane %v1591_v25, 4  ;;  %v1606_v47 = vrot.slane %v1605_v38, 4  ;;  %v1442_v40 = vadd.f32 %v4811_v45, %v1412_v32  ;;  %v1622_v7 = vrot.slane %v1621_v8, 4 }
 0x2a5   : > { %v1641_v6 = vsel %vm254_vm0, %v1637_v34, 0.0  ;;  %v874_v45 = vsel %vm870_vm15, %v4763_v28, %v4773_v16  ;;  %v1013_v28 = vsel %vm1005_vm1, %v4785_v18, %v6672_v9  ;;  %v1161_v37 = vadd.f32 %v1141_v56, %v1026_v17 }
 0x2a6   : > { %v1607_v57 = vadd.f32 %v1606_v47, %v1605_v38  ;;  %v4992_v44 = vmax.f32 %v1442_v40, 0.0  ;;  %v1593_v33 = vmax.f32 %v1591_v25, %v1592_v52  ;;  %v1642_v62 = vrot.slane %v1641_v6, 4 }
 0x2a7   : > { %v4994_v14 = vpop.permute.xlu1 %755  ;;  %v4996_v19 = vpop.permute.xlu0 %1118  ;;  %v1623_v16 = vmax.f32 %v1621_v8, %v1622_v7  ;;  %v894_v15 = vadd.f32 %v874_v45, %v783_v61  ;;  %v1033_v11 = vadd.f32 %v1013_v28, %v898_v63  ;;  %v6675_v8 = vld [vmem:[#allocation52_spill] sm:$0xff]  ;;  %v6678_v7 = vld [vmem:[#allocation54_spill] sm:$0xff] }
 0x2a8   : > { %6671 = vst [vmem:[#allocation15_spill] sm:$0xff] %v4992_v44  ;;  %v1608_v39 = vrot.slane %v1607_v57, 2  ;;  %v1598_v31 = vsel %vm254_vm0, %v4992_v44, -inf  ;;  %v1612_v10 = vsel %vm254_vm0, %v4992_v44, 0.0  ;;  %v1628_v29 = vsel %vm1488_vm6, %v4992_v44, -inf }
 0x2a9   : > { %v1638_v1 = vrot.slane %v4992_v44, 4  ;;  %v1599_v55 = vrot.slane %v1598_v31, 4  ;;  %v1613_v41 = vrot.slane %v1612_v10, 4  ;;  %v1629_v26 = vrot.slane %v1628_v29, 4 }
 0x2aa   : > { %v1609_v24 = vadd.f32 %v1608_v39, %v1607_v57  ;;  %v1594_v32 = vrot.slane %v1593_v33, 2  ;;  %v1643_v18 = vadd.f32 %v1642_v62, %v1641_v6  ;;  %v1142_v34 = vsel %vm1140_vm2, %v6673_v27, %v6675_v8  ;;  %v6677_v57 = vld [vmem:[#allocation53_spill] sm:$0xff] }
 0x2ab   : > { %v1648_v20 = vsel %vm254_vm0, %v1638_v1, 0.0  ;;  %v5015_v53 = vpop.permute.xlu1 %1116  ;;  %v5017_v30 = vpop.permute.xlu0 %1239  ;;  %v1600_v42 = vmax.f32 %v1598_v31, %v1599_v55  ;;  %v1614_v12 = vadd.f32 %v1613_v41, %v1612_v10  ;;  %v1630_v5 = vmax.f32 %v1628_v29, %v1629_v26  ;;  %v6679_v29 = vld [vmem:[#allocation55_spill] sm:$0xff] }
 0x2ac   : > { %v1649_v0 = vrot.slane %v1648_v20, 4  ;;  %v1610_v58 = vrot.slane %v1609_v24, 1  ;;  %v1624_v52 = vrot.slane %v1623_v16, 2  ;;  %v1008_v6 = vsel %vm1005_vm1, %v6677_v57, %v6676_v23 }
 0x2ad   : > { %v1601_v25 = vrot.slane %v1600_v42, 2  ;;  %v1615_v47 = vrot.slane %v1614_v12, 2  ;;  %v1009_v54 = vsel %vm1005_vm1, %v6676_v23, %v6678_v7  ;;  %v1631_v63 = vrot.slane %v1630_v5, 2 }
 0x2ae   : > { %v1650_v38 = vadd.f32 %v1649_v0, %v1648_v20  ;;  %v1595_v45 = vmax.f32 %v1593_v33, %v1594_v32  ;;  %v1644_v31 = vrot.slane %v1643_v18, 2  ;;  %v1162_v10 = vadd.f32 %v1142_v34, %v1027_v4 }
 0x2af   : > { %v1121_v40 = vpop.permute.xlu1 %1120  ;;  %v5025_v61 = vpop.permute.xlu0 %1243  ;;  %v1602_v39 = vmax.f32 %v1600_v42, %v1601_v25  ;;  %v1616_v62 = vadd.f32 %v1615_v47, %v1614_v12  ;;  %v1147_v1 = vsel %vm1140_vm2, %v4858_v59, %v6679_v29  ;;  %v1148_v17 = vsel %vm1140_vm2, %v6679_v29, %v4882_v60 }
 0x2b0   : > { %v1651_v3 = vrot.slane %v1650_v38, 2  ;;  %v1625_v9 = vmax.f32 %v1623_v16, %v1624_v52  ;;  %v1611_v26 = vadd.f32 %v1610_v58, %v1609_v24  ;;  %v1645_v20 = vadd.f32 %v1644_v31, %v1643_v18 }
 0x2b1   : > { %v1617_v28 = vrot.slane %v1616_v62, 1  ;;  %v1028_v33 = vadd.f32 %v1008_v6, %v893_v35  ;;  %v1029_v27 = vadd.f32 %v1009_v54, %v894_v15  ;;  %v1252_v4 = vsel %vm1251_vm3, %v4856_v43, %v4910_v2 }
 0x2b2   : > { %v1632_v22 = vmax.f32 %v1630_v5, %v1631_v63  ;;  %v1167_v59 = vadd.f32 %v1147_v1, %v1032_v49  ;;  %v1168_v56 = vadd.f32 %v1148_v17, %v1033_v11  ;;  %v1596_v42 = vrot.slane %v1595_v45, 1 }
 0x2b3   : > { %v1242_v55 = vpop.permute.xlu1 %1241  ;;  %v1359_v41 = vpop.permute.xlu0 %1358  ;;  %v1603_v0 = vrot.slane %v1602_v39, 1  ;;  %v1253_v60 = vsel %vm1251_vm3, %v4910_v2, %v4899_v21  ;;  %v1646_v16 = vrot.slane %v1645_v20, 1  ;;  %v1618_v32 = vadd.f32 %v1617_v28, %v1616_v62 }
 0x2b4   : > { %v1652_v24 = vadd.f32 %v1651_v3, %v1650_v38  ;;  %v1272_v18 = vadd.f32 %v1252_v4, %v1161_v37  ;;  %v768_v35 = vsel %vm759_vm14, %v4983_v36, %v4994_v14  ;;  %v1619_v43 = vmul.f32 0.25, %v1611_v26 }
 0x2b5   : > { %v1626_v5 = vrot.slane %v1625_v9, 1  ;;  %v1620_v11 = vmul.f32 0.25, %v1618_v32  ;;  %v1633_v25 = vrot.slane %v1632_v22, 1  ;;  %v1273_v21 = vadd.f32 %v1253_v60, %v1162_v10 }
 0x2b6   : > { %v1653_v8 = vrot.slane %v1652_v24, 1  ;;  %v1597_v34 = vmax.f32 %v1595_v45, %v1596_v42  ;;  %v1604_v38 = vmax.f32 %v1602_v39, %v1603_v0  ;;  %v769_v58 = vsel %vm759_vm14, %v4994_v14, %v4985_v13 }
 0x2b7   : > { %v1357_v15 = vpop.permute.xlu1 %1356  ;;  %v5048_v12 = vpop.permute.xlu0 %1430  ;;  %v5055_v36 = vadd.f32 %v768_v35, %v4866_v46  ;;  %v1647_v52 = vadd.f32 %v1646_v16, %v1645_v20  ;;  %v1143_v37 = vsel %vm1140_vm2, %v5015_v53, %v4996_v19  ;;  %v1144_v13 = vsel %vm1140_vm2, %v4996_v19, %v1121_v40 }
 0x2b8   : > { %v1387_v49 = vsel %vm1386_vm4, %v1357_v15, %v1359_v41  ;;  %v1654_v47 = vadd.f32 %v1653_v8, %v1652_v24  ;;  %v1773_v7 = vsel %vm1753_vm7, %v1597_v34, %v1619_v43  ;;  %v1774_v54 = vsel %vm1753_vm7, %v1604_v38, %v1620_v11 }
 0x2b9   : > { %v1407_v2 = vadd.f32 %v1387_v49, %v1272_v18  ;;  %v1627_v14 = vmax.f32 %v1625_v9, %v1626_v5  ;;  %v1634_v63 = vmax.f32 %v1632_v22, %v1633_v25  ;;  %v1258_v45 = vsel %vm1251_vm3, %v5017_v30, %v1242_v55 }
 0x2ba   : > { %v1259_v53 = vsel %vm1251_vm3, %v1242_v55, %v5025_v61  ;;  %v1655_v31 = vmul.f32 0.25, %v1647_v52  ;;  %v1656_v29 = vmul.f32 0.25, %v1654_v47  ;;  %v789_v26 = vadd.f32 %v769_v58, %v4871_v48 }
 0x2bb   : > { %v1437_v23 = vadd.f32 %v4953_v50, %v1407_v2  ;;  %v1361_v57 = vpop.permute.xlu1 %1360  ;;  %v867_v6 = vpop.permute.xlu0 %866  ;;  %v1775_v10 = vsel %vm1756_vm8, %v1773_v7, %v1627_v14  ;;  %v1776_v1 = vsel %vm1756_vm8, %v1774_v54, %v1634_v63  ;;  %v1163_v20 = vadd.f32 %v1143_v37, %v1028_v33 }
 0x2bc   : > { %v1388_v46 = vsel %vm1386_vm4, %v1359_v41, %v1361_v57  ;;  %v5083_v4 = vadd.f32 %v1144_v13, %v1029_v27  ;;  %v1278_v42 = vadd.f32 %v1258_v45, %v1167_v59  ;;  %v5086_v32 = vadd.f32 %v1259_v53, %v1168_v56 }
 0x2bd   : > { %v5070_v39 = vmax.f32 %v1437_v23, 0.0  ;;  %v1408_v62 = vadd.f32 %v1388_v46, %v1273_v21  ;;  %v5091_v15 = vsel %vm1759_vm9, %v1775_v10, %v1655_v31  ;;  %v5094_v48 = vsel %vm1759_vm9, %v1776_v1, %v1656_v29 }
 0x2bf   : > { %6680 = vst [vmem:[#allocation25_spill] sm:$0xff] %v5070_v39  ;;  %v1457_v19 = vsel %vm254_vm0, %v5070_v39, -inf  ;;  %v1471_v40 = vsel %vm254_vm0, %v5070_v39, 0.0  ;;  %v1489_v30 = vsel %vm1488_vm6, %v5070_v39, -inf  ;;  %v1505_v61 = vrot.slane %v5070_v39, 4  ;;  %v865_v17 = vpop.permute.xlu1 %864  ;;  %v1228_v3 = vpop.permute.xlu0 %1227 }
 0x2c0   : > { %v1458_v9 = vrot.slane %v1457_v19, 4  ;;  %v1472_v28 = vrot.slane %v1471_v40, 4  ;;  %v1490_v55 = vrot.slane %v1489_v30, 4  ;;  %v1438_v41 = vadd.f32 %v4953_v50, %v1408_v62 }
 0x2c1   : > { %v1509_v22 = vsel %vm254_vm0, %v1505_v61, 0.0  ;;  %v879_v21 = vsel %vm870_vm15, %v865_v17, %v867_v6 }
 0x2c2   : > { %v1459_v0 = vmax.f32 %v1457_v19, %v1458_v9  ;;  %v1473_v60 = vadd.f32 %v1472_v28, %v1471_v40  ;;  %v1491_v16 = vmax.f32 %v1489_v30, %v1490_v55  ;;  %v5088_v24 = vmax.f32 %v1438_v41, 0.0 }
 0x2c3   : > { %v869_v18 = vpop.permute.xlu1 %868  ;;  %v1232_v35 = vpop.permute.xlu0 %1231  ;;  %v1510_v43 = vrot.slane %v1509_v22, 4  ;;  %v899_v14 = vadd.f32 %v879_v21, %v5055_v36 }
 0x2c4   : > { %6681 = vst [vmem:[#allocation26_spill] sm:$0xff] %v5088_v24  ;;  %v1460_v50 = vrot.slane %v1459_v0, 2  ;;  %v1474_v33 = vrot.slane %v1473_v60, 2  ;;  %v1492_v27 = vrot.slane %v1491_v16, 2  ;;  %v1464_v59 = vsel %vm254_vm0, %v5088_v24, -inf }
 0x2c5   : > { %v1478_v56 = vsel %vm254_vm0, %v5088_v24, 0.0  ;;  %v1496_v5 = vsel %vm1488_vm6, %v5088_v24, -inf  ;;  %v1506_v49 = vrot.slane %v5088_v24, 4  ;;  %v1465_v8 = vrot.slane %v1464_v59, 4 }
 0x2c6   : > { %v1461_v11 = vmax.f32 %v1459_v0, %v1460_v50  ;;  %v1475_v25 = vadd.f32 %v1474_v33, %v1473_v60  ;;  %v1479_v2 = vrot.slane %v1478_v56, 4  ;;  %v1497_v34 = vrot.slane %v1496_v5, 4 }
 0x2c7   : > { %v1516_v38 = vsel %vm254_vm0, %v1506_v49, 0.0  ;;  %v880_v58 = vsel %vm870_vm15, %v867_v6, %v869_v18  ;;  %v1230_v52 = vpop.permute.xlu1 %1229  ;;  %v1377_v47 = vpop.permute.xlu0 %1376  ;;  %v1493_v23 = vmax.f32 %v1491_v16, %v1492_v27  ;;  %v1466_v57 = vmax.f32 %v1464_v59, %v1465_v8 }
 0x2c8   : > { %v1476_v37 = vrot.slane %v1475_v25, 1  ;;  %v1517_v7 = vrot.slane %v1516_v38, 4  ;;  %v1511_v54 = vadd.f32 %v1510_v43, %v1509_v22  ;;  %v1480_v13 = vadd.f32 %v1479_v2, %v1478_v56 }
 0x2c9   : > { %v1498_v46 = vmax.f32 %v1496_v5, %v1497_v34  ;;  %v1462_v63 = vrot.slane %v1461_v11, 1  ;;  %v1467_v45 = vrot.slane %v1466_v57, 2  ;;  %v5107_v62 = vadd.f32 %v880_v58, %v789_v26 }
 0x2ca   : > { %v1518_v53 = vadd.f32 %v1517_v7, %v1516_v38  ;;  %v1481_v31 = vrot.slane %v1480_v13, 2  ;;  %v1254_v6 = vsel %vm1251_vm3, %v1228_v3, %v1230_v52  ;;  %v1255_v29 = vsel %vm1251_vm3, %v1230_v52, %v1232_v35 }
 0x2cb   : > { %v1499_v10 = vrot.slane %v1498_v46, 2  ;;  %v1375_v1 = vpop.permute.xlu1 %1374  ;;  %v5111_v19 = vpop.permute.xlu0 %1422  ;;  %v1468_v40 = vmax.f32 %v1466_v57, %v1467_v45  ;;  %v1477_v61 = vadd.f32 %v1476_v37, %v1475_v25  ;;  %v1494_v17 = vrot.slane %v1493_v23, 1 }
 0x2cc   : > { %v1393_v30 = vsel %vm1386_vm4, %v1375_v1, %v1377_v47  ;;  %v1482_v36 = vadd.f32 %v1481_v31, %v1480_v13  ;;  %v1512_v55 = vrot.slane %v1511_v54, 2  ;;  %v1463_v26 = vmax.f32 %v1461_v11, %v1462_v63 }
 0x2cd   : > { %v1500_v9 = vmax.f32 %v1498_v46, %v1499_v10  ;;  %v1413_v28 = vadd.f32 %v1393_v30, %v1278_v42  ;;  %v1469_v41 = vrot.slane %v1468_v40, 1  ;;  %v1486_v22 = vmul.f32 0.25, %v1477_v61 }
 0x2ce   : > { %v1519_v0 = vrot.slane %v1518_v53, 2  ;;  %v1483_v60 = vrot.slane %v1482_v36, 1  ;;  %v5114_v3 = vadd.f32 %v1254_v6, %v1163_v20  ;;  %v1513_v50 = vadd.f32 %v1512_v55, %v1511_v54 }
 0x2cf   : > { %v1443_v16 = vadd.f32 %v5048_v12, %v1413_v28  ;;  %v1379_v18 = vpop.permute.xlu1 %1378  ;;  %v1002_v35 = vpop.permute.xlu0 %1001  ;;  %v1275_v33 = vadd.f32 %v1255_v29, %v5083_v4  ;;  %v1495_v43 = vmax.f32 %v1493_v23, %v1494_v17  ;;  %v1754_v42 = vsel %vm1753_vm7, %v1463_v26, %v1486_v22 }
 0x2d0   : > { %v1394_v27 = vsel %vm1386_vm4, %v1377_v47, %v1379_v18  ;;  %v1501_v5 = vrot.slane %v1500_v9, 1  ;;  %v5123_v49 = vadd.f32 %v1519_v0, %v1518_v53  ;;  %v1514_v20 = vrot.slane %v1513_v50, 1 }
 0x2d1   : > { %v5120_v59 = vmax.f32 %v1443_v16, 0.0  ;;  %v1414_v56 = vadd.f32 %v1394_v27, %v5086_v32  ;;  %v5126_v11 = vsel %vm1756_vm8, %v1754_v42, %v1495_v43  ;;  %v5128_v25 = vmax.f32 %v1468_v40, %v1469_v41 }
 0x2d2   : > { %v1484_v8 = vadd.f32 %v1483_v60, %v1482_v36  ;;  %v5141_v7 = vmax.f32 %v1500_v9, %v1501_v5  ;;  %v1521_v54 = vrot.slane %v5123_v49, 1  ;;  %v5151_v29 = vadd.f32 %v1514_v20, %v1513_v50 }
 0x2d3   : > { %6682 = vst [vmem:[#allocation19_spill] sm:$0xff] %v5120_v59  ;;  %v1657_v4 = vsel %vm254_vm0, %v5120_v59, -inf  ;;  %v1671_v21 = vsel %vm254_vm0, %v5120_v59, 0.0  ;;  %v1444_v2 = vadd.f32 %v5048_v12, %v1414_v56  ;;  %v1000_v34 = vpop.permute.xlu1 %999  ;;  %v1363_v32 = vpop.permute.xlu0 %1362  ;;  %v1687_v38 = vsel %vm1488_vm6, %v5120_v59, -inf }
 0x2d4   : > { %v1658_v58 = vrot.slane %v1657_v4, 4  ;;  %v1672_v52 = vrot.slane %v1671_v21, 4  ;;  %v1014_v47 = vsel %vm1005_vm1, %v1000_v34, %v1002_v35  ;;  %v1688_v37 = vrot.slane %v1687_v38, 4 }
 0x2d5   : > { %v5138_v23 = vmax.f32 %v1444_v2, 0.0  ;;  %v1703_v57 = vrot.slane %v5120_v59, 4  ;;  %v5144_v13 = vadd.f32 %v1014_v47, %v899_v14  ;;  %v5155_v9 = vmul.f32 0.25, %v1484_v8 }
 0x2d6   : > { %v1659_v12 = vmax.f32 %v1657_v4, %v1658_v58  ;;  %v1673_v46 = vadd.f32 %v1672_v52, %v1671_v21  ;;  %v1689_v63 = vmax.f32 %v1687_v38, %v1688_v37 }
 0x2d7   : > { %6683 = vst [vmem:[#allocation17_spill] sm:$0xff] %v5138_v23  ;;  %v1664_v45 = vsel %vm254_vm0, %v5138_v23, -inf  ;;  %v1678_v53 = vsel %vm254_vm0, %v5138_v23, 0.0  ;;  %v1004_v31 = vpop.permute.xlu1 %1003  ;;  %v1367_v10 = vpop.permute.xlu0 %1366  ;;  %v1707_v6 = vsel %vm254_vm0, %v1703_v57, 0.0  ;;  %v1694_v14 = vsel %vm1488_vm6, %v5138_v23, -inf }
 0x2d8   : > { %v1665_v1 = vrot.slane %v1664_v45, 4  ;;  %v1679_v40 = vrot.slane %v1678_v53, 4  ;;  %v1660_v30 = vrot.slane %v1659_v12, 2  ;;  %v1674_v61 = vrot.slane %v1673_v46, 2 }
 0x2d9   : > { %v1690_v17 = vrot.slane %v1689_v63, 2  ;;  %v1708_v36 = vrot.slane %v1707_v6, 4  ;;  %v1015_v28 = vsel %vm1005_vm1, %v1002_v35, %v1004_v31  ;;  %v1695_v50 = vrot.slane %v1694_v14, 4 }
 0x2da   : > { %v1661_v55 = vmax.f32 %v1659_v12, %v1660_v30  ;;  %v1666_v41 = vmax.f32 %v1664_v45, %v1665_v1  ;;  %v1680_v26 = vadd.f32 %v1679_v40, %v1678_v53  ;;  %v1675_v60 = vadd.f32 %v1674_v61, %v1673_v46 }
 0x2db   : > { %v1365_v22 = vpop.permute.xlu1 %1364  ;;  %v1137_v0 = vpop.permute.xlu0 %1136  ;;  %v1691_v16 = vmax.f32 %v1689_v63, %v1690_v17  ;;  %v1709_v18 = vadd.f32 %v1708_v36, %v1707_v6  ;;  %v1704_v37 = vrot.slane %v5138_v23, 4  ;;  %v1035_v57 = vadd.f32 %v1015_v28, %v5107_v62 }
 0x2dc   : > { %v1389_v27 = vsel %vm1386_vm4, %v1363_v32, %v1365_v22  ;;  %v1390_v43 = vsel %vm1386_vm4, %v1365_v22, %v1367_v10  ;;  %v1662_v42 = vrot.slane %v1661_v55, 1  ;;  %v1667_v56 = vrot.slane %v1666_v41, 2 }
 0x2dd   : > { %v1409_v5 = vadd.f32 %v1389_v27, %v5114_v3  ;;  %v1410_v20 = vadd.f32 %v1390_v43, %v1275_v33  ;;  %v1676_v35 = vrot.slane %v1675_v60, 1  ;;  %v1692_v8 = vrot.slane %v1691_v16, 1 }
 0x2de   : > { %v1663_v4 = vmax.f32 %v1661_v55, %v1662_v42  ;;  %v1710_v21 = vrot.slane %v1709_v18, 2  ;;  %v1668_v2 = vmax.f32 %v1666_v41, %v1667_v56  ;;  %v1681_v34 = vrot.slane %v1680_v26, 2 }
 0x2df   : > { %v1439_v38 = vadd.f32 %v5111_v19, %v1409_v5  ;;  %v1440_v58 = vadd.f32 %v5111_v19, %v1410_v20  ;;  %v1135_v52 = vpop.permute.xlu1 %1134  ;;  %v1246_v32 = vpop.permute.xlu0 %1245  ;;  %v1677_v47 = vadd.f32 %v1676_v35, %v1675_v60  ;;  %v1693_v19 = vmax.f32 %v1691_v16, %v1692_v8 }
 0x2e0   : > { %v1149_v3 = vsel %vm1140_vm2, %v1135_v52, %v1137_v0  ;;  %v1711_v33 = vadd.f32 %v1710_v21, %v1709_v18  ;;  %v1779_v12 = vsel %vm254_vm0, %v5091_v15, %v1663_v4  ;;  %v1669_v53 = vrot.slane %v1668_v2, 1 }
 0x2e1   : > { %v5168_v46 = vmax.f32 %v1439_v38, 0.0  ;;  %v5170_v63 = vmax.f32 %v1440_v58, 0.0  ;;  %v1685_v45 = vmul.f32 0.25, %v1677_v47  ;;  %v1682_v10 = vadd.f32 %v1681_v34, %v1680_v26 }
 0x2e2   : > { %v1712_v31 = vrot.slane %v1711_v33, 1  ;;  %v1696_v6 = vmax.f32 %v1694_v14, %v1695_v50  ;;  %v1714_v61 = vsel %vm254_vm0, %v1704_v37, 0.0  ;;  %v1169_v36 = vadd.f32 %v1149_v3, %v5144_v13 }
 0x2e3   : > { %6684 = vst [vmem:[#allocation14_spill] sm:$0xff] %v5168_v46  ;;  %6685 = vst [vmem:[#allocation16_spill] sm:$0xff] %v5170_v63  ;;  %v1525_v1 = vsel %vm254_vm0, %v5168_v46, -inf  ;;  %v1532_v62 = vsel %vm254_vm0, %v5170_v63, -inf  ;;  %v1139_v40 = vpop.permute.xlu1 %1138  ;;  %v1250_v30 = vpop.permute.xlu0 %1249  ;;  %v1781_v15 = vsel %vm1764_vm10, %v1779_v12, %v1685_v45  ;;  %v1670_v41 = vmax.f32 %v1668_v2, %v1669_v53 }
 0x2e4   : > { %v1526_v17 = vrot.slane %v1525_v1, 4  ;;  %v1150_v28 = vsel %vm1140_vm2, %v1137_v0, %v1139_v40  ;;  %v1713_v55 = vadd.f32 %v1712_v31, %v1711_v33  ;;  %v1783_v14 = vsel %vm1767_vm11, %v1781_v15, %v1693_v19 }
 0x2e5   : > { %v1683_v26 = vrot.slane %v1682_v10, 1  ;;  %v1697_v22 = vrot.slane %v1696_v6, 2  ;;  %v1533_v60 = vrot.slane %v1532_v62, 4  ;;  %v1170_v16 = vadd.f32 %v1150_v28, %v1035_v57 }
 0x2e6   : > { %v1721_v18 = vmul.f32 0.25, %v1713_v55  ;;  %v1715_v50 = vrot.slane %v1714_v61, 4  ;;  %v1527_v56 = vmax.f32 %v1525_v1, %v1526_v17  ;;  %v1539_v5 = vsel %vm254_vm0, %v5168_v46, 0.0 }
 0x2e7   : > { %v1248_v27 = vpop.permute.xlu1 %1247  ;;  %v1684_v43 = vadd.f32 %v1683_v26, %v1682_v10  ;;  %v1698_v42 = vmax.f32 %v1696_v6, %v1697_v22  ;;  %v1381_v8 = vpop.permute.xlu0 %1380  ;;  %v1780_v2 = vsel %vm254_vm0, %v5094_v48, %v1670_v41  ;;  %v1523_v34 = vmul.f32 0.25, %v5151_v29 }
 0x2e8   : > { %v1785_v13 = vsel %vm1770_vm13, %v1783_v14, %v1721_v18  ;;  %v1260_v0 = vsel %vm1251_vm3, %v1246_v32, %v1248_v27  ;;  %v1261_v20 = vsel %vm1251_vm3, %v1248_v27, %v1250_v30  ;;  %v1716_v35 = vadd.f32 %v1715_v50, %v1714_v61 }
 0x2e9   : > { %1799 = vrot.lane.b32.xlu1 %v1785_v13, %s3931_s14  ;;  %v1686_v4 = vmul.f32 0.25, %v1684_v43  ;;  %v1699_v21 = vrot.slane %v1698_v42, 1  ;;  %v1528_v58 = vrot.slane %v1527_v56, 2  ;;  %v1540_v52 = vrot.slane %v1539_v5, 4 }
 0x2ea   : > { %v1717_v38 = vrot.slane %v1716_v35, 2  ;;  %v1555_v47 = vsel %vm1488_vm6, %v5168_v46, -inf  ;;  %v1280_v32 = vadd.f32 %v1260_v0, %v1169_v36  ;;  %v1281_v37 = vadd.f32 %v1261_v20, %v1170_v16 }
 0x2eb   : > { %v1435_v57 = vpop.permute.xlu1 %1434  ;;  %v1556_v3 = vrot.slane %v1555_v47, 4  ;;  %v1571_v33 = vrot.slane %v5168_v46, 4  ;;  %v1782_v45 = vsel %vm1764_vm10, %v1780_v2, %v1686_v4  ;;  %v1529_v53 = vmax.f32 %v1527_v56, %v1528_v58  ;;  %v1385_v61 = vpop.permute.xlu0 %1384 }
 0x2ec   : > { %v1718_v12 = vadd.f32 %v1717_v38, %v1716_v35  ;;  %v1541_v19 = vadd.f32 %v1540_v52, %v1539_v5  ;;  %v1700_v48 = vmax.f32 %v1698_v42, %v1699_v21  ;;  %v1760_v10 = vsel %vm1759_vm9, %v5126_v11, %v1523_v34 }
 0x2ed   : > { %v1557_v31 = vmax.f32 %v1555_v47, %v1556_v3  ;;  %v1575_v29 = vsel %vm254_vm0, %v1571_v33, 0.0  ;;  %v1530_v1 = vrot.slane %v1529_v53, 1  ;;  %v1522_v28 = vadd.f32 %v1521_v54, %v5123_v49 }
 0x2ee   : > { %v1719_v6 = vrot.slane %v1718_v12, 1  ;;  %v1542_v40 = vrot.slane %v1541_v19, 2  ;;  %v1576_v30 = vrot.slane %v1575_v29, 4  ;;  %v1784_v15 = vsel %vm1767_vm11, %v1782_v45, %v1700_v48 }
 0x2ef   : > { %v1383_v17 = vpop.permute.xlu1 %1382  ;;  %v1558_v36 = vrot.slane %v1557_v31, 2  ;;  %v1534_v55 = vmax.f32 %v1532_v62, %v1533_v60  ;;  %v1546_v11 = vsel %vm254_vm0, %v5170_v63, 0.0  ;;  %v1531_v43 = vmax.f32 %v1529_v53, %v1530_v1 }
 0x2f0   : > { %v1720_v14 = vadd.f32 %v1719_v6, %v1718_v12  ;;  %v1395_v41 = vsel %vm1386_vm4, %v1381_v8, %v1383_v17  ;;  %v1396_v26 = vsel %vm1386_vm4, %v1383_v17, %v1385_v61  ;;  %v1543_v18 = vadd.f32 %v1542_v40, %v1541_v19 }
 0x2f1   : > { %v1415_v22 = vadd.f32 %v1395_v41, %v1280_v32  ;;  %v1416_v16 = vadd.f32 %v1396_v26, %v1281_v37  ;;  %v1559_v50 = vmax.f32 %v1557_v31, %v1558_v36  ;;  %v1577_v42 = vadd.f32 %v1576_v30, %v1575_v29 }
 0x2f2   : > { %v1722_v27 = vmul.f32 0.25, %v1720_v14  ;;  %v1535_v56 = vrot.slane %v1534_v55, 2  ;;  %v1544_v49 = vrot.slane %v1543_v18, 1  ;;  %v1547_v20 = vrot.slane %v1546_v11, 4 }
 0x2f3   : > { %v1445_v5 = vadd.f32 %v1435_v57, %v1415_v22  ;;  %v1446_v13 = vadd.f32 %v1435_v57, %v1416_v16  ;;  %v1560_v54 = vrot.slane %v1559_v50, 1  ;;  %v1578_v60 = vrot.slane %v1577_v42, 2 }
 0x2f4   : > { %v1786_v62 = vsel %vm1770_vm13, %v1784_v15, %v1722_v27  ;;  %v1536_v0 = vmax.f32 %v1534_v55, %v1535_v56  ;;  %v1545_v4 = vadd.f32 %v1544_v49, %v1543_v18  ;;  %v1524_v21 = vmul.f32 0.25, %v1522_v28 }
 0x2f5   : > { %1801 = vrot.lane.b32.xlu0 %v1786_v62, %s3931_s14  ;;  %v5207_v35 = vmax.f32 %v1445_v5, 0.0  ;;  %v5209_v8 = vmax.f32 %v1446_v13, 0.0  ;;  %v1561_v2 = vmax.f32 %v1559_v50, %v1560_v54  ;;  %v1579_v34 = vadd.f32 %v1578_v60, %v1577_v42 }
 0x2f6   : > { %v1762_v38 = vsel %vm254_vm0, %v1760_v10, %v1531_v43  ;;  %v1548_v58 = vadd.f32 %v1547_v20, %v1546_v11  ;;  %v1562_v37 = vsel %vm1488_vm6, %v5170_v63, -inf  ;;  %v1537_v12 = vrot.slane %v1536_v0, 1 }
 0x2f7   : > { %6686 = vst [vmem:[#allocation35_spill] sm:$0xff] %v5207_v35  ;;  %6687 = vst [vmem:[#allocation29_spill] sm:$0xff] %v5209_v8  ;;  %v1723_v52 = vsel %vm254_vm0, %v5207_v35, -inf  ;;  %v1730_v47 = vsel %vm254_vm0, %v5209_v8, -inf  ;;  %v1737_v32 = vsel %vm254_vm0, %v5207_v35, 0.0  ;;  %v1744_v33 = vsel %vm254_vm0, %v5209_v8, 0.0 }
 0x2f8   : > { %v1724_v57 = vrot.slane %v1723_v52, 4  ;;  %v1731_v3 = vrot.slane %v1730_v47, 4  ;;  %v1738_v45 = vrot.slane %v1737_v32, 4  ;;  %v1553_v53 = vmul.f32 0.25, %v1545_v4 }
 0x2f9   : > { %v1580_v19 = vrot.slane %v1579_v34, 1  ;;  %v1549_v48 = vrot.slane %v1548_v58, 2  ;;  %v1563_v31 = vrot.slane %v1562_v37, 4  ;;  %v1572_v29 = vrot.slane %v5170_v63, 4 }
 0x2fa   : > { %v1755_v10 = vsel %vm1753_vm7, %v5128_v25, %v5155_v9  ;;  %v1725_v6 = vmax.f32 %v1723_v52, %v1724_v57  ;;  %v1745_v1 = vrot.slane %v1744_v33, 4  ;;  %v1765_v30 = vsel %vm1764_vm10, %v1762_v38, %v1553_v53 }
 0x2fb   : > { %v1581_v40 = vadd.f32 %v1580_v19, %v1579_v34  ;;  %v1550_v15 = vadd.f32 %v1549_v48, %v1548_v58  ;;  %v1768_v61 = vsel %vm1767_vm11, %v1765_v30, %v1561_v2  ;;  %v1538_v17 = vmax.f32 %v1536_v0, %v1537_v12 }
 0x2fc   : > { %v1564_v36 = vmax.f32 %v1562_v37, %v1563_v31  ;;  %v1582_v28 = vsel %vm254_vm0, %v1572_v29, 0.0  ;;  %v1758_v26 = vsel %vm1756_vm8, %v1755_v10, %v5141_v7  ;;  %v1726_v25 = vrot.slane %v1725_v6, 2  ;;  %v5237_v7 = vld [vmem:[%s6508_s4] sm:$0x3] }
 0x2fd   : > { %v1589_v55 = vmul.f32 0.25, %v1581_v40  ;;  %v1551_v14 = vrot.slane %v1550_v15, 1  ;;  %v1583_v41 = vrot.slane %v1582_v28, 4  ;;  %v1739_v9 = vadd.f32 %v1738_v45, %v1737_v32 }
 0x2fe   : > { %v1565_v11 = vrot.slane %v1564_v36, 2  ;;  %v1732_v22 = vmax.f32 %v1730_v47, %v1731_v3  ;;  %v1746_v27 = vadd.f32 %v1745_v1, %v1744_v33  ;;  %v1727_v42 = vmax.f32 %v1725_v6, %v1726_v25 }
 0x2ff   : > { %v1771_v16 = vsel %vm1770_vm13, %v1768_v61, %v1589_v55  ;;  %v1552_v18 = vadd.f32 %v1551_v14, %v1550_v15  ;;  %v1584_v50 = vadd.f32 %v1583_v41, %v1582_v28  ;;  %v1740_v56 = vrot.slane %v1739_v9, 2  ;;  %v6695_v14 = vld [vmem:[#allocation12_spill] sm:$0xff] }
 0x300   : > { %1795 = vrot.lane.b32.xlu1 %v1771_v16, %s3931_s14  ;;  %v1566_v43 = vmax.f32 %v1564_v36, %v1565_v11  ;;  %v1761_v49 = vsel %vm1759_vm9, %v1758_v26, %v1524_v21  ;;  %v1747_v54 = vrot.slane %v1746_v27, 2  ;;  %v1733_v4 = vrot.slane %v1732_v22, 2 }
 0x301   : > { %v1554_v5 = vmul.f32 0.25, %v1552_v18  ;;  %v1585_v13 = vrot.slane %v1584_v50, 2  ;;  %v1763_v60 = vsel %vm254_vm0, %v1761_v49, %v1538_v17  ;;  %v1741_v0 = vadd.f32 %v1740_v56, %v1739_v9  ;;  %v6697_v18 = vld [vmem:[#allocation13_spill] sm:$0xff] }
 0x302   : > { %v1567_v62 = vrot.slane %v1566_v43, 1  ;;  %v1748_v2 = vadd.f32 %v1747_v54, %v1746_v27  ;;  %v1728_v34 = vrot.slane %v1727_v42, 1  ;;  %v1734_v57 = vmax.f32 %v1732_v22, %v1733_v4  ;;  %v6696_v22 = vld [vmem:[#allocation11_spill] sm:$0xff] }
 0x303   : > { %v1586_v20 = vadd.f32 %v1585_v13, %v1584_v50  ;;  %v1742_v38 = vrot.slane %v1741_v0, 1  ;;  %v1766_v21 = vsel %vm1764_vm10, %v1763_v60, %v1554_v5  ;;  %v6688_v33 = vmov 3  }
 0x304   : > { %1861 = vperm.xlu1 %3769, %v5237_v7   ;;  %v1749_v52 = vrot.slane %v1748_v2, 1  ;;  %v1568_v47 = vmax.f32 %v1566_v43, %v1567_v62  ;;  %v1729_v12 = vmax.f32 %v1727_v42, %v1728_v34  ;;  %v1735_v29 = vrot.slane %v1734_v57, 1 }
 0x305   : > { %v1587_v58 = vrot.slane %v1586_v20, 1  ;;  %v1743_v32 = vadd.f32 %v1742_v38, %v1741_v0  ;;  %v6689_v6 = vmov 5   ;;  %v6690_v30 = vmov 7   ;;  %v6698_v38 = vld [vmem:[#allocation41_spill] sm:$0xff] }
 0x306   : > { %v1769_v3 = vsel %vm1767_vm11, %v1766_v21, %v1568_v47  ;;  %v1750_v19 = vadd.f32 %v1749_v52, %v1748_v2  ;;  %v1736_v1 = vmax.f32 %v1734_v57, %v1735_v29  ;;  %v6691_v15 = vmov 6   ;;  %v6700_v52 = vld [vmem:[#allocation42_spill] sm:$0xff] }
 0x307   : > { %v1588_v37 = vadd.f32 %v1587_v58, %v1586_v20  ;;  %v1751_v45 = vmul.f32 0.25, %v1743_v32  ;;  %v6692_v61 = vmov 0   ;;  %v6693_v17 = vmov 8  }
 0x308   : > { %3771 = vset.pattern.permute.xlu1 %v6688_v33  ;;  %v1752_v10 = vmul.f32 0.25, %v1750_v19  ;;  %v6694_v36 = vmov 4  }
 0x309   : > { %v1590_v53 = vmul.f32 0.25, %v1588_v37  ;;  %1885 = vperm.xlu1 %3771, %v5237_v7   ;;  %v1787_v48 = vsel %vm1753_vm7, %v1729_v12, %v1751_v45  ;;  %v6701_v37 = vld [vmem:[#allocation40_spill] sm:$0xff] }
 0x30a   : > { %v1788_v40 = vsel %vm1753_vm7, %v1736_v1, %v1752_v10 }
 0x30b   : > { %v1772_v31 = vsel %vm1770_vm13, %v1769_v3, %v1590_v53 }
 0x30c   : > { %1797 = vrot.lane.b32.xlu0 %v1772_v31, %s3931_s14 }
 0x30d   : > { %1803 = vrot.lane.b32.xlu1 %v1787_v48, %s3931_s14 }
 0x30e   : > { %3772 = vset.pattern.permute.xlu1 %v6689_v6 }
 0x310   : > { %1838 = vperm.xlu0 %3770, %v5237_v7  }
 0x311   : > { %1931 = vperm.xlu1 %3772, %v5237_v7  }
 0x314   : > { %1805 = vrot.lane.b32.xlu0 %v1788_v40, %s3931_s14 }
 0x315   : > { %3773 = vset.pattern.permute.xlu0 %v6690_v30  ;;  %3774 = vset.pattern.permute.xlu1 %v6691_v15 }
 0x316   : > { %1957 = vperm.xlu1 %3774, %v5237_v7  }
 0x318   : > { %1981 = vperm.xlu0 %3773, %v5237_v7  }
 0x31a   : > { %3775 = vset.pattern.permute.xlu1 %v6692_v61 }
 0x31b   : > { %1830 = vperm.xlu1 %3775, %v5237_v7  }
 0x31c   : > { %3777 = vset.pattern.permute.xlu0 %v6693_v17 }
 0x31f   : > { %3776 = vset.pattern.permute.xlu1 %v6694_v36 }
 0x35b   : > { %v1800_v28 = vpop.permute.xlu1 %1799 }
 0x35c   : > { %v5263_v55 = vsel %vm327_vm5, 0.0, %v1800_v28 }
 0x35d   : > { %v1953_v41 = vmul.f32 %v6695_v14, %v5263_v55  ;;  %v2130_v0 = vrot.slane %v5263_v55, 2  ;;  %v6558_v6 = vrot.slane %v5263_v55, 6 }
 0x35f   : > { %v1963_v26 = vrot.slane %v1953_v41, 2 }
 0x361   : > { %1966 = vrot.lane.b32.xlu0 %v1963_v26, %s3941_s15 }
 0x367   : > { %v1802_v11 = vpop.permute.xlu0 %1801 }
 0x368   : > { %v5269_v25 = vsel %vm327_vm5, %v1800_v28, %v1802_v11  ;;  %v5272_v9 = vsel %vm327_vm5, %v1802_v11, 0.0  ;;  %v6555_v11 = vrot.slane %v5263_v55, 4 }
 0x369   : > { %v1955_v16 = vmul.f32 %v6696_v22, %v5272_v9  ;;  %v1954_v50 = vmul.f32 %v5269_v25, %v6697_v18  ;;  %v2131_v20 = vrot.slane %v5269_v25, 2  ;;  %v2132_v4 = vrot.slane %v5272_v9, 2 }
 0x36a   : > { %v6560_v1 = vrot.slane %v5269_v25, 6  ;;  %v6559_v30 = vrot.slane %v5272_v9, 6 }
 0x36b   : > { %v1965_v27 = vrot.slane %v1955_v16, 2  ;;  %v1964_v43 = vrot.slane %v1954_v50, 2  ;;  %v6557_v16 = vrot.slane %v5269_v25, 4 }
 0x36d   : > { %1970 = vrot.lane.b32.xlu0 %v1965_v27, %s3941_s15  ;;  %1968 = vrot.lane.b32.xlu1 %v1964_v43, %s3941_s15 }
 0x372   : > { %v1796_v42 = vpop.permute.xlu1 %1795 }
 0x373   : > { %v5281_v56 = vsel %vm327_vm5, 0.0, %v1796_v42 }
 0x374   : > { %v1984_v5 = vrot.slane %v5281_v56, 6  ;;  %v1936_v2 = vrot.slane %v5281_v56, 2  ;;  %v5306_v58 = vmul.f32 %v6698_v38, %v5281_v56  ;;  %v2091_v12 = vrot.slane %v5281_v56, 4 }
 0x376   : > { %1987 = vrot.lane.b32.xlu1 %v1984_v5, %s3949_s29  ;;  %6699 = vst [vmem:[#allocation21_spill] sm:$0xff] %v5306_v58  ;;  %v2266_v32 = vrot.slane %v5306_v58, 6 }
 0x37e   : > { %v1798_v13 = vpop.permute.xlu0 %1797 }
 0x37f   : > { %v5286_v49 = vsel %vm327_vm5, %v1796_v42, %v1798_v13  ;;  %v5289_v54 = vsel %vm327_vm5, %v1798_v13, 0.0  ;;  %v5335_v53 = vpop.permute.xlu1 %1861  ;;  %v6556_v42 = vrot.slane %v5272_v9, 4 }
 0x380   : > { %v1985_v62 = vrot.slane %v5286_v49, 6  ;;  %v1986_v60 = vrot.slane %v5289_v54, 6  ;;  %v1937_v34 = vrot.slane %v5286_v49, 2  ;;  %v1938_v21 = vrot.slane %v5289_v54, 2 }
 0x381   : > { %v5318_v47 = vmul.f32 %v5286_v49, %v6700_v52  ;;  %v5323_v57 = vmul.f32 %v6701_v37, %v5289_v54  ;;  %v2092_v45 = vrot.slane %v5286_v49, 4  ;;  %v2093_v19 = vrot.slane %v5289_v54, 4 }
 0x382   : > { %1989 = vrot.lane.b32.xlu0 %v1985_v62, %s3949_s29  ;;  %1991 = vrot.lane.b32.xlu1 %v1986_v60, %s3949_s29  ;;  %v2687_v48 = vmul.f32 %v5335_v53, %v5263_v55  ;;  %v2688_v31 = vmul.f32 %v5335_v53, %v5269_v25  ;;  %v2689_v29 = vmul.f32 %v5335_v53, %v5272_v9 }
 0x383   : > { %6702 = vst [vmem:[#allocation23_spill] sm:$0xff] %v5323_v57  ;;  %v2267_v3 = vrot.slane %v5318_v47, 6  ;;  %v2268_v33 = vrot.slane %v5323_v57, 6 }
 0x384   : > { %v5356_v10 = vpop.permute.xlu1 %1885 }
 0x385   : > { %6703 = vst [vmem:[#allocation27_spill] sm:$0xff] %v5356_v10 }
 0x386   : > { %2133 = vrot.lane.b32.xlu0 %v2130_v0, %s3949_s29  ;;  %2135 = vrot.lane.b32.xlu1 %v2131_v20, %s3949_s29  ;;  %v2570_v20 = vmul.f32 %v5306_v58, %v5335_v53 }
 0x388   : > { %v1804_v17 = vpop.permute.xlu1 %1803 }
 0x389   : > { %v5380_v41 = vsel %vm327_vm5, 0.0, %v1804_v17 }
 0x38a   : > { %2137 = vrot.lane.b32.xlu0 %v2132_v4, %s3949_s29  ;;  %1909 = vperm.xlu1 %3776, %v5237_v7   ;;  %v5388_v50 = vmul.f32 %v6695_v14, %v5380_v41  ;;  %v2571_v4 = vmul.f32 %v5318_v47, %v5335_v53 }
 0x38b   : > { %v5360_v40 = vpop.permute.xlu0 %1838 }
 0x38c   : > { %v2810_v15 = vmul.f32 %v5360_v40, %v5263_v55  ;;  %v2811_v36 = vmul.f32 %v5360_v40, %v5269_v25  ;;  %v2812_v28 = vmul.f32 %v5360_v40, %v5272_v9  ;;  %6704 = vst [vmem:[#allocation18_spill] sm:$0xff] %v5388_v50  ;;  %v2705_v5 = vmul.f32 %v5388_v50, %v5356_v10 }
 0x38e   : > { %1939 = vrot.lane.b32.xlu0 %v1936_v2, %s3949_s29  ;;  %1941 = vrot.lane.b32.xlu1 %v1937_v34, %s3949_s29 }
 0x38f   : > { %3779 = vset.pattern.permute.xlu1 %v6692_v61  ;;  %v1806_v26 = vpop.permute.xlu0 %1805 }
 0x390   : > { %v5391_v27 = vsel %vm327_vm5, %v1806_v26, 0.0  ;;  %v5394_v43 = vsel %vm327_vm5, %v1804_v17, %v1806_v26  ;;  %v6709_v26 = vld [vmem:[#allocation45_spill] sm:$0xff] }
 0x391   : > { %v5407_v13 = vmul.f32 %v5394_v43, %v6697_v18  ;;  %v5411_v62 = vmul.f32 %v6696_v22, %v5391_v27 }
 0x392   : > { %1943 = vrot.lane.b32.xlu0 %v1938_v21, %s3949_s29  ;;  %2269 = vrot.lane.b32.xlu1 %v2266_v32, %s3950_s9  ;;  %v2636_v32 = vmul.f32 %v6698_v38, %v5263_v55 }
 0x393   : > { %6705 = vst [vmem:[#allocation22_spill] sm:$0xff] %v5407_v13  ;;  %6706 = vst [vmem:[#allocation28_spill] sm:$0xff] %v5411_v62  ;;  %v2706_v60 = vmul.f32 %v5407_v13, %v5356_v10  ;;  %v2707_v0 = vmul.f32 %v5411_v62, %v5356_v10 }
 0x396   : > { %2271 = vrot.lane.b32.xlu0 %v2267_v3, %s3950_s9  ;;  %2273 = vrot.lane.b32.xlu1 %v2268_v33, %s3950_s9  ;;  %v2572_v3 = vmul.f32 %v5323_v57, %v5335_v53  ;;  %v2642_v33 = vrot.slane %v2636_v32, 4 }
 0x39a   : > { %2094 = vrot.lane.b32.xlu0 %v2091_v12, %s3949_s29  ;;  %2096 = vrot.lane.b32.xlu1 %v2092_v45, %s3949_s29 }
 0x39e   : > { %2098 = vrot.lane.b32.xlu0 %v2093_v19, %s3949_s29  ;;  %2693 = vrot.lane.b32.xlu1 %v2687_v48, %s3949_s29  ;;  %v2637_v48 = vmul.f32 %v5269_v25, %v6700_v52 }
 0x3a2   : > { %2695 = vrot.lane.b32.xlu0 %v2688_v31, %s3949_s29  ;;  %2697 = vrot.lane.b32.xlu1 %v2689_v29, %s3949_s29  ;;  %v2638_v31 = vmul.f32 %v6701_v37, %v5272_v9  ;;  %v2643_v29 = vrot.slane %v2637_v48, 4  ;;  %v2732_v37 = vmul.f32 %v5286_v49, %v6709_v26 }
 0x3a4   : > { %v2644_v38 = vrot.slane %v2638_v31, 4 }
 0x3a6   : > { %2390 = vrot.lane.b32.xlu0 %v6558_v6, %s3949_s29  ;;  %2392 = vrot.lane.b32.xlu1 %v6560_v1, %s3949_s29 }
 0x3aa   : > { %2394 = vrot.lane.b32.xlu0 %v6559_v30, %s3949_s29  ;;  %2816 = vrot.lane.b32.xlu1 %v2810_v15, %s3949_s29  ;;  %v6707_v15 = vld [vmem:[#allocation44_spill] sm:$0xff] }
 0x3ab   : > { %v2731_v17 = vmul.f32 %v6707_v15, %v5281_v56 }
 0x3ae   : > { %2818 = vrot.lane.b32.xlu0 %v2811_v36, %s3949_s29  ;;  %2820 = vrot.lane.b32.xlu1 %v2812_v28, %s3949_s29  ;;  %v2737_v36 = vrot.slane %v2731_v17, 4  ;;  %v6708_v28 = vld [vmem:[#allocation43_spill] sm:$0xff] }
 0x3af   : > { %v2733_v52 = vmul.f32 %v6708_v28, %v5289_v54 }
 0x3b2   : > { %2376 = vrot.lane.b32.xlu0 %v6555_v11, %s3949_s29  ;;  %2378 = vrot.lane.b32.xlu1 %v6557_v16, %s3949_s29 }
 0x3b6   : > { %2380 = vrot.lane.b32.xlu0 %v6556_v42, %s3949_s29  ;;  %2711 = vrot.lane.b32.xlu1 %v2705_v5, %s3941_s15  ;;  %v2739_v5 = vrot.slane %v2733_v52, 4 }
 0x3ba   : > { %2713 = vrot.lane.b32.xlu0 %v2706_v60, %s3941_s15  ;;  %2715 = vrot.lane.b32.xlu1 %v2707_v0, %s3941_s15  ;;  %v2738_v60 = vrot.slane %v2732_v37, 4  ;;  %v2589_v0 = vmul.f32 %v5356_v10, %v5269_v25 }
 0x3be   : > { %2576 = vrot.lane.b32.xlu0 %v2570_v20, %s3950_s9  ;;  %2578 = vrot.lane.b32.xlu1 %v2571_v4, %s3950_s9  ;;  %v2588_v20 = vmul.f32 %v5356_v10, %v5263_v55 }
 0x3c2   : > { %2580 = vrot.lane.b32.xlu0 %v2572_v3, %s3950_s9  ;;  %2645 = vrot.lane.b32.xlu1 %v2642_v33, %s3950_s9 }
 0x3c6   : > { %2647 = vrot.lane.b32.xlu0 %v2643_v29, %s3950_s9  ;;  %2649 = vrot.lane.b32.xlu1 %v2644_v38, %s3950_s9 }
 0x3ca   : > { %2002 = vperm.xlu0 %3777, %v5237_v7   ;;  %2740 = vrot.lane.b32.xlu1 %v2737_v36, %s3951_s10  ;;  %v2590_v7 = vmul.f32 %v5356_v10, %v5272_v9 }
 0x3ce   : > { %2744 = vrot.lane.b32.xlu0 %v2739_v5, %s3951_s10  ;;  %2742 = vrot.lane.b32.xlu1 %v2738_v60, %s3951_s10 }
 0x3cf   : > { %3778 = vset.pattern.permute.xlu0 %v6692_v61  ;;  %v5464_v61 = vpop.permute.xlu1 %1931 }
 0x3d0   : > { %v2841_v4 = vmul.f32 %v5464_v61, %v5394_v43  ;;  %v2840_v32 = vmul.f32 %v5464_v61, %v5380_v41  ;;  %v2842_v3 = vmul.f32 %v5464_v61, %v5391_v27 }
 0x3d2   : > { %2596 = vrot.lane.b32.xlu0 %v2589_v0, %s3949_s29  ;;  %2594 = vrot.lane.b32.xlu1 %v2588_v20, %s3949_s29 }
 0x3d6   : > { %2772 = vrot.lane.b32.xlu0 %v1936_v2, %s3952_s11  ;;  %2598 = vrot.lane.b32.xlu1 %v2590_v7, %s3949_s29  ;;  %v5478_v2 = vpop.permute.xlu1 %1957 }
 0x3d7   : > { %v2860_v15 = vmul.f32 %v5478_v2, %v5289_v54  ;;  %v2859_v17 = vmul.f32 %v5478_v2, %v5286_v49 }
 0x3da   : > { %2776 = vrot.lane.b32.xlu0 %v1938_v21, %s3952_s11  ;;  %2774 = vrot.lane.b32.xlu1 %v1937_v34, %s3952_s11  ;;  %v5486_v34 = vpop.permute.xlu0 %1981  ;;  %v5488_v21 = vpop.permute.xlu1 %1830 }
 0x3db   : > { %v2755_v33 = vmul.f32 %v5486_v34, %v5286_v49  ;;  %v2619_v28 = vmul.f32 %v5486_v34, %v5394_v43  ;;  %v2618_v26 = vmul.f32 %v5486_v34, %v5380_v41  ;;  %v2620_v60 = vmul.f32 %v5486_v34, %v5391_v27 }
 0x3de   : > { %2848 = vrot.lane.b32.xlu0 %v2841_v4, %s3949_s29  ;;  %2846 = vrot.lane.b32.xlu1 %v2840_v32, %s3949_s29  ;;  %v5500_v48 = vpop.permute.xlu0 %1966 }
 0x3df   : > { %v5502_v31 = vpop.permute.xlu1 %1968 }
 0x3e2   : > { %2880 = vrot.lane.b32.xlu0 %v2091_v12, %s3952_s11  ;;  %2850 = vrot.lane.b32.xlu1 %v2842_v3, %s3949_s29  ;;  %v2754_v12 = vmul.f32 %v5486_v34, %v5281_v56  ;;  %v5514_v38 = vpop.permute.xlu0 %1970 }
 0x3e6   : > { %2884 = vrot.lane.b32.xlu0 %v2093_v19, %s3952_s11  ;;  %2882 = vrot.lane.b32.xlu1 %v2092_v45, %s3952_s11  ;;  %v2858_v19 = vmul.f32 %v5478_v2, %v5281_v56  ;;  %v2756_v45 = vmul.f32 %v5486_v34, %v5289_v54 }
 0x3e8   : > { %v5512_v29 = vpop.permute.xlu1 %1987 }
 0x3ea   : > { %2762 = vrot.lane.b32.xlu0 %v2755_v33, %s3952_s11  ;;  %2760 = vrot.lane.b32.xlu1 %v2754_v12, %s3952_s11 }
 0x3ee   : > { %2864 = vrot.lane.b32.xlu0 %v2858_v19, %s3952_s11  ;;  %2764 = vrot.lane.b32.xlu1 %v2756_v45, %s3952_s11 }
 0x3f2   : > { %2868 = vrot.lane.b32.xlu0 %v2860_v15, %s3952_s11  ;;  %2866 = vrot.lane.b32.xlu1 %v2859_v17, %s3952_s11 }
 0x3f4   : > { %v5522_v36 = vpop.permute.xlu0 %1989  ;;  %v1992_v52 = vpop.permute.xlu1 %1991 }
 0x3f6   : > { %2626 = vrot.lane.b32.xlu0 %v2619_v28, %s3949_s29  ;;  %2624 = vrot.lane.b32.xlu1 %v2618_v26, %s3949_s29 }
 0x3f8   : > { %v2134_v37 = vpop.permute.xlu0 %2133  ;;  %v2136_v5 = vpop.permute.xlu1 %2135 }
 0x3f9   : > { %v5533_v0 = vsel %vm870_vm15, %v2134_v37, %v2136_v5 }
 0x3fa   : > { %2628 = vrot.lane.b32.xlu1 %v2620_v60, %s3949_s29  ;;  %v2920_v20 = vmul.f32 %v5533_v0, %v5360_v40 }
 0x3fc   : > { %v2138_v7 = vpop.permute.xlu0 %2137  ;;  %2924 = vrot.lane.b32.xlu0 %v2920_v20, %s3931_s14 }
 0x3fd   : > { %v5540_v4 = vsel %vm870_vm15, %v2136_v5, %v2138_v7 }
 0x3fe   : > { %v2921_v32 = vmul.f32 %v5540_v4, %v5360_v40  ;;  %v2829_v59 = vmul.f32 %v5540_v4, %v5335_v53 }
 0x400   : > { %v1940_v3 = vpop.permute.xlu0 %1939  ;;  %2926 = vrot.lane.b32.xlu1 %v2921_v32, %s3931_s14 }
 0x404   : > { %v1944_v33 = vpop.permute.xlu0 %1943 }
 0x405   : > { %v5545_v12 = vpop.permute.xlu1 %1909 }
 0x406   : > { %v2606_v13 = vmul.f32 %v5533_v0, %v5545_v12 }
 0x408   : > { %v2272_v19 = vpop.permute.xlu0 %2271 }
 0x409   : > { %v1942_v45 = vpop.permute.xlu1 %1941 }
 0x40a   : > { %v5548_v15 = vsel %vm870_vm15, %v1940_v3, %v1942_v45  ;;  %v5551_v17 = vsel %vm870_vm15, %v1942_v45, %v1944_v33 }
 0x40b   : > { %6710 = vst [vmem:[#allocation20_spill] sm:$0xff] %v5548_v15  ;;  %6711 = vst [vmem:[#allocation24_spill] sm:$0xff] %v5551_v17  ;;  %v2430_v28 = vmul.f32 %v5548_v15, %v5360_v40  ;;  %v2431_v26 = vmul.f32 %v5551_v17, %v5360_v40  ;;  %v2563_v11 = vmul.f32 %v5551_v17, %v5488_v21 }
 0x40c   : > { %v2095_v37 = vpop.permute.xlu0 %2094 }
 0x40d   : > { %v2270_v5 = vpop.permute.xlu1 %2269  ;;  %2434 = vrot.lane.b32.xlu0 %v2430_v28, %s3931_s14  ;;  %2436 = vrot.lane.b32.xlu1 %v2431_v26, %s3931_s14 }
 0x40e   : > { %v5560_v60 = vsel %vm1005_vm1, %v2270_v5, %v2272_v19 }
 0x40f   : > { %v2935_v20 = vmul.f32 %v5560_v60, %v5335_v53  ;;  %v2610_v58 = vmul.f32 %v5560_v60, %v5464_v61 }
 0x410   : > { %v2099_v7 = vpop.permute.xlu0 %2098 }
 0x411   : > { %v2274_v32 = vpop.permute.xlu1 %2273  ;;  %2939 = vrot.lane.b32.xlu0 %v2935_v20, %s3931_s14 }
 0x412   : > { %v5566_v3 = vsel %vm1005_vm1, %v2272_v19, %v2274_v32  ;;  %v2562_v32 = vmul.f32 %v5548_v15, %v5488_v21 }
 0x413   : > { %6712 = vst [vmem:[#allocation30_spill] sm:$0xff] %v5566_v3  ;;  %v2936_v33 = vmul.f32 %v5566_v3, %v5335_v53 }
 0x414   : > { %v5570_v45 = vpop.permute.xlu0 %2695 }
 0x415   : > { %v2097_v28 = vpop.permute.xlu1 %2096  ;;  %2941 = vrot.lane.b32.xlu1 %v2936_v33, %s3931_s14 }
 0x416   : > { %v5574_v26 = vsel %vm870_vm15, %v2095_v37, %v2097_v28  ;;  %v5577_v5 = vsel %vm870_vm15, %v2097_v28, %v2099_v7 }
 0x417   : > { %6713 = vst [vmem:[#allocation32_spill] sm:$0xff] %v5574_v26  ;;  %6714 = vst [vmem:[#allocation31_spill] sm:$0xff] %v5577_v5  ;;  %v2566_v20 = vmul.f32 %v5574_v26, %v5360_v40  ;;  %v2567_v19 = vmul.f32 %v5577_v5, %v5360_v40  ;;  %v2445_v37 = vmul.f32 %v5574_v26, %v5335_v53 }
 0x418   : > { %v2391_v42 = vpop.permute.xlu0 %2390  ;;  %v2446_v7 = vmul.f32 %v5577_v5, %v5335_v53 }
 0x419   : > { %v5591_v33 = vpop.permute.xlu1 %2693  ;;  %v5593_v28 = vadd.f32 %v2566_v20, %v2562_v32  ;;  %v5595_v16 = vadd.f32 %v2567_v19, %v2563_v11  ;;  %2449 = vrot.lane.b32.xlu0 %v2445_v37, %s3931_s14  ;;  %v5614_v19 = vsel %vm870_vm15, %v5512_v29, %v5522_v36  ;;  %v5618_v32 = vsel %vm870_vm15, %v5522_v36, %v1992_v52 }
 0x41a   : > { %2451 = vrot.lane.b32.xlu1 %v2446_v7, %s3931_s14  ;;  %v2806_v39 = vmul.f32 %v5614_v19, %v5488_v21  ;;  %v2807_v52 = vmul.f32 %v5618_v32, %v5488_v21 }
 0x41c   : > { %v2395_v6 = vpop.permute.xlu0 %2394 }
 0x41d   : > { %v5599_v30 = vpop.permute.xlu1 %2697 }
 0x420   : > { %v2819_v1 = vpop.permute.xlu0 %2818 }
 0x421   : > { %v2393_v51 = vpop.permute.xlu1 %2392 }
 0x422   : > { %v5602_v44 = vsel %vm870_vm15, %v2391_v42, %v2393_v51  ;;  %v5605_v24 = vsel %vm870_vm15, %v2393_v51, %v2395_v6  ;;  %v2460_v51 = vmul.f32 %v5614_v19, %v5356_v10  ;;  %v2461_v6 = vmul.f32 %v5618_v32, %v5356_v10 }
 0x423   : > { %6715 = vst [vmem:[#allocation37_spill] sm:$0xff] %v5602_v44  ;;  %6716 = vst [vmem:[#allocation36_spill] sm:$0xff] %v5605_v24  ;;  %v2950_v20 = vmul.f32 %v5602_v44, %v5356_v10  ;;  %v2951_v11 = vmul.f32 %v5605_v24, %v5356_v10 }
 0x424   : > { %v2377_v42 = vpop.permute.xlu0 %2376 }
 0x425   : > { %v2817_v37 = vpop.permute.xlu1 %2816  ;;  %2954 = vrot.lane.b32.xlu0 %v2950_v20, %s3931_s14  ;;  %2956 = vrot.lane.b32.xlu1 %v2951_v11, %s3931_s14 }
 0x426   : > { %v2822_v29 = vsel %vm870_vm15, %v2817_v37, %v2819_v1  ;;  %v2828_v37 = vmul.f32 %v5533_v0, %v5335_v53 }
 0x427   : > { %v2826_v11 = vadd.f32 %v2822_v29, %v2806_v39 }
 0x428   : > { %v2381_v7 = vpop.permute.xlu0 %2380 }
 0x429   : > { %v2821_v36 = vpop.permute.xlu1 %2820  ;;  %2464 = vrot.lane.b32.xlu0 %v2460_v51, %s3931_s14  ;;  %2466 = vrot.lane.b32.xlu1 %v2461_v6, %s3931_s14  ;;  %v2830_v6 = vadd.f32 %v2828_v37, %v2826_v11 }
 0x42a   : > { %v2823_v20 = vsel %vm870_vm15, %v2819_v1, %v2821_v36 }
 0x42b   : > { %v2827_v63 = vadd.f32 %v2823_v20, %v2807_v52  ;;  %v2836_v20 = vmul.f32 %v5602_v44, %v5545_v12 }
 0x42c   : > { %v5634_v46 = vpop.permute.xlu0 %2713 }
 0x42d   : > { %v2379_v23 = vpop.permute.xlu1 %2378  ;;  %v2831_v8 = vadd.f32 %v2829_v59, %v2827_v63 }
 0x42e   : > { %v5641_v35 = vsel %vm870_vm15, %v2377_v42, %v2379_v23  ;;  %v5644_v51 = vsel %vm870_vm15, %v2379_v23, %v2381_v7  ;;  %v2837_v42 = vmul.f32 %v5605_v24, %v5545_v12 }
 0x42f   : > { %6717 = vst [vmem:[#allocation38_spill] sm:$0xff] %v5644_v51  ;;  %v2832_v39 = vmul.f32 %v5641_v35, %v5356_v10  ;;  %v2833_v1 = vmul.f32 %v5644_v51, %v5356_v10 }
 0x430   : > { %v2577_v29 = vpop.permute.xlu0 %2576 }
 0x431   : > { %v2712_v36 = vpop.permute.xlu1 %2711  ;;  %v2834_v52 = vadd.f32 %v2832_v39, %v2830_v6  ;;  %v2835_v26 = vadd.f32 %v2833_v1, %v2831_v8  ;;  %v2481_v1 = vmul.f32 %v5533_v0, %v5464_v61 }
 0x433   : > { %v5654_v23 = vadd.f32 %v2836_v20, %v2834_v52  ;;  %v5656_v7 = vadd.f32 %v2837_v42, %v2835_v26 }
 0x434   : > { %v2581_v63 = vpop.permute.xlu0 %2580 }
 0x435   : > { %v5658_v59 = vpop.permute.xlu1 %2715 }
 0x438   : > { %v2648_v37 = vpop.permute.xlu0 %2647 }
 0x439   : > { %v2579_v11 = vpop.permute.xlu1 %2578 }
 0x43a   : > { %v2583_v62 = vsel %vm1005_vm1, %v2579_v11, %v2581_v63 }
 0x43b   : > { %v2587_v10 = vadd.f32 %v2583_v62, %v5595_v16  ;;  %v2614_v16 = vmul.f32 %v5602_v44, %v5478_v2  ;;  %v5710_v62 = vsel %vm759_vm14, %v5502_v31, %v5514_v38  ;;  %v2684_v38 = vmul.f32 %v5618_v32, %v5360_v40 }
 0x43d   : > { %v2646_v15 = vpop.permute.xlu1 %2645 }
 0x43e   : > { %v5661_v5 = vsel %vm1005_vm1, %v2646_v15, %v2648_v37  ;;  %v2482_v15 = vmul.f32 %v5540_v4, %v5464_v61 }
 0x43f   : > { %v2971_v6 = vmul.f32 %v5661_v5, %v5464_v61 }
 0x441   : > { %v2650_v8 = vpop.permute.xlu1 %2649  ;;  %2975 = vrot.lane.b32.xlu0 %v2971_v6, %s3931_s14  ;;  %v2582_v6 = vsel %vm1005_vm1, %v2577_v29, %v2579_v11 }
 0x442   : > { %v5667_v39 = vsel %vm1005_vm1, %v2648_v37, %v2650_v8  ;;  %v2586_v8 = vadd.f32 %v2582_v6, %v5593_v28  ;;  %v5696_v28 = vsel %vm759_vm14, %v5500_v48, %v5502_v31  ;;  %v2607_v6 = vmul.f32 %v5540_v4, %v5545_v12 }
 0x443   : > { %v2972_v26 = vmul.f32 %v5667_v39, %v5464_v61 }
 0x445   : > { %v5673_v52 = vpop.permute.xlu0 %2002  ;;  %v2741_v20 = vpop.permute.xlu1 %2740  ;;  %2977 = vrot.lane.b32.xlu1 %v2972_v26, %s3931_s14  ;;  %2485 = vrot.lane.b32.xlu0 %v2481_v1, %s3931_s14 }
 0x449   : > { %v5679_v42 = vpop.permute.xlu0 %2744  ;;  %v5681_v37 = vpop.permute.xlu1 %2742  ;;  %2487 = vrot.lane.b32.xlu1 %v2482_v15, %s3931_s14 }
 0x44d   : > { %v2597_v17 = vpop.permute.xlu0 %2596  ;;  %v2595_v50 = vpop.permute.xlu1 %2594 }
 0x44e   : > { %v2600_v26 = vsel %vm870_vm15, %v2595_v50, %v2597_v17  ;;  %v2683_v50 = vmul.f32 %v5614_v19, %v5360_v40 }
 0x44f   : > { %v2604_v1 = vadd.f32 %v2600_v26, %v2586_v8 }
 0x451   : > { %v2608_v15 = vadd.f32 %v2606_v13, %v2604_v1  ;;  %v2773_v57 = vpop.permute.xlu0 %2772  ;;  %v2599_v29 = vpop.permute.xlu1 %2598  ;;  %v2679_v13 = vmul.f32 %v5696_v28, %v5488_v21 }
 0x452   : > { %v2601_v63 = vsel %vm870_vm15, %v2597_v17, %v2599_v29 }
 0x453   : > { %v2605_v11 = vadd.f32 %v2601_v63, %v2587_v10  ;;  %v2612_v8 = vadd.f32 %v2610_v58, %v2608_v15  ;;  %v2611_v10 = vmul.f32 %v5566_v3, %v5464_v61  ;;  %v2699_v58 = vsel %vm870_vm15, %v5591_v33, %v5570_v45 }
 0x454   : > { %v2685_v31 = vadd.f32 %v2683_v50, %v2679_v13  ;;  %v2615_v63 = vmul.f32 %v5605_v24, %v5478_v2 }
 0x455   : > { %v2609_v48 = vadd.f32 %v2607_v6, %v2605_v11  ;;  %v2777_v26 = vpop.permute.xlu0 %2776  ;;  %v2775_v1 = vpop.permute.xlu1 %2774  ;;  %v5712_v17 = vadd.f32 %v2614_v16, %v2612_v8  ;;  %v2717_v11 = vsel %vm759_vm14, %v2712_v36, %v5634_v46  ;;  %v2680_v8 = vmul.f32 %v5710_v62, %v5488_v21 }
 0x456   : > { %v5720_v15 = vsel %vm1251_vm3, %v2773_v57, %v2775_v1  ;;  %v5723_v29 = vsel %vm1251_vm3, %v2775_v1, %v2777_v26  ;;  %v2703_v50 = vadd.f32 %v2699_v58, %v2685_v31  ;;  %v2700_v26 = vsel %vm870_vm15, %v5570_v45, %v5599_v30 }
 0x457   : > { %v2986_v6 = vmul.f32 %v5720_v15, %v5478_v2  ;;  %v2987_v57 = vmul.f32 %v5723_v29, %v5478_v2  ;;  %v2613_v33 = vadd.f32 %v2611_v10, %v2609_v48  ;;  %v2686_v1 = vadd.f32 %v2684_v38, %v2680_v8 }
 0x458   : > { %v2721_v3 = vadd.f32 %v2717_v11, %v2703_v50  ;;  %v2718_v48 = vsel %vm759_vm14, %v5634_v46, %v5658_v59  ;;  %v2496_v10 = vmul.f32 %v5641_v35, %v5478_v2  ;;  %v2497_v58 = vmul.f32 %v5644_v51, %v5478_v2 }
 0x459   : > { %v2849_v16 = vpop.permute.xlu0 %2848  ;;  %v2847_v13 = vpop.permute.xlu1 %2846  ;;  %2990 = vrot.lane.b32.xlu0 %v2986_v6, %s3931_s14  ;;  %2992 = vrot.lane.b32.xlu1 %v2987_v57, %s3931_s14  ;;  %v5742_v36 = vadd.f32 %v2615_v63, %v2613_v33  ;;  %v2704_v31 = vadd.f32 %v2700_v26, %v2686_v1  ;;  %v2723_v30 = vmul.f32 %v5641_v35, %v5545_v12 }
 0x45a   : > { %v2746_v38 = vsel %vm1140_vm2, %v2741_v20, %v5681_v37  ;;  %v2724_v63 = vmul.f32 %v5644_v51, %v5545_v12  ;;  %v2727_v8 = vmul.f32 %v5602_v44, %v5464_v61  ;;  %v2747_v20 = vsel %vm1140_vm2, %v5681_v37, %v5679_v42 }
 0x45b   : > { %v2725_v46 = vadd.f32 %v2723_v30, %v2721_v3  ;;  %v2722_v59 = vadd.f32 %v2718_v48, %v2704_v31  ;;  %v2750_v11 = vmul.f32 %v2746_v38, %v5478_v2  ;;  %v2728_v42 = vmul.f32 %v5605_v24, %v5464_v61 }
 0x45c   : > { %vm6738_vm2 = vcmask 1031168  }
 0x45d   : > { %v2881_v45 = vpop.permute.xlu0 %2880  ;;  %v2851_v6 = vpop.permute.xlu1 %2850  ;;  %2500 = vrot.lane.b32.xlu0 %v2496_v10, %s3931_s14  ;;  %2502 = vrot.lane.b32.xlu1 %v2497_v58, %s3931_s14  ;;  %v2726_v3 = vadd.f32 %v2724_v63, %v2722_v59  ;;  %v2729_v10 = vadd.f32 %v2727_v8, %v2725_v46  ;;  %v2751_v58 = vmul.f32 %v2747_v20, %v5478_v2  ;;  %v6719_v8 = vld [vmem:[#allocation46_spill] sm:$0xff] }
 0x45e   : > { %v2782_v46 = vmul.f32 %v5720_v15, %v5673_v52  ;;  %v3018_v20 = vmul.f32 %v6719_v8, %v5289_v54  ;;  %v2876_v8 = vmul.f32 %v5720_v15, %v5486_v34 }
 0x45f   : > { %v2752_v38 = vadd.f32 %v2750_v11, %v2729_v10  ;;  %v2730_v63 = vadd.f32 %v2728_v42, %v2726_v3  ;;  %v2512_v11 = vmul.f32 %v5605_v24, %v5486_v34  ;;  %v2853_v3 = vsel %vm870_vm15, %v2849_v16, %v2851_v6 }
 0x461   : > { %v2885_v57 = vpop.permute.xlu0 %2884  ;;  %v2883_v33 = vpop.permute.xlu1 %2882 }
 0x462   : > { %v2886_v50 = vsel %vm1251_vm3, %v2881_v45, %v2883_v33  ;;  %v2887_v26 = vsel %vm1251_vm3, %v2883_v33, %v2885_v57  ;;  %v2511_v45 = vmul.f32 %v5602_v44, %v5486_v34  ;;  %v6718_v57 = vld [vmem:[#allocation48_spill] sm:$0xff]  ;;  %v2753_v44 = vadd.f32 %v2751_v58, %v2730_v63 }
 0x463   : > { %v3001_v1 = vmul.f32 %v2886_v50, %v5486_v34  ;;  %v3002_v48 = vmul.f32 %v2887_v26, %v5486_v34  ;;  %v3017_v33 = vmul.f32 %v5286_v49, %v6718_v57  ;;  %v3021_v58 = vmul.f32 %v3018_v20, %v5673_v52 }
 0x465   : > { %v2763_v31 = vpop.permute.xlu0 %2762  ;;  %v2761_v30 = vpop.permute.xlu1 %2760  ;;  %3005 = vrot.lane.b32.xlu0 %v3001_v1, %s3931_s14  ;;  %3007 = vrot.lane.b32.xlu1 %v3002_v48, %s3931_s14  ;;  %v2852_v1 = vsel %vm870_vm15, %v2847_v13, %v2849_v16  ;;  %v3020_v42 = vmul.f32 %v3017_v33, %v5673_v52  ;;  %v2783_v13 = vmul.f32 %v5723_v29, %v5673_v52 }
 0x466   : > { %v2766_v37 = vsel %vm1251_vm3, %v2761_v30, %v2763_v31  ;;  %v2857_v16 = vadd.f32 %v2853_v3, %v5656_v7  ;;  %v2890_v3 = vmul.f32 %v2886_v50, %v5673_v52  ;;  %v2655_v50 = vmul.f32 %v5661_v5, %v5673_v52 }
 0x467   : > { %v2770_v59 = vadd.f32 %v2766_v37, %v2752_v38  ;;  %v6720_v37 = vld [vmem:[#allocation47_spill] sm:$0xff] }
 0x468   : > { %v3016_v57 = vmul.f32 %v6720_v37, %v5281_v56 }
 0x469   : > { %v2784_v48 = vadd.f32 %v2782_v46, %v2770_v59  ;;  %v2865_v10 = vpop.permute.xlu0 %2864  ;;  %v2765_v30 = vpop.permute.xlu1 %2764  ;;  %2515 = vrot.lane.b32.xlu0 %v2511_v45, %s3931_s14  ;;  %2517 = vrot.lane.b32.xlu1 %v2512_v11, %s3931_s14  ;;  %v2856_v45 = vadd.f32 %v2852_v1, %v5654_v23 }
 0x46a   : > { %v2767_v38 = vsel %vm1251_vm3, %v2763_v31, %v2765_v30  ;;  %v3019_v63 = vmul.f32 %v3016_v57, %v5673_v52 }
 0x46b   : > { %v2788_v46 = vrot.slane %v2784_v48, 1  ;;  %v2771_v59 = vadd.f32 %v2767_v38, %v2753_v44  ;;  %v2877_v44 = vmul.f32 %v5723_v29, %v5486_v34  ;;  %v2891_v38 = vmul.f32 %v2887_v26, %v5673_v52 }
 0x46d   : > { %v2792_v6 = vadd.f32 %v2788_v46, %v2784_v48  ;;  %v2785_v31 = vadd.f32 %v2783_v13, %v2771_v59  ;;  %v2869_v11 = vpop.permute.xlu0 %2868  ;;  %v2867_v33 = vpop.permute.xlu1 %2866  ;;  %3027 = vrot.lane.b32.xlu0 %v3020_v42, %s3949_s29  ;;  %3029 = vrot.lane.b32.xlu1 %v3021_v58, %s3949_s29 }
 0x46e   : > { %v2870_v23 = vsel %vm1251_vm3, %v2865_v10, %v2867_v33  ;;  %v2871_v20 = vsel %vm1251_vm3, %v2867_v33, %v2869_v11  ;;  %vm6742_vm3 = vmmov %vm6738_vm2 }
 0x46f   : > { %v2794_v1 = vsub.f32 0.0, %v2792_v6  ;;  %v2789_v7 = vrot.slane %v2785_v31, 1  ;;  %v2874_v48 = vadd.f32 %v2870_v23, %v2856_v45  ;;  %v2875_v30 = vadd.f32 %v2871_v20, %v2857_v16 }
 0x471   : > { %v2796_v42 = vmul.f32 1.442695, %v2794_v1  ;;  %v2793_v37 = vadd.f32 %v2789_v7, %v2785_v31  ;;  %v2878_v57 = vadd.f32 %v2876_v8, %v2874_v48  ;;  %v2879_v13 = vadd.f32 %v2877_v44, %v2875_v30  ;;  %v2627_v15 = vpop.permute.xlu0 %2626  ;;  %v2625_v46 = vpop.permute.xlu1 %2624  ;;  %3025 = vrot.lane.b32.xlu0 %v3019_v63, %s3949_s29 }
 0x472   : > { %v2630_v29 = vsel %vm870_vm15, %v2625_v46, %v2627_v15  ;;  %v2656_v63 = vmul.f32 %v5667_v39, %v5673_v52 }
 0x473   : > { %3781 = vpow2.f32 %v2796_v42  ;;  %v2795_v10 = vsub.f32 0.0, %v2793_v37  ;;  %v2892_v59 = vadd.f32 %v2890_v3, %v2878_v57  ;;  %v2893_v58 = vadd.f32 %v2891_v38, %v2879_v13 }
 0x474   : > { %v2634_v45 = vadd.f32 %v2630_v29, %v5712_v17 }
 0x475   : > { %v2798_v26 = vmul.f32 1.442695, %v2795_v10  ;;  %v2896_v16 = vrot.slane %v2892_v59, 1  ;;  %v2897_v6 = vrot.slane %v2893_v58, 1  ;;  %v2629_v31 = vpop.permute.xlu1 %2628 }
 0x476   : > { %v2657_v11 = vadd.f32 %v2655_v50, %v2634_v45  ;;  %v2631_v33 = vsel %vm870_vm15, %v2627_v15, %v2629_v31  ;;  %v5821_v31 = vpop.permute.xlu0 %2924 }
 0x477   : > { %3783 = vpow2.f32 %v2798_v26  ;;  %v2900_v8 = vadd.f32 %v2896_v16, %v2892_v59  ;;  %v2901_v44 = vadd.f32 %v2897_v6, %v2893_v58  ;;  %v2635_v23 = vadd.f32 %v2631_v33, %v5742_v36 }
 0x478   : > { %v2661_v20 = vrot.slane %v2657_v11, 1 }
 0x479   : > { %v2902_v17 = vsub.f32 0.0, %v2900_v8  ;;  %v2903_v1 = vsub.f32 0.0, %v2901_v44  ;;  %v2658_v7 = vadd.f32 %v2656_v63, %v2635_v23 }
 0x47a   : > { %v2665_v5 = vadd.f32 %v2661_v20, %v2657_v11 }
 0x47b   : > { %v2904_v48 = vmul.f32 1.442695, %v2902_v17  ;;  %v2906_v30 = vmul.f32 1.442695, %v2903_v1  ;;  %v2662_v3 = vrot.slane %v2658_v7, 1 }
 0x47c   : > { %v2667_v38 = vsub.f32 0.0, %v2665_v5 }
 0x47d   : > { %3785 = vpow2.f32 %v2904_v48  ;;  %v2666_v42 = vadd.f32 %v2662_v3, %v2658_v7 }
 0x47e   : > { %3787 = vpow2.f32 %v2906_v30  ;;  %v2669_v39 = vmul.f32 1.442695, %v2667_v38 }
 0x47f   : > { %v2668_v13 = vsub.f32 0.0, %v2666_v42  ;;  %v5825_v44 = vpop.permute.xlu0 %2434  ;;  %v5837_v42 = vpop.permute.xlu1 %2926 }
 0x480   : > { %v3782_v37 = vpop.eup %3781 }
 0x481   : > { %v2800_v57 = vadd.f32 1.0, %v3782_v37  ;;  %v2671_v36 = vmul.f32 1.442695, %v2668_v13  ;;  %v6721_v13 = vrot.slane %v5269_v25, 6 }
 0x483   : > { %3789 = vrcp.f32 %v2800_v57  ;;  %v5829_v48 = vpop.permute.xlu0 %2939 }
 0x484   : > { %v3784_v15 = vpop.eup %3783  ;;  %3791 = vpow2.f32 %v2669_v39 }
 0x485   : > { %v2801_v46 = vadd.f32 1.0, %v3784_v15  ;;  %v5847_v15 = vpop.permute.xlu1 %2436 }
 0x487   : > { %3793 = vrcp.f32 %v2801_v46 }
 0x488   : > { %3795 = vpow2.f32 %v2671_v36 }
 0x48a   : > { %v3786_v29 = vpop.eup %3785 }
 0x48b   : > { %v2908_v10 = vadd.f32 1.0, %v3786_v29  ;;  %v3788_v59 = vpop.eup %3787  ;;  %v5833_v38 = vpop.permute.xlu0 %2449  ;;  %v2424_v29 = vmul.f32 %v5488_v21, %v5281_v56 }
 0x48c   : > { %v2909_v58 = vadd.f32 1.0, %v3788_v59 }
 0x48d   : > { %3797 = vrcp.f32 %v2908_v10  ;;  %v6722_v10 = vrot.slane %v5272_v9, 6  ;;  %v2442_v59 = vadd.f32 %v5825_v44, %v2424_v29 }
 0x48e   : > { %3799 = vrcp.f32 %v2909_v58  ;;  %v2942_v58 = vpop.permute.xlu1 %2941 }
 0x490   : > { %v3790_v45 = vpop.eup %3789 }
 0x491   : > { %3226 = vrot.lane.b32.xlu1 %v3790_v45, %s3931_s14  ;;  %v3792_v50 = vpop.eup %3791  ;;  %v3234_v26 = vrot.slane %v3790_v45, 7  ;;  %v3244_v33 = vrot.slane %v3790_v45, 6  ;;  %v3254_v20 = vrot.slane %v3790_v45, 5 }
 0x492   : > { %v2673_v6 = vadd.f32 1.0, %v3792_v50 }
 0x494   : > { %v3794_v16 = vpop.eup %3793  ;;  %3801 = vrcp.f32 %v2673_v6 }
 0x495   : > { %3228 = vrot.lane.b32.xlu0 %v3794_v16, %s3931_s14  ;;  %3236 = vrot.lane.b32.xlu1 %v3234_v26, %s3931_s14  ;;  %v3235_v11 = vrot.slane %v3794_v16, 7  ;;  %v3796_v63 = vpop.eup %3795  ;;  %v3245_v23 = vrot.slane %v3794_v16, 6  ;;  %v3255_v1 = vrot.slane %v3794_v16, 5  ;;  %v2457_v16 = vadd.f32 %v5833_v38, %v2442_v59 }
 0x496   : > { %v2674_v8 = vadd.f32 1.0, %v3796_v63  ;;  %v2475_v63 = vmul.f32 %v5545_v12, %v5263_v55  ;;  %v6725_v59 = vrot.slane %v5272_v9, 4 }
 0x497   : > { %v5841_v39 = vpop.permute.xlu0 %2954 }
 0x498   : > { %3803 = vrcp.f32 %v2674_v8  ;;  %v5870_v8 = vpop.permute.xlu1 %2451 }
 0x499   : > { %3238 = vrot.lane.b32.xlu0 %v3235_v11, %s3931_s14  ;;  %3246 = vrot.lane.b32.xlu1 %v3244_v33, %s3931_s14 }
 0x49a   : > { %v3798_v17 = vpop.eup %3797 }
 0x49b   : > { %v3266_v7 = vrot.slane %v3798_v17, 4  ;;  %v3800_v5 = vpop.eup %3799  ;;  %v3276_v30 = vrot.slane %v3798_v17, 3  ;;  %v5859_v45 = vpop.permute.xlu0 %2464  ;;  %v3286_v26 = vrot.slane %v3798_v17, 2 }
 0x49c   : > { %v3267_v3 = vrot.slane %v3800_v5, 4  ;;  %v3277_v37 = vrot.slane %v3800_v5, 3  ;;  %v2472_v6 = vadd.f32 %v5859_v45, %v2457_v16  ;;  %v3287_v33 = vrot.slane %v3800_v5, 2 }
 0x49d   : > { %3248 = vrot.lane.b32.xlu0 %v3245_v23, %s3931_s14  ;;  %3256 = vrot.lane.b32.xlu1 %v3254_v20, %s3931_s14  ;;  %v6723_v23 = vrot.slane %v5263_v55, 6 }
 0x49e   : > { %v2478_v20 = vadd.f32 %v2475_v63, %v2472_v6  ;;  %v6727_v6 = vld [vmem:[#allocation9_spill] sm:$0xff] }
 0x4a1   : > { %3258 = vrot.lane.b32.xlu0 %v3255_v1, %s3931_s14  ;;  %3268 = vrot.lane.b32.xlu1 %v3266_v7, %s3931_s14  ;;  %v5839_v57 = vpop.eup %3801 }
 0x4a2   : > { %v3184_v46 = vrot.slane %v5839_v57, 4  ;;  %v3194_v7 = vrot.slane %v5839_v57, 3 }
 0x4a5   : > { %3278 = vrot.lane.b32.xlu1 %v3276_v30, %s3931_s14  ;;  %3270 = vrot.lane.b32.xlu0 %v3267_v3, %s3931_s14  ;;  %v5850_v36 = vpop.eup %3803 }
 0x4a6   : > { %v3185_v50 = vrot.slane %v5850_v36, 4  ;;  %v3195_v30 = vrot.slane %v5850_v36, 3 }
 0x4a9   : > { %1869 = vrot.lane.b32.xlu1 %v6721_v13, %s3939_s12  ;;  %3280 = vrot.lane.b32.xlu0 %v3277_v37, %s3931_s14  ;;  %v2957_v37 = vpop.permute.xlu1 %2956  ;;  %v3296_v13 = vrot.slane %v3798_v17, 1  ;;  %v2173_v17 = vmul.f32 %v5360_v40, %v5391_v27 }
 0x4ad   : > { %1871 = vrot.lane.b32.xlu0 %v6722_v10, %s3939_s12  ;;  %3186 = vrot.lane.b32.xlu1 %v3184_v46, %s3931_s14  ;;  %v3297_v46 = vrot.slane %v3800_v5, 1  ;;  %v5887_v29 = vpop.permute.xlu1 %2466  ;;  %v6724_v10 = vrot.slane %v5269_v25, 4  ;;  %v6726_v5 = vld [vmem:[#allocation10_spill] sm:$0xff] }
 0x4ae   : > { %v2190_v16 = vmul.f32 %v5269_v25, %v6726_v5 }
 0x4b0   : > { %v2196_v63 = vrot.slane %v2190_v16, 4 }
 0x4b1   : > { %3188 = vrot.lane.b32.xlu0 %v3185_v50, %s3931_s14  ;;  %3288 = vrot.lane.b32.xlu1 %v3286_v26, %s3931_s14  ;;  %v2172_v26 = vmul.f32 %v5360_v40, %v5394_v43 }
 0x4b3   : > { %v5866_v11 = vpop.permute.xlu0 %2975 }
 0x4b5   : > { %3290 = vrot.lane.b32.xlu0 %v3287_v33, %s3931_s14  ;;  %1867 = vrot.lane.b32.xlu1 %v6723_v23, %s3939_s12  ;;  %v2191_v33 = vmul.f32 %v6727_v6, %v5272_v9  ;;  %v2943_v6 = vsel %vm327_vm5, %v5829_v48, %v2942_v58 }
 0x4b7   : > { %v5876_v1 = vpop.permute.xlu0 %2485  ;;  %v2978_v50 = vpop.permute.xlu1 %2977  ;;  %v2197_v23 = vrot.slane %v2191_v33, 4 }
 0x4b8   : > { %v5881_v3 = vadd.f32 %v5876_v1, %v2478_v20 }
 0x4b9   : > { %3196 = vrot.lane.b32.xlu0 %v3194_v7, %s3931_s14  ;;  %3198 = vrot.lane.b32.xlu1 %v3195_v30, %s3931_s14  ;;  %v3204_v7 = vrot.slane %v5839_v57, 2  ;;  %v3205_v30 = vrot.slane %v5850_v36, 2 }
 0x4bb   : > { %v5905_v20 = vpop.permute.xlu1 %2487 }
 0x4bd   : > { %3298 = vrot.lane.b32.xlu0 %v3296_v13, %s3931_s14  ;;  %3300 = vrot.lane.b32.xlu1 %v3297_v46, %s3931_s14  ;;  %v1882_v13 = vmul.f32 %v5286_v49, %v6697_v18  ;;  %v1883_v18 = vmul.f32 %v6696_v22, %v5289_v54  ;;  %v2914_v22 = vmul.f32 %v5488_v21, %v5263_v55 }
 0x4bf   : > { %v1892_v5 = vrot.slane %v1882_v13, 4 }
 0x4c1   : > { %1848 = vrot.lane.b32.xlu0 %v6724_v10, %s3939_s12  ;;  %1850 = vrot.lane.b32.xlu1 %v6725_v59, %s3939_s12  ;;  %v2916_v59 = vmul.f32 %v5488_v21, %v5272_v9 }
 0x4c3   : > { %v2934_v16 = vadd.f32 %v5837_v42, %v2916_v59 }
 0x4c5   : > { %2179 = vrot.lane.b32.xlu0 %v2172_v26, %s3939_s12  ;;  %2181 = vrot.lane.b32.xlu1 %v2173_v17, %s3939_s12  ;;  %v2928_v26 = vsel %vm327_vm5, %v5821_v31, %v5837_v42  ;;  %v2915_v17 = vmul.f32 %v5488_v21, %v5269_v25 }
 0x4c7   : > { %v2933_v33 = vadd.f32 %v2928_v26, %v2915_v17  ;;  %v1893_v17 = vrot.slane %v1883_v18, 4  ;;  %v2966_v18 = vmul.f32 %v5545_v12, %v5394_v43 }
 0x4c9   : > { %2200 = vrot.lane.b32.xlu0 %v2196_v63, %s3940_s13  ;;  %2202 = vrot.lane.b32.xlu1 %v2197_v23, %s3940_s13  ;;  %v6728_v63 = vrot.slane %v5263_v55, 4  ;;  %v2949_v23 = vadd.f32 %v2942_v58, %v2934_v16  ;;  %v2948_v42 = vadd.f32 %v2943_v6, %v2933_v33  ;;  %v2932_v58 = vadd.f32 %v5821_v31, %v2914_v22 }
 0x4ca   : > { %v1881_v31 = vmul.f32 %v6695_v14, %v5281_v56 }
 0x4cb   : > { %v2993_v46 = vpop.permute.xlu1 %2992  ;;  %v5913_v10 = vpop.permute.xlu0 %2990  ;;  %v2947_v33 = vadd.f32 %v5829_v48, %v2932_v58 }
 0x4cd   : > { %3206 = vrot.lane.b32.xlu0 %v3204_v7, %s3931_s14  ;;  %3208 = vrot.lane.b32.xlu1 %v3205_v30, %s3931_s14  ;;  %v2958_v7 = vsel %vm327_vm5, %v5841_v39, %v2957_v37  ;;  %v6729_v30 = vld [vmem:[#allocation8_spill] sm:$0xff]  ;;  %v2962_v22 = vadd.f32 %v5841_v39, %v2947_v33  ;;  %v1891_v39 = vrot.slane %v1881_v31, 4 }
 0x4ce   : > { %v2189_v13 = vmul.f32 %v6729_v30, %v5263_v55  ;;  %v2963_v16 = vadd.f32 %v2958_v7, %v2948_v42  ;;  %v2967_v30 = vmul.f32 %v5545_v12, %v5391_v27  ;;  %v2979_v7 = vsel %vm327_vm5, %v5866_v11, %v2978_v50 }
 0x4cf   : > { %v5939_v59 = vpop.permute.xlu1 %2502  ;;  %v5941_v26 = vpop.permute.xlu0 %2500 }
 0x4d0   : > { %v2195_v6 = vrot.slane %v2189_v13, 4  ;;  %v2969_v42 = vadd.f32 %v2966_v18, %v2963_v16  ;;  %v2994_v13 = vsel %vm327_vm5, %v5913_v10, %v2993_v46 }
 0x4d1   : > { %1846 = vrot.lane.b32.xlu0 %v6728_v63, %s3939_s12  ;;  %1896 = vrot.lane.b32.xlu1 %v1892_v5, %s3941_s15  ;;  %v2171_v63 = vmul.f32 %v5360_v40, %v5380_v41  ;;  %v2964_v5 = vadd.f32 %v2957_v37, %v2949_v23  ;;  %v3214_v37 = vrot.slane %v5839_v57, 1  ;;  %v2965_v57 = vmul.f32 %v5545_v12, %v5380_v41 }
 0x4d3   : > { %v2970_v23 = vadd.f32 %v2967_v30, %v2964_v5  ;;  %v3215_v5 = vrot.slane %v5850_v36, 1  ;;  %v2968_v30 = vadd.f32 %v2965_v57, %v2962_v22  ;;  %v2309_v36 = vmul.f32 %v5360_v40, %v5289_v54 }
 0x4d4   : > { %v2307_v57 = vmul.f32 %v5360_v40, %v5281_v56 }
 0x4d5   : > { %1898 = vrot.lane.b32.xlu0 %v1893_v17, %s3941_s15  ;;  %2177 = vrot.lane.b32.xlu1 %v2171_v63, %s3939_s12  ;;  %v2985_v48 = vadd.f32 %v2978_v50, %v2970_v23  ;;  %v2984_v17 = vadd.f32 %v2979_v7, %v2969_v42  ;;  %v2983_v33 = vadd.f32 %v5866_v11, %v2968_v30 }
 0x4d6   : > { %v2308_v7 = vmul.f32 %v5360_v40, %v5286_v49  ;;  %v1913_v30 = vmul.f32 %v5545_v12, %v5286_v49 }
 0x4d7   : > { %v3008_v24 = vpop.permute.xlu1 %3007  ;;  %v3006_v51 = vpop.permute.xlu0 %3005  ;;  %v3000_v58 = vadd.f32 %v2993_v46, %v2985_v48  ;;  %v2998_v22 = vadd.f32 %v5913_v10, %v2983_v33 }
 0x4d8   : > { %v3009_v16 = vsel %vm327_vm5, %v3006_v51, %v3008_v24 }
 0x4d9   : > { %2198 = vrot.lane.b32.xlu0 %v2195_v6, %s3940_s13  ;;  %3216 = vrot.lane.b32.xlu1 %v3214_v37, %s3931_s14  ;;  %v2999_v6 = vadd.f32 %v2994_v13, %v2984_v17  ;;  %v3015_v50 = vadd.f32 %v3008_v24, %v3000_v58  ;;  %v3013_v11 = vadd.f32 %v3006_v51, %v2998_v22  ;;  %s242_s13 = sand.u32 1, %s3919_s22  }
 0x4da   : > { %v2052_v17 = vmul.f32 %v5335_v53, %v5394_v43  ;;  %v2053_v51 = vmul.f32 %v5335_v53, %v5391_v27  ;;  %v2224_v22 = vmul.f32 %v5318_v47, %v5464_v61  ;;  %v2426_v47 = vmul.f32 %v5488_v21, %v5289_v54  ;;  %s3559_s18 = scalar_lea.sflag [#allocation4], %s242_s13 }
 0x4db   : > { %v5965_v14 = vpop.permute.xlu1 %2517  ;;  %v5967_v63 = vpop.permute.xlu0 %2515  ;;  %v3014_v18 = vadd.f32 %v3009_v16, %v2999_v6 }
 0x4dd   : > { %3218 = vrot.lane.b32.xlu0 %v3215_v5, %s3931_s14  ;;  %1894 = vrot.lane.b32.xlu1 %v1891_v39, %s3941_s15 }
 0x4df   : > { %v3030_v37 = vpop.permute.xlu1 %3029  ;;  %v3028_v23 = vpop.permute.xlu0 %3027 }
 0x4e0   : > { %v3038_v46 = vadd.f32 %v3030_v37, %v3015_v50  ;;  %v3032_v31 = vsel %vm870_vm15, %v3028_v23, %v3030_v37  ;;  %v2051_v37 = vmul.f32 %v5335_v53, %v5380_v41 }
 0x4e1   : > { %v3037_v42 = vadd.f32 %v3032_v31, %v3014_v18  ;;  %2315 = vrot.lane.b32.xlu0 %v2308_v7, %s3949_s29  ;;  %2317 = vrot.lane.b32.xlu1 %v2309_v36, %s3949_s29  ;;  %v1914_v18 = vmul.f32 %v5545_v12, %v5289_v54 }
 0x4e2   : > { %v3044_v24 = vrot.slane %v3038_v46, 1 }
 0x4e3   : > { %v3043_v48 = vrot.slane %v3037_v42, 1  ;;  %v3026_v13 = vpop.permute.xlu0 %3025 }
 0x4e4   : > { %v3031_v5 = vsel %vm870_vm15, %v3026_v13, %v3028_v23  ;;  %v3050_v39 = vadd.f32 %v3044_v24, %v3038_v46  ;;  %v6730_v23 = vld [vmem:[#allocation39_spill] sm:$0xff]  ;;  %v1912_v13 = vmul.f32 %v5545_v12, %v5281_v56 }
 0x4e5   : > { %v3036_v58 = vadd.f32 %v3031_v5, %v3013_v11  ;;  %2313 = vrot.lane.b32.xlu0 %v2307_v57, %s3949_s29  ;;  %2059 = vrot.lane.b32.xlu1 %v2052_v17, %s3939_s12  ;;  %v3049_v10 = vadd.f32 %v3043_v48, %v3037_v42  ;;  %v278_v7 = vsub.f32 0.0, %v6730_v23  ;;  %v6731_v42 = vld [vmem:[#allocation23_spill] sm:$0xff]  ;;  %v2438_v5 = vsel %vm327_vm5, %v5825_v44, %v5847_v15 }
 0x4e6   : > { %v3053_v6 = vsub.f32 0.0, %v3050_v39  ;;  %v2225_v24 = vmul.f32 %v6731_v42, %v5464_v61  ;;  %v6732_v57 = vld [vmem:[#allocation27_spill] sm:$0xff]  ;;  %v2425_v39 = vmul.f32 %v5488_v21, %v5286_v49  ;;  %v2243_v23 = vmul.f32 %v5478_v2, %v5272_v9 }
 0x4e7   : > { %v3042_v16 = vrot.slane %v3036_v58, 1  ;;  %v3052_v50 = vsub.f32 0.0, %v3049_v10  ;;  %v279_v11 = vmul.f32 1.442695, %v278_v7  ;;  %v2070_v17 = vmul.f32 %v6732_v57, %v5286_v49 }
 0x4e8   : > { %v3058_v36 = vmul.f32 1.442695, %v3053_v6  ;;  %v2453_v10 = vsel %vm327_vm5, %v5833_v38, %v5870_v8  ;;  %v2468_v49 = vsel %vm327_vm5, %v5859_v45, %v5887_v29  ;;  %v2241_v7 = vmul.f32 %v5478_v2, %v5263_v55 }
 0x4e9   : > { %2061 = vrot.lane.b32.xlu0 %v2053_v51, %s3939_s12  ;;  %1920 = vrot.lane.b32.xlu1 %v1913_v30, %s3949_s29  ;;  %v3048_v33 = vadd.f32 %v3042_v16, %v3036_v58  ;;  %v3056_v46 = vmul.f32 1.442695, %v3052_v50  ;;  %v2444_v58 = vadd.f32 %v5847_v15, %v2426_v47  ;;  %v2071_v16 = vmul.f32 %v6732_v57, %v5289_v54  ;;  %v6733_v51 = vld [vmem:[#allocation21_spill] sm:$0xff] }
 0x4ea   : > { %3805 = vpow2.f32 %v3058_v36  ;;  %v2223_v44 = vmul.f32 %v6733_v51, %v5464_v61  ;;  %v2443_v30 = vadd.f32 %v2438_v5, %v2425_v39  ;;  %v2069_v54 = vmul.f32 %v6732_v57, %v5281_v56 }
 0x4eb   : > { %v3051_v31 = vsub.f32 0.0, %v3048_v33  ;;  %3807 = vpow2.f32 %v3056_v46  ;;  %v2459_v6 = vadd.f32 %v5870_v8, %v2444_v58  ;;  %v2242_v50 = vmul.f32 %v5478_v2, %v5269_v25 }
 0x4ec   : > { %3809 = vpow2.f32 %v279_v11  ;;  %v2458_v15 = vadd.f32 %v2453_v10, %v2443_v30  ;;  %v2477_v8 = vmul.f32 %v5545_v12, %v5272_v9  ;;  %v2489_v56 = vsel %vm327_vm5, %v5876_v1, %v5905_v20 }
 0x4ed   : > { %1922 = vrot.lane.b32.xlu0 %v1914_v18, %s3949_s29  ;;  %2057 = vrot.lane.b32.xlu1 %v2051_v37, %s3939_s12  ;;  %v3054_v48 = vmul.f32 1.442695, %v3051_v31  ;;  %v2474_v38 = vadd.f32 %v5887_v29, %v2459_v6  ;;  %v2476_v18 = vmul.f32 %v5545_v12, %v5269_v25  ;;  %v2339_v47 = vmul.f32 %v5464_v61, %v5272_v9 }
 0x4ee   : > { %v2473_v33 = vadd.f32 %v2468_v49, %v2458_v15  ;;  %v2337_v30 = vmul.f32 %v5464_v61, %v5263_v55  ;;  %v2527_v49 = vmul.f32 %v5673_v52, %v5394_v43  ;;  %v2508_v15 = vadd.f32 %v5941_v26, %v5881_v3 }
 0x4ef   : > { %3811 = vpow2.f32 %v3054_v48  ;;  %v2480_v29 = vadd.f32 %v2477_v8, %v2474_v38  ;;  %v6735_v8 = vld [vmem:[#allocation28_spill] sm:$0xff] }
 0x4f0   : > { %v2479_v36 = vadd.f32 %v2476_v18, %v2473_v33  ;;  %v6736_v18 = vld [vmem:[#allocation18_spill] sm:$0xff] }
 0x4f1   : > { %2231 = vrot.lane.b32.xlu0 %v2224_v22, %s3950_s9  ;;  %2233 = vrot.lane.b32.xlu1 %v2225_v24, %s3950_s9  ;;  %v2495_v31 = vadd.f32 %v5905_v20, %v2480_v29  ;;  %v2504_v22 = vsel %vm327_vm5, %v5941_v26, %v5939_v59  ;;  %v2338_v20 = vmul.f32 %v5464_v61, %v5269_v25 }
 0x4f2   : > { %v2494_v1 = vadd.f32 %v2489_v56, %v2479_v36  ;;  %v2526_v26 = vmul.f32 %v5673_v52, %v5380_v41  ;;  %v2007_v36 = vmul.f32 %v5673_v52, %v5272_v9 }
 0x4f3   : > { %v2510_v48 = vadd.f32 %v5939_v59, %v2495_v31 }
 0x4f4   : > { %v2509_v39 = vadd.f32 %v2504_v22, %v2494_v1 }
 0x4f5   : > { %1918 = vrot.lane.b32.xlu0 %v1912_v13, %s3949_s29  ;;  %2077 = vrot.lane.b32.xlu1 %v2070_v17, %s3949_s29  ;;  %v2519_v13 = vsel %vm327_vm5, %v5967_v63, %v5965_v14  ;;  %v2525_v58 = vadd.f32 %v5965_v14, %v2510_v48  ;;  %v6734_v14 = vld [vmem:[#allocation22_spill] sm:$0xff]  ;;  %v2005_v48 = vmul.f32 %v5673_v52, %v5263_v55 }
 0x4f6   : > { %v2524_v59 = vadd.f32 %v2519_v13, %v2509_v39  ;;  %v2359_v6 = vmul.f32 %v6734_v14, %v5478_v2  ;;  %v2113_v13 = vmul.f32 %v5486_v34, %v5269_v25  ;;  %v2114_v14 = vmul.f32 %v5486_v34, %v5272_v9 }
 0x4f7   : > { %v3806_v45 = vpop.eup %3805 }
 0x4f8   : > { %v3808_v37 = vpop.eup %3807  ;;  %v3062_v42 = vadd.f32 1.0, %v3806_v45  ;;  %v2360_v45 = vmul.f32 %v6735_v8, %v5478_v2 }
 0x4f9   : > { %2079 = vrot.lane.b32.xlu0 %v2071_v16, %s3949_s29  ;;  %2229 = vrot.lane.b32.xlu1 %v2223_v44, %s3950_s9  ;;  %v3810_v46 = vpop.eup %3809  ;;  %v3061_v24 = vadd.f32 1.0, %v3808_v37  ;;  %v2528_v16 = vmul.f32 %v5673_v52, %v5391_v27  ;;  %v2530_v27 = vadd.f32 %v2527_v49, %v2524_v59  ;;  %v2358_v37 = vmul.f32 %v6736_v18, %v5478_v2 }
 0x4fa   : > { %v281_v5 = vadd.f32 1.0, %v3810_v46  ;;  %3813 = vrcp.f32 %v3062_v42 }
 0x4fb   : > { %3815 = vrcp.f32 %v3061_v24  ;;  %v2531_v38 = vadd.f32 %v2528_v16, %v2525_v58  ;;  %v2536_v29 = vrot.slane %v2530_v27, 1 }
 0x4fc   : > { %v3812_v11 = vpop.eup %3811  ;;  %3817 = vrcp.f32 %v281_v5 }
 0x4fd   : > { %2075 = vrot.lane.b32.xlu0 %v2069_v54, %s3949_s29  ;;  %2249 = vrot.lane.b32.xlu1 %v2242_v50, %s3949_s29  ;;  %v3060_v10 = vadd.f32 1.0, %v3812_v11  ;;  %v2523_v54 = vadd.f32 %v5967_v63, %v2508_v15  ;;  %v2537_v3 = vrot.slane %v2531_v38, 1  ;;  %v2542_v22 = vadd.f32 %v2536_v29, %v2530_v27 }
 0x4ff   : > { %3819 = vrcp.f32 %v3060_v10  ;;  %v2529_v63 = vadd.f32 %v2526_v26, %v2523_v54  ;;  %v2543_v46 = vadd.f32 %v2537_v3, %v2531_v38  ;;  %v2545_v5 = vsub.f32 0.0, %v2542_v22 }
 0x501   : > { %2251 = vrot.lane.b32.xlu0 %v2243_v23, %s3949_s29  ;;  %2247 = vrot.lane.b32.xlu1 %v2241_v7, %s3949_s29  ;;  %v2006_v7 = vmul.f32 %v5673_v52, %v5269_v25  ;;  %v2535_v1 = vrot.slane %v2529_v63, 1  ;;  %v2112_v25 = vmul.f32 %v5486_v34, %v5263_v55  ;;  %v2549_v27 = vmul.f32 1.442695, %v2545_v5 }
 0x503   : > { %v6063_v17 = vpop.permute.xlu1 %3226  ;;  %v2541_v10 = vadd.f32 %v2535_v1, %v2529_v63 }
 0x505   : > { %2345 = vrot.lane.b32.xlu0 %v2338_v20, %s3949_s29  ;;  %2347 = vrot.lane.b32.xlu1 %v2339_v47, %s3949_s29  ;;  %v2546_v47 = vsub.f32 0.0, %v2543_v46  ;;  %v2544_v18 = vsub.f32 0.0, %v2541_v10 }
 0x507   : > { %v6074_v51 = vpop.permute.xlu1 %3236  ;;  %v6076_v44 = vpop.permute.xlu0 %3228  ;;  %v2551_v49 = vmul.f32 1.442695, %v2546_v47  ;;  %v2547_v46 = vmul.f32 1.442695, %v2544_v18 }
 0x508   : > { %v3814_v31 = vpop.eup %3813 }
 0x509   : > { %2343 = vrot.lane.b32.xlu0 %v2337_v30, %s3949_s29  ;;  %2366 = vrot.lane.b32.xlu1 %v2359_v6, %s3941_s15  ;;  %v3816_v42 = vpop.eup %3815  ;;  %v3353_v39 = vrot.slane %v3814_v31, 7  ;;  %v3359_v15 = vrot.slane %v3814_v31, 6  ;;  %3821 = vpow2.f32 %v2551_v49  ;;  %v3365_v63 = vrot.slane %v3814_v31, 5 }
 0x50a   : > { %v3818_v20 = vpop.eup %3817  ;;  %v3352_v58 = vrot.slane %v3816_v42, 7  ;;  %v3358_v38 = vrot.slane %v3816_v42, 6  ;;  %3823 = vpow2.f32 %v2549_v27  ;;  %v3230_v49 = vsel %vm327_vm5, %v6063_v17, %v6076_v44 }
 0x50b   : > { %v6089_v50 = vpop.permute.xlu1 %3246  ;;  %v6091_v33 = vpop.permute.xlu0 %3238  ;;  %v3418_v6 = vrot.slane %v3818_v20, 4  ;;  %v3371_v54 = vsel %vm1753_vm7, %v3814_v31, %v3353_v39  ;;  %3825 = vpow2.f32 %v2547_v46 }
 0x50c   : > { %v3820_v59 = vpop.eup %3819  ;;  %v3370_v8 = vsel %vm1753_vm7, %v3816_v42, %v3352_v58  ;;  %v3374_v55 = vsel %vm1756_vm8, %v3371_v54, %v3359_v15  ;;  %v3329_v15 = vsel %vm1753_vm7, %v6076_v44, %v6091_v33 }
 0x50d   : > { %2368 = vrot.lane.b32.xlu0 %v2360_v45, %s3941_s15  ;;  %2364 = vrot.lane.b32.xlu1 %v2358_v37, %s3941_s15  ;;  %v3351_v45 = vrot.slane %v3820_v59, 7  ;;  %v3420_v3 = vsel %vm254_vm0, %v3818_v20, %v3418_v6  ;;  %v3373_v26 = vsel %vm1756_vm8, %v3370_v8, %v3358_v38  ;;  %v3357_v29 = vrot.slane %v3820_v59, 6  ;;  %s3636_s15 = sshll.u32 %s242_s13, 4 }
 0x50e   : > { %s244_s9 = scalar_lea.vmem [#allocation3], %s3636_s15 }
 0x50f   : > { %v6101_v56 = vpop.permute.xlu1 %3256  ;;  %v6103_v23 = vpop.permute.xlu0 %3248  ;;  %s3573_s10 = sshll.u32 %s244_s9, 4  ;;  %s3574_s10 = int_to_ptr.vmem [resolvable:$true] %s3573_s10 }
 0x510   : > { %v3332_v8 = vsel %vm1756_vm8, %v3329_v15, %v6103_v23  ;;  %s3867_s19 = scalar_lea.vmem %s3574_s10, 256 }
 0x511   : > { %2013 = vrot.lane.b32.xlu0 %v2006_v7, %s3949_s29  ;;  %2015 = vrot.lane.b32.xlu1 %v2007_v36, %s3949_s29  ;;  %v3364_v7 = vrot.slane %v3816_v42, 5  ;;  %v3369_v36 = vsel %vm1753_vm7, %v3820_v59, %v3351_v45  ;;  %v3363_v42 = vrot.slane %v3820_v59, 5  ;;  %v3250_v59 = vsel %vm327_vm5, %v6089_v50, %v6103_v23  ;;  %p3868_p11 = scmp.ne.s32.totalorder %s3574_s10, %s3867_s19 }
 0x512   : > { %v3372_v31 = vsel %vm1756_vm8, %v3369_v36, %v3357_v29 }
 0x513   : > { %v6111_v24 = vpop.permute.xlu1 %3268  ;;  %v6113_v11 = vpop.permute.xlu0 %3258  ;;  %v3375_v39 = vsel %vm1759_vm9, %v3372_v31, %v3363_v42  ;;  %p3869_p12 = pnand %p3868_p11, %p4028_p5 }
 0x514   : > { %v3260_v38 = vsel %vm327_vm5, %v6101_v56, %v6113_v11 }
 0x515   : > { %2011 = vrot.lane.b32.xlu0 %v2005_v48, %s3949_s29  ;;  %2120 = vrot.lane.b32.xlu1 %v2113_v13, %s3949_s29  ;;  %v3377_v13 = vsel %vm1759_vm9, %v3374_v55, %v3365_v63  ;;  %p3870_p13 = pneg %p3869_p12 }
 0x516   : > { %v3822_v6 = vpop.eup %3821 }
 0x517   : > { %v6121_v16 = vpop.permute.xlu1 %3278  ;;  %v6123_v30 = vpop.permute.xlu0 %3270  ;;  %v2555_v55 = vadd.f32 1.0, %v3822_v6 }
 0x518   : > { %v3824_v27 = vpop.eup %3823  ;;  %v3272_v45 = vsel %vm327_vm5, %v6111_v24, %v6123_v30 }
 0x519   : > { %2122 = vrot.lane.b32.xlu0 %v2114_v14, %s3949_s29  ;;  %2118 = vrot.lane.b32.xlu1 %v2112_v25, %s3949_s29  ;;  %v3240_v14 = vsel %vm327_vm5, %v6074_v51, %v6091_v33  ;;  %v3335_v33 = vsel %vm1759_vm9, %v3332_v8, %v6113_v11  ;;  %v2554_v63 = vadd.f32 1.0, %v3824_v27  ;;  %v3327_v11 = vsel %vm1753_vm7, %v6063_v17, %v6074_v51  ;;  %v3826_v31 = vpop.eup %3825 }
 0x51a   : > { %v3328_v54 = vsel %vm1753_vm7, %v3230_v49, %v3240_v14  ;;  %v3338_v23 = vsel %vm254_vm0, %v3335_v33, %v6123_v30  ;;  %v3330_v30 = vsel %vm1756_vm8, %v3327_v11, %v6089_v50  ;;  %3827 = vrcp.f32 %v2555_v55  ;;  %v6737_v50 = vld [vmem:[#allocation7_spill] sm:$0xff] }
 0x51b   : > { %v1870_v37 = vpop.permute.xlu1 %1869  ;;  %v3281_v9 = vpop.permute.xlu0 %3280  ;;  %v3331_v44 = vsel %vm1756_vm8, %v3328_v54, %v3250_v59  ;;  %v3333_v17 = vsel %vm1759_vm9, %v3330_v30, %v6101_v56  ;;  %3829 = vrcp.f32 %v2554_v63  ;;  %v2553_v14 = vadd.f32 1.0, %v3826_v31 }
 0x51c   : > { %v3341_v36 = vsel %vm1764_vm10, %v3338_v23, %v3281_v9 }
 0x51d   : > { %3427 = vperm.xlu0 %3778, %v3818_v20   ;;  %3423 = vperm.xlu1 %3779, %v3420_v3   ;;  %v3376_v20 = vsel %vm1759_vm9, %v3373_v26, %v3364_v7  ;;  %v3282_v3 = vsel %vm327_vm5, %v6121_v16, %v3281_v9  ;;  %v3334_v26 = vsel %vm1759_vm9, %v3331_v44, %v3260_v38  ;;  %3831 = vrcp.f32 %v2553_v14 }
 0x51e   : > { %v3337_v7 = vsel %vm254_vm0, %v3334_v26, %v3272_v45 }
 0x51f   : > { %v6137_v22 = vpop.permute.xlu1 %3186  ;;  %v1872_v1 = vpop.permute.xlu0 %1871  ;;  %v3340_v46 = vsel %vm1764_vm10, %v3337_v7, %v3282_v3 }
 0x520   : > { %v6140_v48 = vsel %vm485_vm12, %v1870_v37, %v1872_v1 }
 0x521   : > { %3411 = vrot.lane.b32.xlu0 %v3377_v13, %s3949_s29  ;;  %3409 = vrot.lane.b32.xlu1 %v3376_v20, %s3949_s29  ;;  %v2168_v55 = vmul.f32 %v6140_v48, %v5488_v21 }
 0x523   : > { %v3289_v47 = vpop.permute.xlu1 %3288  ;;  %v6147_v5 = vpop.permute.xlu0 %3188 }
 0x525   : > { %3407 = vrot.lane.b32.xlu1 %v3375_v39, %s3949_s29 }
 0x527   : > { %v1868_v58 = vpop.permute.xlu1 %1867  ;;  %v3291_v10 = vpop.permute.xlu0 %3290 }
 0x528   : > { %v6155_v25 = vsel %vm485_vm12, %v1868_v58, %v1870_v37  ;;  %v3292_v29 = vsel %vm327_vm5, %v3289_v47, %v3291_v10  ;;  %v3344_v1 = vsel %vm1767_vm11, %v3341_v36, %v3291_v10  ;;  %v3336_v58 = vsel %vm254_vm0, %v3333_v17, %v6111_v24  ;;  %v3828_v36 = vpop.eup %3827  ;;  %v6741_v17 = vld [vmem:[#allocation6_spill] sm:$0xff] }
 0x529   : > { %v3343_v42 = vsel %vm1767_vm11, %v3340_v46, %v3292_v29  ;;  %v1826_v10 = vmul.f32 %v6737_v50, %v5394_v43  ;;  %v3339_v59 = vsel %vm1764_vm10, %v3336_v58, %v6121_v16  ;;  %v2048_v24 = vmul.f32 %v6140_v48, %v5360_v40  ;;  %v3830_v11 = vpop.eup %3829 }
 0x52a   : > { %v3342_v56 = vsel %vm1767_vm11, %v3339_v59, %v3289_v47  ;;  %v1878_v16 = vmul.f32 %v6140_v48, %v5335_v53  ;;  %v3832_v14 = vpop.eup %3831  ;;  %v3172_v59 = vrot.slane %v3828_v36, 6 }
 0x52b   : > { %v6175_v18 = vpop.permute.xlu1 %3198  ;;  %v6177_v37 = vpop.permute.xlu0 %3196  ;;  %v1834_v15 = vmul.f32 %v5488_v21, %v1826_v10 }
 0x52f   : > { %v3301_v13 = vpop.permute.xlu1 %3300  ;;  %v3299_v20 = vpop.permute.xlu0 %3298 }
 0x530   : > { %v3347_v39 = vsel %vm1770_vm13, %v3344_v1, %v3301_v13  ;;  %v3302_v9 = vsel %vm327_vm5, %v3299_v20, %v3301_v13  ;;  %v3345_v27 = vsel %vm1770_vm13, %v3342_v56, %v3299_v20  ;;  %v6739_v20 = vld [vmem:[#allocation24_spill] sm:$0xff] }
 0x531   : > { %3394 = vrot.lane.b32.xlu1 %v3347_v39, %s3949_s29  ;;  %v3346_v51 = vsel %vm1770_vm13, %v3343_v42, %v3302_v9  ;;  %v2213_v31 = vmul.f32 %v6739_v20, %v6732_v57  ;;  %v6740_v42 = vld [vmem:[#allocation31_spill] sm:$0xff]  ;;  %v3165_v39 = vrot.slane %v3830_v11, 7  ;;  %v3166_v9 = vrot.slane %v3828_v36, 7 }
 0x532   : > { %3392 = vrot.lane.b32.xlu0 %v3346_v51, %s3949_s29  ;;  %v2217_v48 = vmul.f32 %v6740_v42, %v5545_v12  ;;  %v1825_v51 = vmul.f32 %v6741_v17, %v5380_v41 }
 0x533   : > { %v1851_v6 = vpop.permute.xlu1 %1850  ;;  %v1849_v49 = vpop.permute.xlu0 %1848  ;;  %v3307_v41 = vsel %vm1753_vm7, %v3830_v11, %v3165_v39 }
 0x534   : > { %v1853_v38 = vsel %vm485_vm12, %v1849_v49, %v1851_v6  ;;  %v1833_v6 = vmul.f32 %v5488_v21, %v1825_v51 }
 0x535   : > { %v1857_v54 = vmul.f32 %v1853_v38, %v5360_v40  ;;  %v2044_v43 = vmul.f32 %v1853_v38, %v5488_v21  ;;  %v2047_v38 = vmul.f32 %v6155_v25, %v5360_v40 }
 0x536   : > { %3390 = vrot.lane.b32.xlu0 %v3345_v27, %s3949_s29 }
 0x537   : > { %v1859_v47 = vadd.f32 %v1857_v54, %v1834_v15  ;;  %v2182_v8 = vpop.permute.xlu1 %2181  ;;  %v2180_v45 = vpop.permute.xlu0 %2179  ;;  %v6222_v44 = vadd.f32 %v2048_v24, %v2044_v43  ;;  %v3171_v15 = vrot.slane %v3830_v11, 6  ;;  %v3308_v54 = vsel %vm1753_vm7, %v3828_v36, %v3166_v9 }
 0x538   : > { %v2184_v3 = vsel %vm485_vm12, %v2180_v45, %v2182_v8  ;;  %v3164_v43 = vrot.slane %v3832_v14, 7 }
 0x539   : > { %v6224_v33 = vadd.f32 %v1878_v16, %v1859_v47  ;;  %v2188_v63 = vadd.f32 %v2184_v3, %v2168_v55  ;;  %v1877_v16 = vmul.f32 %v6155_v25, %v5335_v53  ;;  %v3310_v55 = vsel %vm1756_vm8, %v3307_v41, %v3171_v15 }
 0x53b   : > { %v2203_v26 = vpop.permute.xlu1 %2202  ;;  %v2201_v23 = vpop.permute.xlu0 %2200 }
 0x53c   : > { %v2205_v29 = vsel %vm6738_vm2, %v2201_v23, %v2203_v26  ;;  %v3311_v26 = vsel %vm1756_vm8, %v3308_v54, %v3172_v59 }
 0x53d   : > { %v2209_v7 = vmul.f32 %v2205_v29, %v5335_v53  ;;  %v3170_v29 = vrot.slane %v3832_v14, 6 }
 0x53f   : > { %v2211_v46 = vadd.f32 %v2209_v7, %v2188_v63  ;;  %v3209_v1 = vpop.permute.xlu1 %3208  ;;  %v6231_v13 = vpop.permute.xlu0 %3206  ;;  %v3177_v63 = vrot.slane %v3830_v11, 5  ;;  %v3178_v7 = vrot.slane %v3828_v36, 5  ;;  %v3200_v36 = vsel %vm327_vm5, %v6177_v37, %v6175_v18 }
 0x541   : > { %v2215_v30 = vadd.f32 %v2213_v31, %v2211_v46  ;;  %v3306_v31 = vsel %vm1753_vm7, %v3832_v14, %v3164_v43  ;;  %v3313_v17 = vsel %vm1759_vm9, %v3310_v55, %v3177_v63  ;;  %v3314_v51 = vsel %vm1759_vm9, %v3311_v26, %v3178_v7 }
 0x542   : > { %v3317_v11 = vsel %vm254_vm0, %v3314_v51, %v6147_v5  ;;  %v2326_v51 = vmul.f32 %v6739_v20, %v5335_v53 }
 0x543   : > { %v6239_v58 = vpop.permute.xlu1 %1896  ;;  %v1847_v50 = vpop.permute.xlu0 %1846  ;;  %v6241_v10 = vadd.f32 %v2217_v48, %v2215_v30  ;;  %v3190_v30 = vsel %vm327_vm5, %v6137_v22, %v6147_v5  ;;  %v2167_v48 = vmul.f32 %v6155_v25, %v5488_v21  ;;  %v3320_v15 = vsel %vm1764_vm10, %v3317_v11, %v6175_v18 }
 0x544   : > { %v1852_v56 = vsel %vm485_vm12, %v1847_v50, %v1849_v49  ;;  %v3210_v50 = vsel %vm327_vm5, %v6231_v13, %v3209_v1  ;;  %v3323_v5 = vsel %vm1767_vm11, %v3320_v15, %v3209_v1  ;;  %v6744_v1 = vld [vmem:[#allocation32_spill] sm:$0xff] }
 0x545   : > { %v1856_v24 = vmul.f32 %v1852_v56, %v5360_v40  ;;  %v2043_v27 = vmul.f32 %v1852_v56, %v5488_v21  ;;  %v3316_v56 = vsel %vm254_vm0, %v3313_v17, %v3190_v30  ;;  %v2216_v26 = vmul.f32 %v6744_v1, %v5545_v12 }
 0x547   : > { %v1858_v47 = vadd.f32 %v1856_v24, %v1833_v6  ;;  %v2178_v8 = vpop.permute.xlu1 %2177  ;;  %v1899_v3 = vpop.permute.xlu0 %1898  ;;  %v6253_v49 = vadd.f32 %v2047_v38, %v2043_v27  ;;  %v3309_v6 = vsel %vm1756_vm8, %v3306_v31, %v3170_v29  ;;  %v6743_v38 = vld [vmem:[#allocation20_spill] sm:$0xff]  ;;  %v3319_v27 = vsel %vm1764_vm10, %v3316_v56, %v3200_v36 }
 0x548   : > { %v2183_v46 = vsel %vm485_vm12, %v2178_v8, %v2180_v45  ;;  %v2212_v24 = vmul.f32 %v6743_v38, %v6732_v57  ;;  %v2330_v36 = vmul.f32 %v5710_v62, %v6732_v57  ;;  %v2329_v56 = vmul.f32 %v5696_v28, %v6732_v57 }
 0x549   : > { %v6257_v40 = vadd.f32 %v1877_v16, %v1858_v47  ;;  %v2187_v59 = vadd.f32 %v2183_v46, %v2167_v48  ;;  %v3322_v16 = vsel %vm1767_vm11, %v3319_v27, %v3210_v50  ;;  %v1901_v47 = vsel %vm759_vm14, %v6239_v58, %v1899_v3 }
 0x54a   : > { %v2304_v7 = vmul.f32 %v1901_v47, %v5488_v21  ;;  %v1905_v15 = vmul.f32 %v1901_v47, %v6732_v57  ;;  %v1950_v47 = vmul.f32 %v6739_v20, %v5464_v61 }
 0x54b   : > { %v3217_v39 = vpop.permute.xlu1 %3216  ;;  %v2199_v9 = vpop.permute.xlu0 %2198 }
 0x54c   : > { %v2204_v45 = vsel %vm6742_vm3, %v2199_v9, %v2201_v23  ;;  %v3176_v23 = vrot.slane %v3832_v14, 5 }
 0x54d   : > { %v2208_v25 = vmul.f32 %v2204_v45, %v5335_v53 }
 0x54e   : > { %v3312_v55 = vsel %vm1759_vm9, %v3309_v6, %v3176_v23  ;;  %v2334_v6 = vmul.f32 %v5618_v32, %v5545_v12 }
 0x54f   : > { %v2210_v41 = vadd.f32 %v2208_v25, %v2187_v59  ;;  %v1895_v54 = vpop.permute.xlu1 %1894  ;;  %v3219_v43 = vpop.permute.xlu0 %3218  ;;  %v3315_v63 = vsel %vm254_vm0, %v3312_v55, %v6137_v22  ;;  %v2325_v59 = vmul.f32 %v6743_v38, %v5335_v53  ;;  %v1977_v55 = vmul.f32 %v5710_v62, %v5478_v2 }
 0x550   : > { %v3220_v8 = vsel %vm327_vm5, %v3217_v39, %v3219_v43  ;;  %v3326_v18 = vsel %vm1770_vm13, %v3323_v5, %v3219_v43  ;;  %v3318_v3 = vsel %vm1764_vm10, %v3315_v63, %v6177_v37  ;;  %v1900_v9 = vsel %vm759_vm14, %v1895_v54, %v6239_v58 }
 0x551   : > { %3388 = vrot.lane.b32.xlu0 %v3326_v18, %s3949_s29  ;;  %v3325_v14 = vsel %vm1770_vm13, %v3322_v16, %v3220_v8  ;;  %v2214_v29 = vadd.f32 %v2212_v24, %v2210_v41  ;;  %v3321_v48 = vsel %vm1767_vm11, %v3318_v3, %v6231_v13  ;;  %v2303_v45 = vmul.f32 %v1900_v9, %v5488_v21 }
 0x552   : > { %3386 = vrot.lane.b32.xlu1 %v3325_v14, %s3949_s29  ;;  %v3324_v22 = vsel %vm1770_vm13, %v3321_v48, %v3217_v39  ;;  %v2333_v41 = vmul.f32 %v5614_v19, %v5545_v12  ;;  %v1907_v54 = vadd.f32 %v1905_v15, %v6224_v33  ;;  %v1904_v14 = vmul.f32 %v1900_v9, %v6732_v57 }
 0x553   : > { %v2318_v46 = vpop.permute.xlu1 %2317  ;;  %v2316_v31 = vpop.permute.xlu0 %2315  ;;  %v6301_v30 = vadd.f32 %v2216_v26, %v2214_v29  ;;  %v1998_v33 = vmul.f32 %v5618_v32, %v5486_v34  ;;  %v1949_v62 = vmul.f32 %v6743_v38, %v5464_v61  ;;  %v1976_v9 = vmul.f32 %v5696_v28, %v5478_v2 }
 0x554   : > { %v2320_v17 = vsel %vm870_vm15, %v2316_v31, %v2318_v46  ;;  %v1906_v46 = vadd.f32 %v1904_v14, %v6257_v40  ;;  %v2105_v28 = vmul.f32 %v6740_v42, %v5464_v61  ;;  %v2109_v42 = vmul.f32 %v5618_v32, %v5478_v2 }
 0x555   : > { %v2324_v37 = vadd.f32 %v2320_v17, %v2304_v7  ;;  %v2108_v32 = vmul.f32 %v5614_v19, %v5478_v2 }
 0x556   : > { %3384 = vrot.lane.b32.xlu1 %v3324_v22, %s3949_s29  ;;  %s3652_s29 = sshll.u32 %s4011_s25, 8  ;;  %s3871_s25 = sshll.u32 %s3954_s20, 4  ;;  %s3872_s25 = int_to_ptr.vmem [resolvable:$false] %s3871_s25 }
 0x557   : > { %v2328_v11 = vadd.f32 %v2326_v51, %v2324_v37  ;;  %v2060_v13 = vpop.permute.xlu1 %2059  ;;  %v2314_v50 = vpop.permute.xlu0 %2313  ;;  %s3571_s17 = scalar_lea.hbm %s6510_s6, %s3652_s29  ;;  %s3873_s26 = scalar_lea.vmem %s3872_s25, 512 }
 0x558   : > { %v2319_v58 = vsel %vm870_vm15, %v2314_v50, %v2316_v31  ;;  %v2088_v50 = vmul.f32 %v6739_v20, %v5545_v12  ;;  %p3874_p0 = scmp.lt.s32.totalorder %s3574_s10, %s3872_s25  ;;  %p3875_p1 = scmp.lt.s32.totalorder %s3873_s26, %s3867_s19 }
 0x559   : > { %v2323_v39 = vadd.f32 %v2319_v58, %v2303_v45  ;;  %v2332_v25 = vadd.f32 %v2330_v36, %v2328_v11 }
 0x55a   : > { %p3876_p2 = por %p3875_p1, %p3874_p0 }
 0x55b   : > { %v2327_v24 = vadd.f32 %v2325_v59, %v2323_v39  ;;  %v1921_v21 = vpop.permute.xlu1 %1920  ;;  %v2062_v23 = vpop.permute.xlu0 %2061  ;;  %v6323_v27 = vadd.f32 %v2334_v6, %v2332_v25  ;;  %v1997_v39 = vmul.f32 %v5614_v19, %v5486_v34 }
 0x55c   : > { %v2064_v17 = vsel %vm485_vm12, %v2060_v13, %v2062_v23  ;;  %p3877_p3 = pnand %p3876_p2, %p3870_p13 }
 0x55d   : > { %v2331_v5 = vadd.f32 %v2329_v56, %v2327_v24  ;;  %v2068_v51 = vadd.f32 %v2064_v17, %v6222_v44 }
 0x55f   : > { %v2058_v53 = vpop.permute.xlu1 %2057  ;;  %v1923_v43 = vpop.permute.xlu0 %1922  ;;  %v6328_v16 = vadd.f32 %v2333_v41, %v2331_v5 }
 0x560   : > { %v1925_v8 = vsel %vm870_vm15, %v1921_v21, %v1923_v43  ;;  %v2063_v40 = vsel %vm485_vm12, %v2058_v53, %v2060_v13 }
 0x561   : > { %v1929_v18 = vadd.f32 %v1925_v8, %v1907_v54  ;;  %v2067_v44 = vadd.f32 %v2063_v40, %v6253_v49  ;;  %v2104_v49 = vmul.f32 %v6744_v1, %v5464_v61 }
 0x563   : > { %v1952_v26 = vadd.f32 %v1950_v47, %v1929_v18  ;;  %v2234_v29 = vpop.permute.xlu1 %2233  ;;  %v2232_v63 = vpop.permute.xlu0 %2231 }
 0x564   : > { %v2236_v13 = vsel %vm1005_vm1, %v2232_v63, %v2234_v29 }
 0x565   : > { %v1979_v3 = vadd.f32 %v1977_v55, %v1952_v26  ;;  %v2240_v41 = vadd.f32 %v2236_v13, %v6241_v10  ;;  %v2260_v10 = vmul.f32 %v5540_v4, %v5486_v34  ;;  %v2279_v55 = vmul.f32 %v5560_v60, %v5673_v52  ;;  %v6745_v26 = vld [vmem:[#allocation30_spill] sm:$0xff] }
 0x566   : > { %v2280_v29 = vmul.f32 %v6745_v26, %v5673_v52 }
 0x567   : > { %v2078_v7 = vpop.permute.xlu1 %2077  ;;  %v1919_v31 = vpop.permute.xlu0 %1918  ;;  %v6339_v48 = vadd.f32 %v1998_v33, %v1979_v3 }
 0x568   : > { %v1924_v22 = vsel %vm870_vm15, %v1919_v31, %v1921_v21  ;;  %v2087_v21 = vmul.f32 %v6743_v38, %v5545_v12  ;;  %v2259_v12 = vmul.f32 %v5533_v0, %v5486_v34 }
 0x569   : > { %v1928_v57 = vadd.f32 %v1924_v22, %v1906_v46 }
 0x56b   : > { %v1951_v37 = vadd.f32 %v1949_v62, %v1928_v57  ;;  %v2230_v36 = vpop.permute.xlu1 %2229  ;;  %v2080_v45 = vpop.permute.xlu0 %2079 }
 0x56c   : > { %v2082_v11 = vsel %vm870_vm15, %v2078_v7, %v2080_v45  ;;  %v2235_v24 = vsel %vm1005_vm1, %v2230_v36, %v2232_v63 }
 0x56d   : > { %v2086_v58 = vadd.f32 %v2082_v11, %v2068_v51  ;;  %v1978_v59 = vadd.f32 %v1976_v9, %v1951_v37  ;;  %v2239_v53 = vadd.f32 %v2235_v24, %v6301_v30  ;;  %v6748_v24 = vld [vmem:[#allocation36_spill] sm:$0xff] }
 0x56f   : > { %v2090_v25 = vadd.f32 %v2088_v50, %v2086_v58  ;;  %v2250_v6 = vpop.permute.xlu1 %2249  ;;  %v2076_v56 = vpop.permute.xlu0 %2075  ;;  %v6357_v15 = vadd.f32 %v1997_v39, %v1978_v59  ;;  %v2386_v50 = vmul.f32 %v5641_v35, %v5486_v34  ;;  %v6746_v59 = vld [vmem:[#allocation38_spill] sm:$0xff] }
 0x570   : > { %v2081_v20 = vsel %vm870_vm15, %v2076_v56, %v2078_v7  ;;  %v2387_v39 = vmul.f32 %v6746_v59, %v5486_v34  ;;  %v6749_v59 = vld [vmem:[#allocation29_spill] sm:$0xff] }
 0x571   : > { %v2085_v23 = vadd.f32 %v2081_v20, %v2067_v44  ;;  %v2107_v5 = vadd.f32 %v2105_v28, %v2090_v25  ;;  %v2401_v20 = vmul.f32 %v6748_v24, %v5673_v52 }
 0x573   : > { %v2089_v54 = vadd.f32 %v2087_v21, %v2085_v23  ;;  %v2248_v43 = vpop.permute.xlu1 %2247  ;;  %v2252_v8 = vpop.permute.xlu0 %2251  ;;  %v6370_v47 = vadd.f32 %v2109_v42, %v2107_v5 }
 0x574   : > { %v2253_v38 = vsel %vm870_vm15, %v2248_v43, %v2250_v6  ;;  %v2254_v18 = vsel %vm870_vm15, %v2250_v6, %v2252_v8 }
 0x575   : > { %v2257_v61 = vadd.f32 %v2253_v38, %v2239_v53  ;;  %v2258_v1 = vadd.f32 %v2254_v18, %v2240_v41  ;;  %v2106_v30 = vadd.f32 %v2104_v49, %v2089_v54 }
 0x577   : > { %v2261_v14 = vadd.f32 %v2259_v12, %v2257_v61  ;;  %v2262_v63 = vadd.f32 %v2260_v10, %v2258_v1  ;;  %v2348_v3 = vpop.permute.xlu1 %2347  ;;  %v2346_v33 = vpop.permute.xlu0 %2345  ;;  %v2110_v7 = vadd.f32 %v2108_v32, %v2106_v30 }
 0x578   : > { %v2350_v62 = vsel %vm870_vm15, %v2346_v33, %v2348_v3 }
 0x579   : > { %v2281_v46 = vadd.f32 %v2279_v55, %v2261_v14  ;;  %v2282_v31 = vadd.f32 %v2280_v29, %v2262_v63  ;;  %v2354_v36 = vadd.f32 %v2350_v62, %v6323_v27  ;;  %v6747_v27 = vld [vmem:[#allocation37_spill] sm:$0xff] }
 0x57a   : > { %v2400_v13 = vmul.f32 %v6747_v27, %v5673_v52 }
 0x57b   : > { %v2285_v2 = vrot.slane %v2281_v46, 1  ;;  %v2286_v19 = vrot.slane %v2282_v31, 1  ;;  %v2367_v17 = vpop.permute.xlu1 %2366  ;;  %v2344_v22 = vpop.permute.xlu0 %2343 }
 0x57c   : > { %v2349_v57 = vsel %vm870_vm15, %v2344_v22, %v2346_v33 }
 0x57d   : > { %v2289_v9 = vadd.f32 %v2285_v2, %v2281_v46  ;;  %v2290_v60 = vadd.f32 %v2286_v19, %v2282_v31  ;;  %v2353_v45 = vadd.f32 %v2349_v57, %v6328_v16  ;;  %v2143_v31 = vmul.f32 %v5533_v0, %v5673_v52 }
 0x57f   : > { %v2291_v51 = vsub.f32 0.0, %v2289_v9  ;;  %v2292_v37 = vsub.f32 0.0, %v2290_v60  ;;  %v2365_v40 = vpop.permute.xlu1 %2364  ;;  %v2369_v11 = vpop.permute.xlu0 %2368 }
 0x580   : > { %v2370_v58 = vsel %vm759_vm14, %v2365_v40, %v2367_v17  ;;  %v2371_v28 = vsel %vm759_vm14, %v2367_v17, %v2369_v11 }
 0x581   : > { %v2293_v44 = vmul.f32 1.442695, %v2291_v51  ;;  %v2295_v25 = vmul.f32 1.442695, %v2292_v37  ;;  %v2374_v6 = vadd.f32 %v2370_v58, %v2353_v45  ;;  %v2375_v56 = vadd.f32 %v2371_v28, %v2354_v36 }
 0x583   : > { %3833 = vpow2.f32 %v2293_v44  ;;  %v2388_v16 = vadd.f32 %v2386_v50, %v2374_v6  ;;  %v2389_v35 = vadd.f32 %v2387_v39, %v2375_v56  ;;  %v2016_v21 = vpop.permute.xlu1 %2015  ;;  %v2014_v23 = vpop.permute.xlu0 %2013 }
 0x584   : > { %3835 = vpow2.f32 %v2295_v25  ;;  %v2018_v34 = vsel %vm870_vm15, %v2014_v23, %v2016_v21 }
 0x585   : > { %v2402_v5 = vadd.f32 %v2400_v13, %v2388_v16  ;;  %v2403_v42 = vadd.f32 %v2401_v20, %v2389_v35  ;;  %v2022_v49 = vadd.f32 %v2018_v34, %v6339_v48  ;;  %v6750_v34 = vld [vmem:[#allocation35_spill] sm:$0xff] }
 0x587   : > { %v2406_v41 = vrot.slane %v2402_v5, 1  ;;  %v2407_v53 = vrot.slane %v2403_v42, 1  ;;  %v2026_v54 = vrot.slane %v2022_v49, 1  ;;  %v2121_v43 = vpop.permute.xlu1 %2120  ;;  %v2012_v8 = vpop.permute.xlu0 %2011 }
 0x588   : > { %v2017_v12 = vsel %vm870_vm15, %v2012_v8, %v2014_v23 }
 0x589   : > { %v2410_v38 = vadd.f32 %v2406_v41, %v2402_v5  ;;  %v2411_v18 = vadd.f32 %v2407_v53, %v2403_v42  ;;  %v2030_v32 = vadd.f32 %v2026_v54, %v2022_v49  ;;  %v2021_v61 = vadd.f32 %v2017_v12, %v6357_v15 }
 0x58a   : > { %v2144_v15 = vmul.f32 %v5540_v4, %v5673_v52 }
 0x58b   : > { %v2412_v10 = vsub.f32 0.0, %v2410_v38  ;;  %v2413_v1 = vsub.f32 0.0, %v2411_v18  ;;  %v2032_v30 = vsub.f32 0.0, %v2030_v32  ;;  %v2025_v55 = vrot.slane %v2021_v61, 1  ;;  %v2119_v14 = vpop.permute.xlu1 %2118  ;;  %v2123_v26 = vpop.permute.xlu0 %2122  ;;  %v6751_v18 = vld [vmem:[#allocation17_spill] sm:$0xff] }
 0x58c   : > { %v2124_v48 = vsel %vm870_vm15, %v2119_v14, %v2121_v43  ;;  %v2125_v29 = vsel %vm870_vm15, %v2121_v43, %v2123_v26 }
 0x58d   : > { %v2414_v63 = vmul.f32 1.442695, %v2412_v10  ;;  %v2416_v3 = vmul.f32 1.442695, %v2413_v1  ;;  %v2035_v33 = vmul.f32 1.442695, %v2032_v30  ;;  %v2029_v46 = vadd.f32 %v2025_v55, %v2021_v61 }
 0x58e   : > { %v2128_v2 = vadd.f32 %v2124_v48, %v2110_v7  ;;  %v2129_v19 = vadd.f32 %v2125_v29, %v6370_v47  ;;  %v6752_v29 = vld [vmem:[#allocation19_spill] sm:$0xff] }
 0x58f   : > { %3837 = vpow2.f32 %v2414_v63  ;;  %v2031_v17 = vsub.f32 0.0, %v2029_v46 }
 0x590   : > { %v3834_v22 = vpop.eup %3833  ;;  %3839 = vpow2.f32 %v2416_v3  ;;  %v2145_v62 = vadd.f32 %v2143_v31, %v2128_v2  ;;  %v2146_v57 = vadd.f32 %v2144_v15, %v2129_v19 }
 0x591   : > { %v3836_v9 = vpop.eup %3835  ;;  %v2297_v60 = vadd.f32 1.0, %v3834_v22  ;;  %3841 = vpow2.f32 %v2035_v33  ;;  %v2033_v51 = vmul.f32 1.442695, %v2031_v17 }
 0x592   : > { %v2298_v37 = vadd.f32 1.0, %v3836_v9  ;;  %v2149_v36 = vrot.slane %v2145_v62, 1  ;;  %v2150_v45 = vrot.slane %v2146_v57, 1 }
 0x593   : > { %3843 = vrcp.f32 %v2297_v60 }
 0x594   : > { %3845 = vrcp.f32 %v2298_v37  ;;  %v2153_v0 = vadd.f32 %v2149_v36, %v2145_v62  ;;  %v2154_v7 = vadd.f32 %v2150_v45, %v2146_v57 }
 0x595   : > { %3847 = vpow2.f32 %v2033_v51 }
 0x596   : > { %v2155_v4 = vsub.f32 0.0, %v2153_v0  ;;  %v2156_v52 = vsub.f32 0.0, %v2154_v7 }
 0x598   : > { %v2157_v47 = vmul.f32 1.442695, %v2155_v4  ;;  %v2159_v40 = vmul.f32 1.442695, %v2156_v52  ;;  %v6409_v11 = vpop.permute.xlu1 %3423  ;;  %v3428_v50 = vpop.permute.xlu0 %3427 }
 0x599   : > { %v3439_v39 = vmul.f32 %v3428_v50, %v6749_v59  ;;  %v3438_v5 = vmul.f32 %v3428_v50, %v6750_v34  ;;  %v3437_v32 = vmul.f32 %v6409_v11, %v6751_v18  ;;  %v3436_v63 = vmul.f32 %v6409_v11, %v6752_v29 }
 0x59a   : > { %3849 = vpow2.f32 %v2157_v47 }
 0x59b   : > { %3851 = vpow2.f32 %v2159_v40 }
 0x59c   : > { %v3838_v58 = vpop.eup %3837  ;;  %v3410_v28 = vpop.permute.xlu1 %3409 }
 0x59d   : > { %v3412_v44 = vpop.permute.xlu0 %3411  ;;  %v3840_v25 = vpop.eup %3839  ;;  %v2418_v6 = vadd.f32 1.0, %v3838_v58 }
 0x59e   : > { %v3414_v56 = vsel %vm870_vm15, %v3410_v28, %v3412_v44  ;;  %v3842_v27 = vpop.eup %3841  ;;  %v2419_v13 = vadd.f32 1.0, %v3840_v25 }
 0x59f   : > { %v3449_v16 = vmul.f32 %v3439_v39, %v3414_v56  ;;  %3853 = vrcp.f32 %v2418_v6  ;;  %v2038_v24 = vadd.f32 1.0, %v3842_v27 }
 0x5a0   : > { %v3844_v20 = vpop.eup %3843  ;;  %3855 = vrcp.f32 %v2419_v13  ;;  %v3408_v21 = vpop.permute.xlu1 %3407  ;;  %v6753_v13 = vld [vmem:[#allocation14_spill] sm:$0xff] }
 0x5a1   : > { %v3451_v35 = vsel %vm254_vm0, %v3449_v16, 1.0  ;;  %v3846_v23 = vpop.eup %3845  ;;  %3857 = vrcp.f32 %v2038_v24  ;;  %v3413_v49 = vsel %vm870_vm15, %v3408_v21, %v3410_v28  ;;  %v3103_v54 = vrot.slane %v3844_v20, 7  ;;  %v6754_v21 = vld [vmem:[#allocation16_spill] sm:$0xff] }
 0x5a2   : > { %3461 = vst [vmem:[#allocation2 + $0x38] sm:$0x1f] %v3451_v35  ;;  %v3848_v42 = vpop.eup %3847  ;;  %v3448_v53 = vmul.f32 %v3438_v5, %v3413_v49  ;;  %v3104_v12 = vrot.slane %v3846_v23, 7  ;;  %v3107_v1 = vrot.slane %v3844_v20, 6  ;;  %v3108_v26 = vrot.slane %v3846_v23, 6 }
 0x5a3   : > { %v2037_v41 = vadd.f32 1.0, %v3848_v42  ;;  %v3147_v48 = vsel %vm1753_vm7, %v3844_v20, %v3103_v54  ;;  %v3111_v22 = vrot.slane %v3844_v20, 5  ;;  %v3112_v9 = vrot.slane %v3846_v23, 5 }
 0x5a4   : > { %v3395_v43 = vpop.permute.xlu1 %3394  ;;  %v3393_v8 = vpop.permute.xlu0 %3392  ;;  %v3450_v38 = vsel %vm254_vm0, %v3448_v53, 1.0  ;;  %v3148_v31 = vsel %vm1753_vm7, %v3846_v23, %v3104_v12  ;;  %v3149_v19 = vsel %vm1756_vm8, %v3147_v48, %v3107_v1  ;;  %v3432_v16 = vmul.f32 %v6409_v11, %v6753_v13 }
 0x5a5   : > { %3859 = vrcp.f32 %v2037_v41  ;;  %3460 = vst [vmem:[#allocation2 + $0x40] sm:$0x1f] %v3450_v38  ;;  %v3399_v61 = vsel %vm870_vm15, %v3393_v8, %v3395_v43  ;;  %v3150_v62 = vsel %vm1756_vm8, %v3148_v31, %v3108_v26  ;;  %v3151_v7 = vsel %vm1759_vm9, %v3149_v19, %v3111_v22  ;;  %v6755_v31 = vld [vmem:[#allocation25_spill] sm:$0xff] }
 0x5a6   : > { %v3447_v30 = vmul.f32 %v3437_v32, %v3399_v61  ;;  %v3152_v47 = vsel %vm1759_vm9, %v3150_v62, %v3112_v9  ;;  %v3433_v23 = vmul.f32 %v6409_v11, %v6754_v21 }
 0x5a7   : > { %v3850_v10 = vpop.eup %3849 }
 0x5a8   : > { %v3852_v55 = vpop.eup %3851  ;;  %v2161_v14 = vadd.f32 1.0, %v3850_v10  ;;  %v3391_v3 = vpop.permute.xlu0 %3390 }
 0x5a9   : > { %v3472_v33 = vld [vmem:[#allocation2 + $0x38] sm:$0x1f]  ;;  %v2162_v46 = vadd.f32 1.0, %v3852_v55  ;;  %v3398_v2 = vsel %vm870_vm15, %v3391_v3, %v3393_v8 }
 0x5aa   : > { %3643 = vmatprep.subr.msk.mxu0 %vm1764_vm10, %v3472_v33  ;;  %3861 = vrcp.f32 %v2161_v14  ;;  %v3446_v15 = vmul.f32 %v3436_v63, %v3398_v2  ;;  %v3430_v2 = vmul.f32 %v6409_v11, %v6755_v31 }
 0x5ab   : > { %3863 = vrcp.f32 %v2162_v46 }
 0x5ac   : > { %v3854_v17 = vpop.eup %3853  ;;  %v3471_v37 = vld [vmem:[#allocation2 + $0x40] sm:$0x1f] }
 0x5ad   : > { %v3856_v57 = vpop.eup %3855  ;;  %v3117_v60 = vrot.slane %v3854_v17, 4  ;;  %v3121_v51 = vrot.slane %v3854_v17, 3  ;;  %3644 = vmatpush1.msk.msra.mxu0 %vm1764_vm10, %v3471_v37  ;;  %v3125_v4 = vrot.slane %v3854_v17, 2  ;;  %v3129_v52 = vrot.slane %v3854_v17, 1  ;;  %v6756_v17 = vld [vmem:[#allocation26_spill] sm:$0xff] }
 0x5ae   : > { %v3858_v36 = vpop.eup %3857  ;;  %v3118_v45 = vrot.slane %v3856_v57, 4  ;;  %v3122_v0 = vrot.slane %v3856_v57, 3  ;;  %3507 = vmatprep.subr.mxu0 %v3447_v30  ;;  %v3126_v58 = vrot.slane %v3856_v57, 2  ;;  %v3130_v6 = vrot.slane %v3856_v57, 1 }
 0x5af   : > { %v3153_v40 = vsel %vm254_vm0, %v3151_v7, %v3117_v60  ;;  %v3072_v50 = vrot.slane %v3858_v36, 7  ;;  %3508 = vmatpush1.msra.mxu0 %v3446_v15  ;;  %v3076_v35 = vrot.slane %v3858_v36, 6  ;;  %v3080_v38 = vrot.slane %v3858_v36, 5  ;;  %v6758_v7 = vld [vmem:[#allocation34_spill] sm:$0xff] }
 0x5b0   : > { %v3154_v59 = vsel %vm254_vm0, %v3152_v47, %v3118_v45  ;;  %v3155_v39 = vsel %vm1764_vm10, %v3153_v40, %v3121_v51  ;;  %v3431_v22 = vmul.f32 %v6409_v11, %v6756_v17  ;;  %v6757_v51 = vld [vmem:[#allocation15_spill] sm:$0xff] }
 0x5b1   : > { %v3156_v28 = vsel %vm1764_vm10, %v3154_v59, %v3122_v0  ;;  %v3157_v44 = vsel %vm1767_vm11, %v3155_v39, %v3125_v4  ;;  %v3134_v34 = vsel %vm1753_vm7, %v3858_v36, %v3072_v50  ;;  %v3435_v37 = vmul.f32 %v6409_v11, %v6757_v51  ;;  %v3462_v50 = vld [vmem:[%s6509_s5] sm:$0xff] }
 0x5b2   : > { %v3860_v25 = vpop.eup %3859  ;;  %v3158_v56 = vsel %vm1767_vm11, %v3156_v28, %v3126_v58  ;;  %v3159_v27 = vsel %vm1770_vm13, %v3157_v44, %v3129_v52  ;;  %v3136_v8 = vsel %vm1756_vm8, %v3134_v34, %v3076_v35  ;;  %v3434_v4 = vmul.f32 %v6409_v11, %v6758_v7 }
 0x5b3   : > { %v3071_v24 = vrot.slane %v3860_v25, 7  ;;  %v3075_v20 = vrot.slane %v3860_v25, 6  ;;  %v3160_v5 = vsel %vm1770_vm13, %v3158_v56, %v3130_v6  ;;  %v3442_v42 = vmul.f32 %v3432_v16, %v3159_v27 }
 0x5b4   : > { %v3443_v41 = vmul.f32 %v3433_v23, %v3160_v5  ;;  %v3079_v43 = vrot.slane %v3860_v25, 5  ;;  %v3138_v55 = vsel %vm1759_vm9, %v3136_v8, %v3080_v38 }
 0x5b5   : > { %v3133_v49 = vsel %vm1753_vm7, %v3860_v25, %v3071_v24 }
 0x5b6   : > { %v3135_v53 = vsel %vm1756_vm8, %v3133_v49, %v3075_v20 }
 0x5b7   : > { %v3862_v54 = vpop.eup %3861  ;;  %v3137_v1 = vsel %vm1759_vm9, %v3135_v53, %v3079_v43 }
 0x5b8   : > { %v3864_v12 = vpop.eup %3863  ;;  %v3085_v18 = vrot.slane %v3862_v54, 4  ;;  %v3089_v32 = vrot.slane %v3862_v54, 3  ;;  %v3093_v30 = vrot.slane %v3862_v54, 2  ;;  %v3097_v48 = vrot.slane %v3862_v54, 1 }
 0x5b9   : > { %v3086_v61 = vrot.slane %v3864_v12, 4  ;;  %v3090_v10 = vrot.slane %v3864_v12, 3  ;;  %v3094_v26 = vrot.slane %v3864_v12, 2  ;;  %v3098_v3 = vrot.slane %v3864_v12, 1 }
 0x5ba   : > { %v3139_v14 = vsel %vm254_vm0, %v3137_v1, %v3085_v18 }
 0x5bb   : > { %v3140_v29 = vsel %vm254_vm0, %v3138_v55, %v3086_v61  ;;  %v3141_v63 = vsel %vm1764_vm10, %v3139_v14, %v3089_v32  ;;  %vm3473_vm0 = vcmask 302080  }
 0x5bc   : > { %v3142_v33 = vsel %vm1764_vm10, %v3140_v29, %v3090_v10  ;;  %v3143_v46 = vsel %vm1767_vm11, %v3141_v63, %v3093_v30 }
 0x5bd   : > { %v3144_v15 = vsel %vm1767_vm11, %v3142_v33, %v3094_v26  ;;  %v3145_v19 = vsel %vm1770_vm13, %v3143_v46, %v3097_v48 }
 0x5be   : > { %v3146_v62 = vsel %vm1770_vm13, %v3144_v15, %v3098_v3  ;;  %v3440_v57 = vmul.f32 %v3430_v2, %v3145_v19 }
 0x5bf   : > { %v3441_v9 = vmul.f32 %v3431_v22, %v3146_v62 }
 0x5c3   : > { %v3389_v60 = vpop.permute.xlu0 %3388 }
 0x5c4   : > { %v3387_v36 = vpop.permute.xlu1 %3386 }
 0x5c5   : > { %v3397_v45 = vsel %vm870_vm15, %v3387_v36, %v3389_v60 }
 0x5c6   : > { %v3445_v0 = vmul.f32 %v3435_v37, %v3397_v45 }
 0x5c8   : > { %v3385_v52 = vpop.permute.xlu1 %3384  ;;  %3509 = vmatprep.subr.mxu0 %v3445_v0 }
 0x5c9   : > { %v3396_v47 = vsel %vm870_vm15, %v3385_v52, %v3387_v36 }
 0x5ca   : > { %v3444_v40 = vmul.f32 %v3434_v4, %v3396_v47 }
 0x5cc   : > { %3510 = vmatpush1.msra.mxu0 %v3444_v40 }
 0x5cd   : > { %3511 = vmatprep.subr.mxu0 %v3443_v41 }
 0x5ce   : > { %3512 = vmatpush1.msra.mxu0 %v3442_v42 }
 0x5cf   : > { %3513 = vmatprep.subr.mxu0 %v3441_v9 }
 0x5d0   : > { %3514 = vmatpush1.msra.mxu0 %v3440_v57 }
 0x5d1   : > { %3645 = vmatmul.mubr.msk.f32.vlgmr.msra.gmra.mxu0 %vm3473_vm0, %v3462_v50 }
 0x691   : > { %v3549_v11 = vpop.f32.mrf.mxu0 }
 0x692   : > { %v3554_v58 = vmax.f32 %v3549_v11, 0.0 }
 0x693   : > { %v3551_v59 = vpop.f32.mrf.mxu0 }
 0x694   : > { %3556 = vst [vmem:[%s244_s9] sm:$0xff] %v3554_v58  ;;  %v3555_v39 = vmax.f32 %v3551_v59, 0.0 }
 0x696   : > { %3557 = vst [vmem:[%s244_s9 + $0x8] sm:$0xff] %v3555_v39 }
 0x697   : > { %3880 = shalt.err (!%p3877_p3)
}
 0x698   : > { %s3881_s28 = scalar_lea.hbm %s3571_s17, 256  ;;  %s3885_s13 = scalar_lea.hbm %s6510_s6, 512 }
 0x699   : > { %p3882_p4 = scmp.ne.s32.totalorder %s3571_s17, %s3881_s28  ;;  %p3886_p9 = scmp.lt.s32.totalorder %s3571_s17, %s6510_s6 }
 0x69a   : > { %p3887_p10 = scmp.lt.s32.totalorder %s3885_s13, %s3881_s28 }
 0x69b   : > { %p3883_p7 = pnand %p3882_p4, %p4028_p5 }
 0x69c   : > { %p3888_p11 = por %p3887_p10, %p3886_p9 }
 0x69d   : > { %p3884_p8 = pneg %p3883_p7 }
 0x69f   : > { %p3889_p12 = pnand %p3888_p11, %p3884_p8 }
 0x6a1   : > { %3892 = shalt.err (!%p3889_p12)
}
 0x6a2   : > { %3653 = dma.vmem_to_hbm [thread:$0]  (%p4028_p5), %s3574_s10, 256, %s3571_s17, %s3559_s18  }
 0x6a3 PF: > { %p3659_p13 = scmp.ge.s32.totalorder %s3927_s24, 2  ;;  %s3585_s9 = sand.u32 1, %s3915_s21  }
 0x6a4   : > { %s3586_s11 = scalar_lea.sflag [#allocation4], %s3585_s9 }
 0x6a5   : > { %p3656_p0 = pnand %p3659_p13, %p4032_p6 }
 0x6a7   : > { %p3657_p1 = pneg %p3656_p0 }
 0x6a9   : > { %3910 = dma.done.wait (%p3657_p1), %s3586_s11, 256  }
 0x6aa   : > { %3912 = vsyncadd (%p3657_p1), %s3586_s11, 4294967040  ;;  %p16_p2 = scmp.ge.s32.totalorder %s4015_s27, 4   ;;  %s6759_s21 = smov %s3919_s22 }
 0x6ab   : > { %s6760_s22 = smov %s3923_s23  ;;  %s6761_s23 = smov %s4026_s30 }
 0x6ac   : > { %s6762_s24 = smov %s4015_s27  ;;  %18 = sbr.rel (!%p16_p2) target bundleno = 3 (0x3), region = 79 }
 0x6b1   :  { %3591 = vsyncpa [#allocation4], 1 }
 0x6b2   :  { %3593 = vsyncpa [#allocation4 + $0x1], 1 }

</bundles_post_ra>
